<compile_context>
chip_gen: v7x
topology: tpu7x:2x2x1
jax: 0.10.0
libtpu: 0.0.40
codegen_flags: <defaults>
</compile_context>

<pallas_src>
import jax
import jax.numpy as jnp
from jax.experimental import pallas as pl
from jax.experimental.pallas import tpu as pltpu

GAIN = 0.7071067811865476          # rsqrt(2)
LRELU_SLOPE = 0.2
PN_EPS = 1e-8
VTAPS = (0.125, 0.375, 0.375, 0.125)   # [1,3,3,1]/8 separable taps (outer product /64)


# ----------------------------- kernel factory ---------------------------------

def _make_kernel(W, Cin, Cout, R):
    """Build the EncodeBlock kernel for one (batch, row-tile) grid step.

    R = output rows per tile (downsampled resolution).  Each step consumes input rows
    [2tR-3, 2tR+2R+2] (3-row halo each side, zero outside the image) and produces output
    rows [tR, tR+R).
    """
    Wo = W // 2
    Wp = W + 2
    TIN = 2 * R          # core input rows per tile
    XROWS = TIN + 6      # input rows + 3-row halo
    F1ROWS = TIN + 4     # conv1 output rows needed
    F2ROWS = TIN + 2     # conv2 / shortcut feature rows needed by the blur

    def act(v):
        # PixelNorm -> LeakyReLU(0.2).  act(0) == 0, so zero padding is preserved.
        ms = jnp.mean(v * v, axis=-1, keepdims=True)
        v = v * jax.lax.rsqrt(ms + PN_EPS)
        return jnp.where(v >= 0, v, LRELU_SLOPE * v)

    def conv3x3(src_ref, nrows, w_ref, b):
        # src_ref: (nrows+2, Wp, Ci) zero-padded in W (cols 0, Wp-1).
        # w_ref:   (3, 3*Ci, Cof), kx-major slabs, rows ordered (ky, ci).
        # Returns (nrows, W, Cof) = conv + bias.
        Ci = src_ref.shape[-1]
        Cof = w_ref.shape[-1]
        acc = None
        for kx in range(3):  # one sublane-offset column slice per kx; ky slices are free
            cs = src_ref[:, kx:kx + W, :]                       # (nrows+2, W, Ci)
            patch = jnp.concatenate(
                [cs[0:nrows], cs[1:nrows + 1], cs[2:nrows + 2]], axis=-1)  # (nrows, W, 3Ci)
            d = jnp.dot(patch.reshape(nrows * W, 3 * Ci), w_ref[kx],
                        preferred_element_type=jnp.float32)
            acc = d if acc is None else acc + d
        return acc.reshape(nrows, W, Cof) + b

    def blur_down(fref):
        # fref: (F2ROWS, Wp, C) = feature rows [2tR-1, 2tR+2R] (out-of-image rows already
        # zeroed), zero border columns.  upfirdn2d([1,3,3,1]x[1,3,3,1]/64, down=2, pad=1)
        # done as shift/FMA work only: one strided load per column parity, row decimation
        # via a free leading-dim reshape.  Returns (R, Wo, C).
        C = fref.shape[-1]
        fe = fref[:, pl.ds(0, Wo + 1, stride=2), :]    # even padded cols 0,2,...,W
        fo = fref[:, pl.ds(1, Wo + 1, stride=2), :]    # odd  padded cols 1,3,...,W+1

        def vert(f):                                   # (F2ROWS, Wo+1, C) -> (R, Wo+1, C)
            g = f.reshape(R + 1, 2, Wo + 1, C)         # leading-dim regroup: free
            ev, od = g[:, 0], g[:, 1]
            return (VTAPS[0] * ev[:R] + VTAPS[1] * od[:R]
                    + VTAPS[2] * ev[1:] + VTAPS[3] * od[1:])

        be, bo = vert(fe), vert(fo)
        return (VTAPS[0] * be[:, :Wo] + VTAPS[1] * bo[:, :Wo]
                + VTAPS[2] * be[:, 1:] + VTAPS[3] * bo[:, 1:])

    def kernel(x_ref, w1_ref, b1_ref, w2_ref, b2_ref, ws_ref, o_ref,
               xpad, f1pad, f2pad, spad):
        t = pl.program_id(1)
        nt = pl.num_programs(1)
        base = t * TIN
        if TIN % 8 == 0:
            base = pl.multiple_of(base, 8)

        # --- zero-pad border columns only (cheap, every step; interiors are always
        #     fully overwritten below, so no full-buffer zeroing is ever needed). ---
        xpad[:, 0:1, :] = jnp.zeros((XROWS, 1, Cin), jnp.float32)
        xpad[:, Wp - 1:Wp, :] = jnp.zeros((XROWS, 1, Cin), jnp.float32)
        f1pad[:, 0:1, :] = jnp.zeros((F1ROWS, 1, Cin), jnp.float32)
        f1pad[:, Wp - 1:Wp, :] = jnp.zeros((F1ROWS, 1, Cin), jnp.float32)
        f2pad[:, 0:1, :] = jnp.zeros((F2ROWS, 1, Cout), jnp.float32)
        f2pad[:, Wp - 1:Wp, :] = jnp.zeros((F2ROWS, 1, Cout), jnp.float32)
        spad[:, 0:1, :] = jnp.zeros((F2ROWS, 1, Cout), jnp.float32)
        spad[:, Wp - 1:Wp, :] = jnp.zeros((F2ROWS, 1, Cout), jnp.float32)

        xcore = x_ref[0, pl.ds(base, TIN), :, :]               # (TIN, W, Cin) raw rows

        # --- residual input: PixelNorm -> LReLU, 3-row halo; rows outside the image
        #     are conv1's zero padding. ---
        xpad[3:3 + TIN, 1:1 + W, :] = act(xcore)

        @pl.when(t > 0)
        def _():
            xpad[0:3, 1:1 + W, :] = act(x_ref[0, pl.ds(base - 3, 3), :, :])

        @pl.when(t == 0)
        def _():
            xpad[0:3, 1:1 + W, :] = jnp.zeros((3, W, Cin), jnp.float32)

        @pl.when(t < nt - 1)
        def _():
            xpad[3 + TIN:XROWS, 1:1 + W, :] = act(x_ref[0, pl.ds(base + TIN, 3), :, :])

        @pl.when(t == nt - 1)
        def _():
            xpad[3 + TIN:XROWS, 1:1 + W, :] = jnp.zeros((3, W, Cin), jnp.float32)

        # --- conv1 -> PixelNorm -> LReLU; out-of-image rows are conv2's zero padding ---
        y1 = conv3x3(xpad, F1ROWS, w1_ref, b1_ref[...])
        f1pad[:, 1:1 + W, :] = act(y1)

        @pl.when(t == 0)
        def _():
            f1pad[0:2, :, :] = jnp.zeros((2, Wp, Cin), jnp.float32)

        @pl.when(t == nt - 1)
        def _():
            f1pad[F1ROWS - 2:F1ROWS, :, :] = jnp.zeros((2, Wp, Cin), jnp.float32)

        # --- conv2; out-of-image rows are the blur's zero padding ---
        y2 = conv3x3(f1pad, F2ROWS, w2_ref, b2_ref[...])
        f2pad[:, 1:1 + W, :] = y2

        @pl.when(t == 0)
        def _():
            f2pad[0:1, :, :] = jnp.zeros((1, Wp, Cout), jnp.float32)

        @pl.when(t == nt - 1)
        def _():
            f2pad[F2ROWS - 1:F2ROWS, :, :] = jnp.zeros((1, Wp, Cout), jnp.float32)

        # --- shortcut: 1x1 conv (no bias), own pad scratch (no false dep on f2pad) ---
        ws = ws_ref[...]
        spad[1:1 + TIN, 1:1 + W, :] = jnp.dot(
            xcore.reshape(TIN * W, Cin), ws,
            preferred_element_type=jnp.float32).reshape(TIN, W, Cout)

        @pl.when(t > 0)
        def _():
            row = x_ref[0, pl.ds(base - 1, 1), :, :]
            spad[0:1, 1:1 + W, :] = jnp.dot(
                row.reshape(W, Cin), ws,
                preferred_element_type=jnp.float32).reshape(1, W, Cout)

        @pl.when(t == 0)
        def _():
            spad[0:1, :, :] = jnp.zeros((1, Wp, Cout), jnp.float32)

        @pl.when(t < nt - 1)
        def _():
            row = x_ref[0, pl.ds(base + TIN, 1), :, :]
            spad[F2ROWS - 1:F2ROWS, 1:1 + W, :] = jnp.dot(
                row.reshape(W, Cin), ws,
                preferred_element_type=jnp.float32).reshape(1, W, Cout)

        @pl.when(t == nt - 1)
        def _():
            spad[F2ROWS - 1:F2ROWS, :, :] = jnp.zeros((1, Wp, Cout), jnp.float32)

        # --- blur + downsample both branches, combine ---
        res = blur_down(f2pad)
        sc = blur_down(spad)
        o_ref[0] = (GAIN * (sc + res)).astype(o_ref.dtype)

    return kernel, XROWS, F1ROWS, F2ROWS, Wp


# --------------------------------- wrappers ------------------------------------

def _pick_row_tile(Ho, requested=None):
    if requested is None:
        if Ho <= 16:
            requested = Ho
        else:
            divs = [r for r in range(2, 17) if Ho % r == 0]
            requested = max(divs) if divs else Ho
    if Ho % requested != 0:
        raise ValueError(f"row_tile={requested} must divide Ho={Ho}")
    if Ho // requested > 1 and requested < 2:
        raise ValueError("row_tile must be >= 2 when the height is tiled")
    return requested


def encode_block_pallas_nhwc(x_nhwc, w1, b1, w2, b2, ws, *, row_tile=None):
    """x_nhwc: (N, H, W, Cin) f32; w*: (3, 3, Cin, C*) HWIO; ws: (Cin, Cout)."""
    N, H, W, Cin = x_nhwc.shape
    Cout = w2.shape[-1]
    assert H % 2 == 0 and W % 2 == 0, "H and W must be even for the 2x downsample"
    Ho, Wo = H // 2, W // 2
    R = _pick_row_tile(Ho, row_tile)
    T = Ho // R

    # kx-major weight slabs: w_r[kx] is (3*Cin, C*), rows ordered (ky, ci) to match the
    # kernel's channel-concatenated ky patches (3 big-K dots per conv instead of 9).
    w1r = jnp.transpose(w1, (1, 0, 2, 3)).reshape(3, 3 * Cin, Cin)
    w2r = jnp.transpose(w2, (1, 0, 2, 3)).reshape(3, 3 * Cin, Cout)

    kernel, XROWS, F1ROWS, F2ROWS, Wp = _make_kernel(W, Cin, Cout, R)

    out = pl.pallas_call(
        kernel,
        out_shape=jax.ShapeDtypeStruct((N, Ho, Wo, Cout), jnp.float32),
        grid=(N, T),
        in_specs=[
            pl.BlockSpec((1, H, W, Cin), lambda n, t: (n, 0, 0, 0)),
            pl.BlockSpec((3, 3 * Cin, Cin), lambda n, t: (0, 0, 0)),
            pl.BlockSpec((1, Cin), lambda n, t: (0, 0)),
            pl.BlockSpec((3, 3 * Cin, Cout), lambda n, t: (0, 0, 0)),
            pl.BlockSpec((1, Cout), lambda n, t: (0, 0)),
            pl.BlockSpec((Cin, Cout), lambda n, t: (0, 0)),
        ],
        out_specs=pl.BlockSpec((1, R, Wo, Cout), lambda n, t: (n, t, 0, 0)),
        scratch_shapes=[
            pltpu.VMEM((XROWS, Wp, Cin), jnp.float32),    # activated input rows + halo
            pltpu.VMEM((F1ROWS, Wp, Cin), jnp.float32),   # conv1 features (W-padded)
            pltpu.VMEM((F2ROWS, Wp, Cout), jnp.float32),  # conv2 features (residual blur)
            pltpu.VMEM((F2ROWS, Wp, Cout), jnp.float32),  # shortcut features (own pad)
        ],
        compiler_params=pltpu.CompilerParams(
            dimension_semantics=("parallel", "parallel"),
            vmem_limit_bytes=64 * 1024 * 1024,
        ),
    )(x_nhwc, w1r, b1.reshape(1, Cin), w2r, b2.reshape(1, Cout), ws)
    return out


def encode_block_pallas(x_nchw, w1, b1, w2, b2, ws, *, row_tile=None):
    """NCHW convenience wrapper matching the PyTorch module's layout."""
    x = jnp.transpose(x_nchw, (0, 2, 3, 1))
    out = encode_block_pallas_nhwc(x, w1, b1, w2, b2, ws, row_tile=row_tile)
    return jnp.transpose(out, (0, 3, 1, 2))


# --------------------------- pure-JAX reference --------------------------------

def encode_block_reference(x, w1, b1, w2, b2, ws):
    def pixel_norm(v):
        return v * jax.lax.rsqrt(jnp.mean(v * v, axis=1, keepdims=True) + PN_EPS)

    def leaky(v):
        return jnp.where(v >= 0, v, LRELU_SLOPE * v)

    def conv3x3(v, w_khw_io, b):
        w_oihw = jnp.transpose(w_khw_io, (3, 2, 0, 1))
        y = jax.lax.conv_general_dilated(v, w_oihw, (1, 1), ((1, 1), (1, 1)),
                                         dimension_numbers=("NCHW", "OIHW", "NCHW"))
        return y + b.reshape(1, -1, 1, 1)

    def conv1x1(v, w_io):
        w_oihw = jnp.transpose(w_io, (1, 0)).reshape(w_io.shape[1], w_io.shape[0], 1, 1)
        return jax.lax.conv_general_dilated(v, w_oihw, (1, 1), ((0, 0), (0, 0)),
                                            dimension_numbers=("NCHW", "OIHW", "NCHW"))

    def downsample(v):
        C = v.shape[1]
        t = jnp.array([1.0, 3.0, 3.0, 1.0], jnp.float32)
        k = jnp.outer(t, t)
        k = k / jnp.sum(k)
        w = jnp.broadcast_to(k, (C, 1, 4, 4))
        return jax.lax.conv_general_dilated(v, w, (2, 2), ((1, 1), (1, 1)),
                                            dimension_numbers=("NCHW", "OIHW", "NCHW"),
                                            feature_group_count=C)

    r = pixel_norm(x); r = leaky(r); r = conv3x3(r, w1, b1)
    r = pixel_norm(r); r = leaky(r); r = conv3x3(r, w2, b2)
    r = downsample(r)
    s = downsample(conv1x1(x, ws))
    return jnp.float32(GAIN) * (s + r)


# ----------------------------------- main ---------------------------------------

if __name__ == "__main__":
    N, Cin, Cout, H, W = 2, 4, 8, 16, 16
    key = jax.random.PRNGKey(0)
    kx, k1, k2, k3, k4, k5 = jax.random.split(key, 6)
    x = jax.random.normal(kx, (N, Cin, H, W), jnp.float32)
    w1 = 0.2 * jax.random.normal(k1, (3, 3, Cin, Cin), jnp.float32)
    b1 = 0.1 * jax.random.normal(k2, (Cin,), jnp.float32)
    w2 = 0.2 * jax.random.normal(k3, (3, 3, Cin, Cout), jnp.float32)
    b2 = 0.1 * jax.random.normal(k4, (Cout,), jnp.float32)
    ws = 0.2 * jax.random.normal(k5, (Cin, Cout), jnp.float32)

    # row_tile=4 -> 2 row tiles of 4 output rows each: exercises the halo reads and the
    # image-boundary zeroing paths of the tiled kernel.
    out = jax.block_until_ready(encode_block_pallas(x, w1, b1, w2, b2, ws, row_tile=4))
    ref = jax.block_until_ready(encode_block_reference(x, w1, b1, w2, b2, ws))

    assert out.shape == (N, Cout, H // 2, W // 2), out.shape
    if not jnp.allclose(out, ref, rtol=1e-4, atol=1e-4):
        raise AssertionError(
            f"mismatch vs reference, max abs err {jnp.max(jnp.abs(out - ref))}")
    print("KERNEL_OK")
</pallas_src>

<mosaic_0001>
module attributes {stable_mosaic.version = 11 : i64} {
  func.func @kernel(%arg0: i32, %arg1: i32, %arg2: memref<1x16x16x4xf32, #tpu.memory_space<vmem>>, %arg3: memref<3x12x4xf32, #tpu.memory_space<vmem>>, %arg4: memref<1x4xf32, #tpu.memory_space<vmem>>, %arg5: memref<3x12x8xf32, #tpu.memory_space<vmem>>, %arg6: memref<1x8xf32, #tpu.memory_space<vmem>>, %arg7: memref<4x8xf32, #tpu.memory_space<vmem>>, %arg8: memref<1x4x8x8xf32, #tpu.memory_space<vmem>>, %arg9: memref<14x18x4xf32, #tpu.memory_space<vmem>>, %arg10: memref<12x18x4xf32, #tpu.memory_space<vmem>>, %arg11: memref<10x18x8xf32, #tpu.memory_space<vmem>>, %arg12: memref<10x18x8xf32, #tpu.memory_space<vmem>>) attributes {dimension_semantics = [#tpu.dimension_semantics<parallel>, #tpu.dimension_semantics<parallel>], iteration_bounds = array<i64: 2, 2>, scalar_prefetch = 0 : i64, scratch_operands = 4 : i64, tpu.core_type = #tpu.core_type<tc>, window_params = [{transform_indices = @transform_0, window_bounds = array<i64: 1, 16, 16, 4>}, {pipeline_mode = #tpu.pipeline_mode<synchronous>, transform_indices = @transform_1, window_bounds = array<i64: 3, 12, 4>}, {pipeline_mode = #tpu.pipeline_mode<synchronous>, transform_indices = @transform_2, window_bounds = array<i64: 1, 4>}, {pipeline_mode = #tpu.pipeline_mode<synchronous>, transform_indices = @transform_3, window_bounds = array<i64: 3, 12, 8>}, {pipeline_mode = #tpu.pipeline_mode<synchronous>, transform_indices = @transform_4, window_bounds = array<i64: 1, 8>}, {pipeline_mode = #tpu.pipeline_mode<synchronous>, transform_indices = @transform_5, window_bounds = array<i64: 4, 8>}, {transform_indices = @transform_6, window_bounds = array<i64: 1, 4, 8, 8>}]} {
    %c8_i32 = arith.constant 8 : i32
    %0 = arith.muli %arg1, %c8_i32 : i32
    %1 = tpu.assume_multiple %0, 8 : i32
    %cst = arith.constant 0.000000e+00 : f32
    %2 = vector.broadcast %cst : f32 to vector<14x1x4xf32>
    %c0 = arith.constant 0 : index
    %c0_0 = arith.constant 0 : index
    %c0_1 = arith.constant 0 : index
    %3 = vector.load %arg9[%c0, %c0_0, %c0_1] : memref<14x18x4xf32, #tpu.memory_space<vmem>>, vector<14x1x4xf32>
    tpu.vector_store %arg9[%c0, %c0_0, %c0_1], %2 {strides = array<i32>} : memref<14x18x4xf32, #tpu.memory_space<vmem>>, vector<14x1x4xf32>,
    %cst_2 = arith.constant 0.000000e+00 : f32
    %4 = vector.broadcast %cst_2 : f32 to vector<14x1x4xf32>
    %c0_3 = arith.constant 0 : index
    %c17 = arith.constant 17 : index
    %c0_4 = arith.constant 0 : index
    %5 = vector.load %arg9[%c0_3, %c17, %c0_4] : memref<14x18x4xf32, #tpu.memory_space<vmem>>, vector<14x1x4xf32>
    tpu.vector_store %arg9[%c0_3, %c17, %c0_4], %4 {strides = array<i32>} : memref<14x18x4xf32, #tpu.memory_space<vmem>>, vector<14x1x4xf32>,
    %cst_5 = arith.constant 0.000000e+00 : f32
    %6 = vector.broadcast %cst_5 : f32 to vector<12x1x4xf32>
    %c0_6 = arith.constant 0 : index
    %c0_7 = arith.constant 0 : index
    %c0_8 = arith.constant 0 : index
    %7 = vector.load %arg10[%c0_6, %c0_7, %c0_8] : memref<12x18x4xf32, #tpu.memory_space<vmem>>, vector<12x1x4xf32>
    tpu.vector_store %arg10[%c0_6, %c0_7, %c0_8], %6 {strides = array<i32>} : memref<12x18x4xf32, #tpu.memory_space<vmem>>, vector<12x1x4xf32>,
    %cst_9 = arith.constant 0.000000e+00 : f32
    %8 = vector.broadcast %cst_9 : f32 to vector<12x1x4xf32>
    %c0_10 = arith.constant 0 : index
    %c17_11 = arith.constant 17 : index
    %c0_12 = arith.constant 0 : index
    %9 = vector.load %arg10[%c0_10, %c17_11, %c0_12] : memref<12x18x4xf32, #tpu.memory_space<vmem>>, vector<12x1x4xf32>
    tpu.vector_store %arg10[%c0_10, %c17_11, %c0_12], %8 {strides = array<i32>} : memref<12x18x4xf32, #tpu.memory_space<vmem>>, vector<12x1x4xf32>,
    %cst_13 = arith.constant 0.000000e+00 : f32
    %10 = vector.broadcast %cst_13 : f32 to vector<10x1x8xf32>
    %c0_14 = arith.constant 0 : index
    %c0_15 = arith.constant 0 : index
    %c0_16 = arith.constant 0 : index
    %11 = vector.load %arg11[%c0_14, %c0_15, %c0_16] : memref<10x18x8xf32, #tpu.memory_space<vmem>>, vector<10x1x8xf32>
    tpu.vector_store %arg11[%c0_14, %c0_15, %c0_16], %10 {strides = array<i32>} : memref<10x18x8xf32, #tpu.memory_space<vmem>>, vector<10x1x8xf32>,
    %cst_17 = arith.constant 0.000000e+00 : f32
    %12 = vector.broadcast %cst_17 : f32 to vector<10x1x8xf32>
    %c0_18 = arith.constant 0 : index
    %c17_19 = arith.constant 17 : index
    %c0_20 = arith.constant 0 : index
    %13 = vector.load %arg11[%c0_18, %c17_19, %c0_20] : memref<10x18x8xf32, #tpu.memory_space<vmem>>, vector<10x1x8xf32>
    tpu.vector_store %arg11[%c0_18, %c17_19, %c0_20], %12 {strides = array<i32>} : memref<10x18x8xf32, #tpu.memory_space<vmem>>, vector<10x1x8xf32>,
    %cst_21 = arith.constant 0.000000e+00 : f32
    %14 = vector.broadcast %cst_21 : f32 to vector<10x1x8xf32>
    %c0_22 = arith.constant 0 : index
    %c0_23 = arith.constant 0 : index
    %c0_24 = arith.constant 0 : index
    %15 = vector.load %arg12[%c0_22, %c0_23, %c0_24] : memref<10x18x8xf32, #tpu.memory_space<vmem>>, vector<10x1x8xf32>
    tpu.vector_store %arg12[%c0_22, %c0_23, %c0_24], %14 {strides = array<i32>} : memref<10x18x8xf32, #tpu.memory_space<vmem>>, vector<10x1x8xf32>,
    %cst_25 = arith.constant 0.000000e+00 : f32
    %16 = vector.broadcast %cst_25 : f32 to vector<10x1x8xf32>
    %c0_26 = arith.constant 0 : index
    %c17_27 = arith.constant 17 : index
    %c0_28 = arith.constant 0 : index
    %17 = vector.load %arg12[%c0_26, %c17_27, %c0_28] : memref<10x18x8xf32, #tpu.memory_space<vmem>>, vector<10x1x8xf32>
    tpu.vector_store %arg12[%c0_26, %c17_27, %c0_28], %16 {strides = array<i32>} : memref<10x18x8xf32, #tpu.memory_space<vmem>>, vector<10x1x8xf32>,
    %c0_29 = arith.constant 0 : index
    %18 = arith.index_cast %1 : i32 to index
    %c0_30 = arith.constant 0 : index
    %c0_31 = arith.constant 0 : index
    %19 = vector.load %arg2[%c0_29, %18, %c0_30, %c0_31] : memref<1x16x16x4xf32, #tpu.memory_space<vmem>>, vector<1x8x16x4xf32>
    %20 = vector.shape_cast %19 : vector<1x8x16x4xf32> to vector<8x16x4xf32>
    %21 = arith.mulf %20, %20 : vector<8x16x4xf32>
    %cst_32 = arith.constant dense<0.000000e+00> : vector<8x16xf32>
    %22 = vector.multi_reduction <add>, %21, %cst_32 [2] : vector<8x16x4xf32> to vector<8x16xf32>
    %23 = vector.shape_cast %22 : vector<8x16xf32> to vector<8x16x1xf32>
    %cst_33 = arith.constant 4.000000e+00 : f32
    %24 = vector.broadcast %cst_33 : f32 to vector<8x16x1xf32>
    %25 = arith.divf %23, %24 : vector<8x16x1xf32>
    %cst_34 = arith.constant 9.99999993E-9 : f32
    %26 = vector.broadcast %cst_34 : f32 to vector<8x16x1xf32>
    %27 = arith.addf %25, %26 : vector<8x16x1xf32>
    %28 = math.rsqrt %27 : vector<8x16x1xf32>
    %29 = vector.broadcast %28 : vector<8x16x1xf32> to vector<8x16x4xf32>
    %30 = arith.mulf %20, %29 : vector<8x16x4xf32>
    %cst_35 = arith.constant 0.000000e+00 : f32
    %31 = vector.broadcast %cst_35 : f32 to vector<8x16x4xf32>
    %32 = arith.cmpf oge, %30, %31 : vector<8x16x4xf32>
    %cst_36 = arith.constant 2.000000e-01 : f32
    %33 = vector.broadcast %cst_36 : f32 to vector<8x16x4xf32>
    %34 = arith.mulf %33, %30 : vector<8x16x4xf32>
    %35 = arith.select %32, %30, %34 : vector<8x16x4xi1>, vector<8x16x4xf32>
    %c3 = arith.constant 3 : index
    %c1 = arith.constant 1 : index
    %c0_37 = arith.constant 0 : index
    %36 = vector.load %arg9[%c3, %c1, %c0_37] : memref<14x18x4xf32, #tpu.memory_space<vmem>>, vector<8x16x4xf32>
    tpu.vector_store %arg9[%c3, %c1, %c0_37], %35 {strides = array<i32>} : memref<14x18x4xf32, #tpu.memory_space<vmem>>, vector<8x16x4xf32>,
    %c0_i32 = arith.constant 0 : i32
    %37 = arith.cmpi sgt, %arg1, %c0_i32 : i32
    %38 = arith.extui %37 : i1 to i32
    %c0_i32_38 = arith.constant 0 : i32
    %39 = arith.cmpi ne, %38, %c0_i32_38 : i32
    scf.if %39 {
      %c3_i32 = arith.constant 3 : i32
      %283 = arith.subi %1, %c3_i32 : i32
      %c0_163 = arith.constant 0 : index
      %284 = arith.index_cast %283 : i32 to index
      %c0_164 = arith.constant 0 : index
      %c0_165 = arith.constant 0 : index
      %285 = vector.load %arg2[%c0_163, %284, %c0_164, %c0_165] : memref<1x16x16x4xf32, #tpu.memory_space<vmem>>, vector<1x3x16x4xf32>
      %286 = vector.shape_cast %285 : vector<1x3x16x4xf32> to vector<3x16x4xf32>
      %287 = arith.mulf %286, %286 : vector<3x16x4xf32>
      %cst_166 = arith.constant dense<0.000000e+00> : vector<3x16xf32>
      %288 = vector.multi_reduction <add>, %287, %cst_166 [2] : vector<3x16x4xf32> to vector<3x16xf32>
      %289 = vector.shape_cast %288 : vector<3x16xf32> to vector<3x16x1xf32>
      %cst_167 = arith.constant 4.000000e+00 : f32
      %290 = vector.broadcast %cst_167 : f32 to vector<3x16x1xf32>
      %291 = arith.divf %289, %290 : vector<3x16x1xf32>
      %cst_168 = arith.constant 9.99999993E-9 : f32
      %292 = vector.broadcast %cst_168 : f32 to vector<3x16x1xf32>
      %293 = arith.addf %291, %292 : vector<3x16x1xf32>
      %294 = math.rsqrt %293 : vector<3x16x1xf32>
      %295 = vector.broadcast %294 : vector<3x16x1xf32> to vector<3x16x4xf32>
      %296 = arith.mulf %286, %295 : vector<3x16x4xf32>
      %cst_169 = arith.constant 0.000000e+00 : f32
      %297 = vector.broadcast %cst_169 : f32 to vector<3x16x4xf32>
      %298 = arith.cmpf oge, %296, %297 : vector<3x16x4xf32>
      %cst_170 = arith.constant 2.000000e-01 : f32
      %299 = vector.broadcast %cst_170 : f32 to vector<3x16x4xf32>
      %300 = arith.mulf %299, %296 : vector<3x16x4xf32>
      %301 = arith.select %298, %296, %300 : vector<3x16x4xi1>, vector<3x16x4xf32>
      %c0_171 = arith.constant 0 : index
      %c1_172 = arith.constant 1 : index
      %c0_173 = arith.constant 0 : index
      %302 = vector.load %arg9[%c0_171, %c1_172, %c0_173] : memref<14x18x4xf32, #tpu.memory_space<vmem>>, vector<3x16x4xf32>
      tpu.vector_store %arg9[%c0_171, %c1_172, %c0_173], %301 {strides = array<i32>} : memref<14x18x4xf32, #tpu.memory_space<vmem>>, vector<3x16x4xf32>,
    } else {
    }
    %c0_i32_39 = arith.constant 0 : i32
    %40 = arith.cmpi eq, %arg1, %c0_i32_39 : i32
    %41 = arith.extui %40 : i1 to i32
    %c0_i32_40 = arith.constant 0 : i32
    %42 = arith.cmpi ne, %41, %c0_i32_40 : i32
    scf.if %42 {
      %cst_163 = arith.constant 0.000000e+00 : f32
      %283 = vector.broadcast %cst_163 : f32 to vector<3x16x4xf32>
      %c0_164 = arith.constant 0 : index
      %c1_165 = arith.constant 1 : index
      %c0_166 = arith.constant 0 : index
      %284 = vector.load %arg9[%c0_164, %c1_165, %c0_166] : memref<14x18x4xf32, #tpu.memory_space<vmem>>, vector<3x16x4xf32>
      tpu.vector_store %arg9[%c0_164, %c1_165, %c0_166], %283 {strides = array<i32>} : memref<14x18x4xf32, #tpu.memory_space<vmem>>, vector<3x16x4xf32>,
    } else {
    }
    %c1_i32 = arith.constant 1 : i32
    %43 = arith.cmpi slt, %arg1, %c1_i32 : i32
    %44 = arith.extui %43 : i1 to i32
    %c0_i32_41 = arith.constant 0 : i32
    %45 = arith.cmpi ne, %44, %c0_i32_41 : i32
    scf.if %45 {
      %c8_i32_163 = arith.constant 8 : i32
      %283 = arith.addi %1, %c8_i32_163 : i32
      %c0_164 = arith.constant 0 : index
      %284 = arith.index_cast %283 : i32 to index
      %c0_165 = arith.constant 0 : index
      %c0_166 = arith.constant 0 : index
      %285 = vector.load %arg2[%c0_164, %284, %c0_165, %c0_166] : memref<1x16x16x4xf32, #tpu.memory_space<vmem>>, vector<1x3x16x4xf32>
      %286 = vector.shape_cast %285 : vector<1x3x16x4xf32> to vector<3x16x4xf32>
      %287 = arith.mulf %286, %286 : vector<3x16x4xf32>
      %cst_167 = arith.constant dense<0.000000e+00> : vector<3x16xf32>
      %288 = vector.multi_reduction <add>, %287, %cst_167 [2] : vector<3x16x4xf32> to vector<3x16xf32>
      %289 = vector.shape_cast %288 : vector<3x16xf32> to vector<3x16x1xf32>
      %cst_168 = arith.constant 4.000000e+00 : f32
      %290 = vector.broadcast %cst_168 : f32 to vector<3x16x1xf32>
      %291 = arith.divf %289, %290 : vector<3x16x1xf32>
      %cst_169 = arith.constant 9.99999993E-9 : f32
      %292 = vector.broadcast %cst_169 : f32 to vector<3x16x1xf32>
      %293 = arith.addf %291, %292 : vector<3x16x1xf32>
      %294 = math.rsqrt %293 : vector<3x16x1xf32>
      %295 = vector.broadcast %294 : vector<3x16x1xf32> to vector<3x16x4xf32>
      %296 = arith.mulf %286, %295 : vector<3x16x4xf32>
      %cst_170 = arith.constant 0.000000e+00 : f32
      %297 = vector.broadcast %cst_170 : f32 to vector<3x16x4xf32>
      %298 = arith.cmpf oge, %296, %297 : vector<3x16x4xf32>
      %cst_171 = arith.constant 2.000000e-01 : f32
      %299 = vector.broadcast %cst_171 : f32 to vector<3x16x4xf32>
      %300 = arith.mulf %299, %296 : vector<3x16x4xf32>
      %301 = arith.select %298, %296, %300 : vector<3x16x4xi1>, vector<3x16x4xf32>
      %c11 = arith.constant 11 : index
      %c1_172 = arith.constant 1 : index
      %c0_173 = arith.constant 0 : index
      %302 = vector.load %arg9[%c11, %c1_172, %c0_173] : memref<14x18x4xf32, #tpu.memory_space<vmem>>, vector<3x16x4xf32>
      tpu.vector_store %arg9[%c11, %c1_172, %c0_173], %301 {strides = array<i32>} : memref<14x18x4xf32, #tpu.memory_space<vmem>>, vector<3x16x4xf32>,
    } else {
    }
    %c1_i32_42 = arith.constant 1 : i32
    %46 = arith.cmpi eq, %arg1, %c1_i32_42 : i32
    %47 = arith.extui %46 : i1 to i32
    %c0_i32_43 = arith.constant 0 : i32
    %48 = arith.cmpi ne, %47, %c0_i32_43 : i32
    scf.if %48 {
      %cst_163 = arith.constant 0.000000e+00 : f32
      %283 = vector.broadcast %cst_163 : f32 to vector<3x16x4xf32>
      %c11 = arith.constant 11 : index
      %c1_164 = arith.constant 1 : index
      %c0_165 = arith.constant 0 : index
      %284 = vector.load %arg9[%c11, %c1_164, %c0_165] : memref<14x18x4xf32, #tpu.memory_space<vmem>>, vector<3x16x4xf32>
      tpu.vector_store %arg9[%c11, %c1_164, %c0_165], %283 {strides = array<i32>} : memref<14x18x4xf32, #tpu.memory_space<vmem>>, vector<3x16x4xf32>,
    } else {
    }
    %c0_44 = arith.constant 0 : index
    %c0_45 = arith.constant 0 : index
    %49 = vector.load %arg4[%c0_44, %c0_45] : memref<1x4xf32, #tpu.memory_space<vmem>>, vector<1x4xf32>
    %c0_46 = arith.constant 0 : index
    %c0_47 = arith.constant 0 : index
    %c0_48 = arith.constant 0 : index
    %50 = vector.load %arg9[%c0_46, %c0_47, %c0_48] : memref<14x18x4xf32, #tpu.memory_space<vmem>>, vector<14x16x4xf32>
    %51 = vector.extract_strided_slice %50 {offsets = [0, 0, 0], sizes = [12, 16, 4], strides = [1, 1, 1]} : vector<14x16x4xf32> to vector<12x16x4xf32>
    %52 = vector.extract_strided_slice %50 {offsets = [1, 0, 0], sizes = [12, 16, 4], strides = [1, 1, 1]} : vector<14x16x4xf32> to vector<12x16x4xf32>
    %53 = vector.extract_strided_slice %50 {offsets = [2, 0, 0], sizes = [12, 16, 4], strides = [1, 1, 1]} : vector<14x16x4xf32> to vector<12x16x4xf32>
    %54 = tpu.concatenate %51, %52, %53 in 2 : vector<12x16x4xf32>, vector<12x16x4xf32>, vector<12x16x4xf32> -> vector<12x16x12xf32>
    %55 = vector.shape_cast %54 : vector<12x16x12xf32> to vector<192x12xf32>
    %c0_49 = arith.constant 0 : index
    %c0_50 = arith.constant 0 : index
    %c0_51 = arith.constant 0 : index
    %56 = vector.load %arg3[%c0_49, %c0_50, %c0_51] : memref<3x12x4xf32, #tpu.memory_space<vmem>>, vector<1x12x4xf32>
    %57 = vector.shape_cast %56 : vector<1x12x4xf32> to vector<12x4xf32>
    %cst_52 = arith.constant dense<0.000000e+00> : vector<192x4xf32>
    %58 = tpu.matmul %55, %57, %cst_52 {dimension_numbers = #tpu.dot_dimension_numbers<[1], [0], [0], [1], [0, 0, 1, 1], [], []>} : vector<192x12xf32>, vector<12x4xf32>, vector<192x4xf32> -> vector<192x4xf32>
    %c0_53 = arith.constant 0 : index
    %c1_54 = arith.constant 1 : index
    %c0_55 = arith.constant 0 : index
    %59 = vector.load %arg9[%c0_53, %c1_54, %c0_55] : memref<14x18x4xf32, #tpu.memory_space<vmem>>, vector<14x16x4xf32>
    %60 = vector.extract_strided_slice %59 {offsets = [0, 0, 0], sizes = [12, 16, 4], strides = [1, 1, 1]} : vector<14x16x4xf32> to vector<12x16x4xf32>
    %61 = vector.extract_strided_slice %59 {offsets = [1, 0, 0], sizes = [12, 16, 4], strides = [1, 1, 1]} : vector<14x16x4xf32> to vector<12x16x4xf32>
    %62 = vector.extract_strided_slice %59 {offsets = [2, 0, 0], sizes = [12, 16, 4], strides = [1, 1, 1]} : vector<14x16x4xf32> to vector<12x16x4xf32>
    %63 = tpu.concatenate %60, %61, %62 in 2 : vector<12x16x4xf32>, vector<12x16x4xf32>, vector<12x16x4xf32> -> vector<12x16x12xf32>
    %64 = vector.shape_cast %63 : vector<12x16x12xf32> to vector<192x12xf32>
    %c1_56 = arith.constant 1 : index
    %c0_57 = arith.constant 0 : index
    %c0_58 = arith.constant 0 : index
    %65 = vector.load %arg3[%c1_56, %c0_57, %c0_58] : memref<3x12x4xf32, #tpu.memory_space<vmem>>, vector<1x12x4xf32>
    %66 = vector.shape_cast %65 : vector<1x12x4xf32> to vector<12x4xf32>
    %cst_59 = arith.constant dense<0.000000e+00> : vector<192x4xf32>
    %67 = tpu.matmul %64, %66, %cst_59 {dimension_numbers = #tpu.dot_dimension_numbers<[1], [0], [0], [1], [0, 0, 1, 1], [], []>} : vector<192x12xf32>, vector<12x4xf32>, vector<192x4xf32> -> vector<192x4xf32>
    %68 = arith.addf %58, %67 : vector<192x4xf32>
    %c0_60 = arith.constant 0 : index
    %c2 = arith.constant 2 : index
    %c0_61 = arith.constant 0 : index
    %69 = vector.load %arg9[%c0_60, %c2, %c0_61] : memref<14x18x4xf32, #tpu.memory_space<vmem>>, vector<14x16x4xf32>
    %70 = vector.extract_strided_slice %69 {offsets = [0, 0, 0], sizes = [12, 16, 4], strides = [1, 1, 1]} : vector<14x16x4xf32> to vector<12x16x4xf32>
    %71 = vector.extract_strided_slice %69 {offsets = [1, 0, 0], sizes = [12, 16, 4], strides = [1, 1, 1]} : vector<14x16x4xf32> to vector<12x16x4xf32>
    %72 = vector.extract_strided_slice %69 {offsets = [2, 0, 0], sizes = [12, 16, 4], strides = [1, 1, 1]} : vector<14x16x4xf32> to vector<12x16x4xf32>
    %73 = tpu.concatenate %70, %71, %72 in 2 : vector<12x16x4xf32>, vector<12x16x4xf32>, vector<12x16x4xf32> -> vector<12x16x12xf32>
    %74 = vector.shape_cast %73 : vector<12x16x12xf32> to vector<192x12xf32>
    %c2_62 = arith.constant 2 : index
    %c0_63 = arith.constant 0 : index
    %c0_64 = arith.constant 0 : index
    %75 = vector.load %arg3[%c2_62, %c0_63, %c0_64] : memref<3x12x4xf32, #tpu.memory_space<vmem>>, vector<1x12x4xf32>
    %76 = vector.shape_cast %75 : vector<1x12x4xf32> to vector<12x4xf32>
    %cst_65 = arith.constant dense<0.000000e+00> : vector<192x4xf32>
    %77 = tpu.matmul %74, %76, %cst_65 {dimension_numbers = #tpu.dot_dimension_numbers<[1], [0], [0], [1], [0, 0, 1, 1], [], []>} : vector<192x12xf32>, vector<12x4xf32>, vector<192x4xf32> -> vector<192x4xf32>
    %78 = arith.addf %68, %77 : vector<192x4xf32>
    %79 = vector.shape_cast %78 : vector<192x4xf32> to vector<12x16x4xf32>
    %80 = vector.shape_cast %49 : vector<1x4xf32> to vector<1x1x4xf32>
    %81 = vector.broadcast %80 : vector<1x1x4xf32> to vector<12x16x4xf32>
    %82 = arith.addf %79, %81 : vector<12x16x4xf32>
    %83 = arith.mulf %82, %82 : vector<12x16x4xf32>
    %cst_66 = arith.constant dense<0.000000e+00> : vector<12x16xf32>
    %84 = vector.multi_reduction <add>, %83, %cst_66 [2] : vector<12x16x4xf32> to vector<12x16xf32>
    %85 = vector.shape_cast %84 : vector<12x16xf32> to vector<12x16x1xf32>
    %cst_67 = arith.constant 4.000000e+00 : f32
    %86 = vector.broadcast %cst_67 : f32 to vector<12x16x1xf32>
    %87 = arith.divf %85, %86 : vector<12x16x1xf32>
    %cst_68 = arith.constant 9.99999993E-9 : f32
    %88 = vector.broadcast %cst_68 : f32 to vector<12x16x1xf32>
    %89 = arith.addf %87, %88 : vector<12x16x1xf32>
    %90 = math.rsqrt %89 : vector<12x16x1xf32>
    %91 = vector.broadcast %90 : vector<12x16x1xf32> to vector<12x16x4xf32>
    %92 = arith.mulf %82, %91 : vector<12x16x4xf32>
    %cst_69 = arith.constant 0.000000e+00 : f32
    %93 = vector.broadcast %cst_69 : f32 to vector<12x16x4xf32>
    %94 = arith.cmpf oge, %92, %93 : vector<12x16x4xf32>
    %cst_70 = arith.constant 2.000000e-01 : f32
    %95 = vector.broadcast %cst_70 : f32 to vector<12x16x4xf32>
    %96 = arith.mulf %95, %92 : vector<12x16x4xf32>
    %97 = arith.select %94, %92, %96 : vector<12x16x4xi1>, vector<12x16x4xf32>
    %c0_71 = arith.constant 0 : index
    %c1_72 = arith.constant 1 : index
    %c0_73 = arith.constant 0 : index
    %98 = vector.load %arg10[%c0_71, %c1_72, %c0_73] : memref<12x18x4xf32, #tpu.memory_space<vmem>>, vector<12x16x4xf32>
    tpu.vector_store %arg10[%c0_71, %c1_72, %c0_73], %97 {strides = array<i32>} : memref<12x18x4xf32, #tpu.memory_space<vmem>>, vector<12x16x4xf32>,
    %c0_i32_74 = arith.constant 0 : i32
    %99 = arith.cmpi eq, %arg1, %c0_i32_74 : i32
    %100 = arith.extui %99 : i1 to i32
    %c0_i32_75 = arith.constant 0 : i32
    %101 = arith.cmpi ne, %100, %c0_i32_75 : i32
    scf.if %101 {
      %cst_163 = arith.constant 0.000000e+00 : f32
      %283 = vector.broadcast %cst_163 : f32 to vector<2x18x4xf32>
      %c0_164 = arith.constant 0 : index
      %c0_165 = arith.constant 0 : index
      %c0_166 = arith.constant 0 : index
      %284 = vector.load %arg10[%c0_164, %c0_165, %c0_166] : memref<12x18x4xf32, #tpu.memory_space<vmem>>, vector<2x18x4xf32>
      tpu.vector_store %arg10[%c0_164, %c0_165, %c0_166], %283 {strides = array<i32>} : memref<12x18x4xf32, #tpu.memory_space<vmem>>, vector<2x18x4xf32>,
    } else {
    }
    %c1_i32_76 = arith.constant 1 : i32
    %102 = arith.cmpi eq, %arg1, %c1_i32_76 : i32
    %103 = arith.extui %102 : i1 to i32
    %c0_i32_77 = arith.constant 0 : i32
    %104 = arith.cmpi ne, %103, %c0_i32_77 : i32
    scf.if %104 {
      %cst_163 = arith.constant 0.000000e+00 : f32
      %283 = vector.broadcast %cst_163 : f32 to vector<2x18x4xf32>
      %c10 = arith.constant 10 : index
      %c0_164 = arith.constant 0 : index
      %c0_165 = arith.constant 0 : index
      %284 = vector.load %arg10[%c10, %c0_164, %c0_165] : memref<12x18x4xf32, #tpu.memory_space<vmem>>, vector<2x18x4xf32>
      tpu.vector_store %arg10[%c10, %c0_164, %c0_165], %283 {strides = array<i32>} : memref<12x18x4xf32, #tpu.memory_space<vmem>>, vector<2x18x4xf32>,
    } else {
    }
    %c0_78 = arith.constant 0 : index
    %c0_79 = arith.constant 0 : index
    %105 = vector.load %arg6[%c0_78, %c0_79] : memref<1x8xf32, #tpu.memory_space<vmem>>, vector<1x8xf32>
    %c0_80 = arith.constant 0 : index
    %c0_81 = arith.constant 0 : index
    %c0_82 = arith.constant 0 : index
    %106 = vector.load %arg10[%c0_80, %c0_81, %c0_82] : memref<12x18x4xf32, #tpu.memory_space<vmem>>, vector<12x16x4xf32>
    %107 = vector.extract_strided_slice %106 {offsets = [0, 0, 0], sizes = [10, 16, 4], strides = [1, 1, 1]} : vector<12x16x4xf32> to vector<10x16x4xf32>
    %108 = vector.extract_strided_slice %106 {offsets = [1, 0, 0], sizes = [10, 16, 4], strides = [1, 1, 1]} : vector<12x16x4xf32> to vector<10x16x4xf32>
    %109 = vector.extract_strided_slice %106 {offsets = [2, 0, 0], sizes = [10, 16, 4], strides = [1, 1, 1]} : vector<12x16x4xf32> to vector<10x16x4xf32>
    %110 = tpu.concatenate %107, %108, %109 in 2 : vector<10x16x4xf32>, vector<10x16x4xf32>, vector<10x16x4xf32> -> vector<10x16x12xf32>
    %111 = vector.shape_cast %110 : vector<10x16x12xf32> to vector<160x12xf32>
    %c0_83 = arith.constant 0 : index
    %c0_84 = arith.constant 0 : index
    %c0_85 = arith.constant 0 : index
    %112 = vector.load %arg5[%c0_83, %c0_84, %c0_85] : memref<3x12x8xf32, #tpu.memory_space<vmem>>, vector<1x12x8xf32>
    %113 = vector.shape_cast %112 : vector<1x12x8xf32> to vector<12x8xf32>
    %cst_86 = arith.constant dense<0.000000e+00> : vector<160x8xf32>
    %114 = tpu.matmul %111, %113, %cst_86 {dimension_numbers = #tpu.dot_dimension_numbers<[1], [0], [0], [1], [0, 0, 1, 1], [], []>} : vector<160x12xf32>, vector<12x8xf32>, vector<160x8xf32> -> vector<160x8xf32>
    %c0_87 = arith.constant 0 : index
    %c1_88 = arith.constant 1 : index
    %c0_89 = arith.constant 0 : index
    %115 = vector.load %arg10[%c0_87, %c1_88, %c0_89] : memref<12x18x4xf32, #tpu.memory_space<vmem>>, vector<12x16x4xf32>
    %116 = vector.extract_strided_slice %115 {offsets = [0, 0, 0], sizes = [10, 16, 4], strides = [1, 1, 1]} : vector<12x16x4xf32> to vector<10x16x4xf32>
    %117 = vector.extract_strided_slice %115 {offsets = [1, 0, 0], sizes = [10, 16, 4], strides = [1, 1, 1]} : vector<12x16x4xf32> to vector<10x16x4xf32>
    %118 = vector.extract_strided_slice %115 {offsets = [2, 0, 0], sizes = [10, 16, 4], strides = [1, 1, 1]} : vector<12x16x4xf32> to vector<10x16x4xf32>
    %119 = tpu.concatenate %116, %117, %118 in 2 : vector<10x16x4xf32>, vector<10x16x4xf32>, vector<10x16x4xf32> -> vector<10x16x12xf32>
    %120 = vector.shape_cast %119 : vector<10x16x12xf32> to vector<160x12xf32>
    %c1_90 = arith.constant 1 : index
    %c0_91 = arith.constant 0 : index
    %c0_92 = arith.constant 0 : index
    %121 = vector.load %arg5[%c1_90, %c0_91, %c0_92] : memref<3x12x8xf32, #tpu.memory_space<vmem>>, vector<1x12x8xf32>
    %122 = vector.shape_cast %121 : vector<1x12x8xf32> to vector<12x8xf32>
    %cst_93 = arith.constant dense<0.000000e+00> : vector<160x8xf32>
    %123 = tpu.matmul %120, %122, %cst_93 {dimension_numbers = #tpu.dot_dimension_numbers<[1], [0], [0], [1], [0, 0, 1, 1], [], []>} : vector<160x12xf32>, vector<12x8xf32>, vector<160x8xf32> -> vector<160x8xf32>
    %124 = arith.addf %114, %123 : vector<160x8xf32>
    %c0_94 = arith.constant 0 : index
    %c2_95 = arith.constant 2 : index
    %c0_96 = arith.constant 0 : index
    %125 = vector.load %arg10[%c0_94, %c2_95, %c0_96] : memref<12x18x4xf32, #tpu.memory_space<vmem>>, vector<12x16x4xf32>
    %126 = vector.extract_strided_slice %125 {offsets = [0, 0, 0], sizes = [10, 16, 4], strides = [1, 1, 1]} : vector<12x16x4xf32> to vector<10x16x4xf32>
    %127 = vector.extract_strided_slice %125 {offsets = [1, 0, 0], sizes = [10, 16, 4], strides = [1, 1, 1]} : vector<12x16x4xf32> to vector<10x16x4xf32>
    %128 = vector.extract_strided_slice %125 {offsets = [2, 0, 0], sizes = [10, 16, 4], strides = [1, 1, 1]} : vector<12x16x4xf32> to vector<10x16x4xf32>
    %129 = tpu.concatenate %126, %127, %128 in 2 : vector<10x16x4xf32>, vector<10x16x4xf32>, vector<10x16x4xf32> -> vector<10x16x12xf32>
    %130 = vector.shape_cast %129 : vector<10x16x12xf32> to vector<160x12xf32>
    %c2_97 = arith.constant 2 : index
    %c0_98 = arith.constant 0 : index
    %c0_99 = arith.constant 0 : index
    %131 = vector.load %arg5[%c2_97, %c0_98, %c0_99] : memref<3x12x8xf32, #tpu.memory_space<vmem>>, vector<1x12x8xf32>
    %132 = vector.shape_cast %131 : vector<1x12x8xf32> to vector<12x8xf32>
    %cst_100 = arith.constant dense<0.000000e+00> : vector<160x8xf32>
    %133 = tpu.matmul %130, %132, %cst_100 {dimension_numbers = #tpu.dot_dimension_numbers<[1], [0], [0], [1], [0, 0, 1, 1], [], []>} : vector<160x12xf32>, vector<12x8xf32>, vector<160x8xf32> -> vector<160x8xf32>
    %134 = arith.addf %124, %133 : vector<160x8xf32>
    %135 = vector.shape_cast %134 : vector<160x8xf32> to vector<10x16x8xf32>
    %136 = vector.shape_cast %105 : vector<1x8xf32> to vector<1x1x8xf32>
    %137 = vector.broadcast %136 : vector<1x1x8xf32> to vector<10x16x8xf32>
    %138 = arith.addf %135, %137 : vector<10x16x8xf32>
    %c0_101 = arith.constant 0 : index
    %c1_102 = arith.constant 1 : index
    %c0_103 = arith.constant 0 : index
    %139 = vector.load %arg11[%c0_101, %c1_102, %c0_103] : memref<10x18x8xf32, #tpu.memory_space<vmem>>, vector<10x16x8xf32>
    tpu.vector_store %arg11[%c0_101, %c1_102, %c0_103], %138 {strides = array<i32>} : memref<10x18x8xf32, #tpu.memory_space<vmem>>, vector<10x16x8xf32>,
    %c0_i32_104 = arith.constant 0 : i32
    %140 = arith.cmpi eq, %arg1, %c0_i32_104 : i32
    %141 = arith.extui %140 : i1 to i32
    %c0_i32_105 = arith.constant 0 : i32
    %142 = arith.cmpi ne, %141, %c0_i32_105 : i32
    scf.if %142 {
      %cst_163 = arith.constant 0.000000e+00 : f32
      %283 = vector.broadcast %cst_163 : f32 to vector<1x18x8xf32>
      %c0_164 = arith.constant 0 : index
      %c0_165 = arith.constant 0 : index
      %c0_166 = arith.constant 0 : index
      %284 = vector.load %arg11[%c0_164, %c0_165, %c0_166] : memref<10x18x8xf32, #tpu.memory_space<vmem>>, vector<1x18x8xf32>
      tpu.vector_store %arg11[%c0_164, %c0_165, %c0_166], %283 {strides = array<i32>} : memref<10x18x8xf32, #tpu.memory_space<vmem>>, vector<1x18x8xf32>,
    } else {
    }
    %c1_i32_106 = arith.constant 1 : i32
    %143 = arith.cmpi eq, %arg1, %c1_i32_106 : i32
    %144 = arith.extui %143 : i1 to i32
    %c0_i32_107 = arith.constant 0 : i32
    %145 = arith.cmpi ne, %144, %c0_i32_107 : i32
    scf.if %145 {
      %cst_163 = arith.constant 0.000000e+00 : f32
      %283 = vector.broadcast %cst_163 : f32 to vector<1x18x8xf32>
      %c9 = arith.constant 9 : index
      %c0_164 = arith.constant 0 : index
      %c0_165 = arith.constant 0 : index
      %284 = vector.load %arg11[%c9, %c0_164, %c0_165] : memref<10x18x8xf32, #tpu.memory_space<vmem>>, vector<1x18x8xf32>
      tpu.vector_store %arg11[%c9, %c0_164, %c0_165], %283 {strides = array<i32>} : memref<10x18x8xf32, #tpu.memory_space<vmem>>, vector<1x18x8xf32>,
    } else {
    }
    %c0_108 = arith.constant 0 : index
    %c0_109 = arith.constant 0 : index
    %146 = vector.load %arg7[%c0_108, %c0_109] : memref<4x8xf32, #tpu.memory_space<vmem>>, vector<4x8xf32>
    %147 = vector.shape_cast %20 : vector<8x16x4xf32> to vector<128x4xf32>
    %cst_110 = arith.constant dense<0.000000e+00> : vector<128x8xf32>
    %148 = tpu.matmul %147, %146, %cst_110 {dimension_numbers = #tpu.dot_dimension_numbers<[1], [0], [0], [1], [0, 0, 1, 1], [], []>} : vector<128x4xf32>, vector<4x8xf32>, vector<128x8xf32> -> vector<128x8xf32>
    %149 = vector.shape_cast %148 : vector<128x8xf32> to vector<8x16x8xf32>
    %c1_111 = arith.constant 1 : index
    %c1_112 = arith.constant 1 : index
    %c0_113 = arith.constant 0 : index
    %150 = vector.load %arg12[%c1_111, %c1_112, %c0_113] : memref<10x18x8xf32, #tpu.memory_space<vmem>>, vector<8x16x8xf32>
    tpu.vector_store %arg12[%c1_111, %c1_112, %c0_113], %149 {strides = array<i32>} : memref<10x18x8xf32, #tpu.memory_space<vmem>>, vector<8x16x8xf32>,
    %c0_i32_114 = arith.constant 0 : i32
    %151 = arith.cmpi sgt, %arg1, %c0_i32_114 : i32
    %152 = arith.extui %151 : i1 to i32
    %c0_i32_115 = arith.constant 0 : i32
    %153 = arith.cmpi ne, %152, %c0_i32_115 : i32
    scf.if %153 {
      %c1_i32_163 = arith.constant 1 : i32
      %283 = arith.subi %1, %c1_i32_163 : i32
      %c0_164 = arith.constant 0 : index
      %284 = arith.index_cast %283 : i32 to index
      %c0_165 = arith.constant 0 : index
      %c0_166 = arith.constant 0 : index
      %285 = vector.load %arg2[%c0_164, %284, %c0_165, %c0_166] : memref<1x16x16x4xf32, #tpu.memory_space<vmem>>, vector<1x1x16x4xf32>
      %286 = vector.shape_cast %285 : vector<1x1x16x4xf32> to vector<1x16x4xf32>
      %287 = vector.shape_cast %286 : vector<1x16x4xf32> to vector<16x4xf32>
      %cst_167 = arith.constant dense<0.000000e+00> : vector<16x8xf32>
      %288 = tpu.matmul %287, %146, %cst_167 {dimension_numbers = #tpu.dot_dimension_numbers<[1], [0], [0], [1], [0, 0, 1, 1], [], []>} : vector<16x4xf32>, vector<4x8xf32>, vector<16x8xf32> -> vector<16x8xf32>
      %289 = vector.shape_cast %288 : vector<16x8xf32> to vector<1x16x8xf32>
      %c0_168 = arith.constant 0 : index
      %c1_169 = arith.constant 1 : index
      %c0_170 = arith.constant 0 : index
      %290 = vector.load %arg12[%c0_168, %c1_169, %c0_170] : memref<10x18x8xf32, #tpu.memory_space<vmem>>, vector<1x16x8xf32>
      tpu.vector_store %arg12[%c0_168, %c1_169, %c0_170], %289 {strides = array<i32>} : memref<10x18x8xf32, #tpu.memory_space<vmem>>, vector<1x16x8xf32>,
    } else {
    }
    %c0_i32_116 = arith.constant 0 : i32
    %154 = arith.cmpi eq, %arg1, %c0_i32_116 : i32
    %155 = arith.extui %154 : i1 to i32
    %c0_i32_117 = arith.constant 0 : i32
    %156 = arith.cmpi ne, %155, %c0_i32_117 : i32
    scf.if %156 {
      %cst_163 = arith.constant 0.000000e+00 : f32
      %283 = vector.broadcast %cst_163 : f32 to vector<1x18x8xf32>
      %c0_164 = arith.constant 0 : index
      %c0_165 = arith.constant 0 : index
      %c0_166 = arith.constant 0 : index
      %284 = vector.load %arg12[%c0_164, %c0_165, %c0_166] : memref<10x18x8xf32, #tpu.memory_space<vmem>>, vector<1x18x8xf32>
      tpu.vector_store %arg12[%c0_164, %c0_165, %c0_166], %283 {strides = array<i32>} : memref<10x18x8xf32, #tpu.memory_space<vmem>>, vector<1x18x8xf32>,
    } else {
    }
    %c1_i32_118 = arith.constant 1 : i32
    %157 = arith.cmpi slt, %arg1, %c1_i32_118 : i32
    %158 = arith.extui %157 : i1 to i32
    %c0_i32_119 = arith.constant 0 : i32
    %159 = arith.cmpi ne, %158, %c0_i32_119 : i32
    scf.if %159 {
      %c8_i32_163 = arith.constant 8 : i32
      %283 = arith.addi %1, %c8_i32_163 : i32
      %c0_164 = arith.constant 0 : index
      %284 = arith.index_cast %283 : i32 to index
      %c0_165 = arith.constant 0 : index
      %c0_166 = arith.constant 0 : index
      %285 = vector.load %arg2[%c0_164, %284, %c0_165, %c0_166] : memref<1x16x16x4xf32, #tpu.memory_space<vmem>>, vector<1x1x16x4xf32>
      %286 = vector.shape_cast %285 : vector<1x1x16x4xf32> to vector<1x16x4xf32>
      %287 = vector.shape_cast %286 : vector<1x16x4xf32> to vector<16x4xf32>
      %cst_167 = arith.constant dense<0.000000e+00> : vector<16x8xf32>
      %288 = tpu.matmul %287, %146, %cst_167 {dimension_numbers = #tpu.dot_dimension_numbers<[1], [0], [0], [1], [0, 0, 1, 1], [], []>} : vector<16x4xf32>, vector<4x8xf32>, vector<16x8xf32> -> vector<16x8xf32>
      %289 = vector.shape_cast %288 : vector<16x8xf32> to vector<1x16x8xf32>
      %c9 = arith.constant 9 : index
      %c1_168 = arith.constant 1 : index
      %c0_169 = arith.constant 0 : index
      %290 = vector.load %arg12[%c9, %c1_168, %c0_169] : memref<10x18x8xf32, #tpu.memory_space<vmem>>, vector<1x16x8xf32>
      tpu.vector_store %arg12[%c9, %c1_168, %c0_169], %289 {strides = array<i32>} : memref<10x18x8xf32, #tpu.memory_space<vmem>>, vector<1x16x8xf32>,
    } else {
    }
    %c1_i32_120 = arith.constant 1 : i32
    %160 = arith.cmpi eq, %arg1, %c1_i32_120 : i32
    %161 = arith.extui %160 : i1 to i32
    %c0_i32_121 = arith.constant 0 : i32
    %162 = arith.cmpi ne, %161, %c0_i32_121 : i32
    scf.if %162 {
      %cst_163 = arith.constant 0.000000e+00 : f32
      %283 = vector.broadcast %cst_163 : f32 to vector<1x18x8xf32>
      %c9 = arith.constant 9 : index
      %c0_164 = arith.constant 0 : index
      %c0_165 = arith.constant 0 : index
      %284 = vector.load %arg12[%c9, %c0_164, %c0_165] : memref<10x18x8xf32, #tpu.memory_space<vmem>>, vector<1x18x8xf32>
      tpu.vector_store %arg12[%c9, %c0_164, %c0_165], %283 {strides = array<i32>} : memref<10x18x8xf32, #tpu.memory_space<vmem>>, vector<1x18x8xf32>,
    } else {
    }
    %c0_122 = arith.constant 0 : index
    %c0_123 = arith.constant 0 : index
    %c0_124 = arith.constant 0 : index
    %163 = tpu.strided_load %arg11[%c0_122, %c0_123, %c0_124] {strides = array<i32: 1, 2, 1>} : memref<10x18x8xf32, #tpu.memory_space<vmem>>, vector<10x9x8xf32>
    %c0_125 = arith.constant 0 : index
    %c1_126 = arith.constant 1 : index
    %c0_127 = arith.constant 0 : index
    %164 = tpu.strided_load %arg11[%c0_125, %c1_126, %c0_127] {strides = array<i32: 1, 2, 1>} : memref<10x18x8xf32, #tpu.memory_space<vmem>>, vector<10x9x8xf32>
    %165 = vector.shape_cast %163 : vector<10x9x8xf32> to vector<5x2x9x8xf32>
    %166 = vector.extract_strided_slice %165 {offsets = [0, 0, 0, 0], sizes = [5, 1, 9, 8], strides = [1, 1, 1, 1]} : vector<5x2x9x8xf32> to vector<5x1x9x8xf32>
    %167 = vector.shape_cast %166 : vector<5x1x9x8xf32> to vector<5x9x8xf32>
    %168 = vector.extract_strided_slice %165 {offsets = [0, 1, 0, 0], sizes = [5, 1, 9, 8], strides = [1, 1, 1, 1]} : vector<5x2x9x8xf32> to vector<5x1x9x8xf32>
    %169 = vector.shape_cast %168 : vector<5x1x9x8xf32> to vector<5x9x8xf32>
    %170 = vector.extract_strided_slice %167 {offsets = [0, 0, 0], sizes = [4, 9, 8], strides = [1, 1, 1]} : vector<5x9x8xf32> to vector<4x9x8xf32>
    %cst_128 = arith.constant 1.250000e-01 : f32
    %171 = vector.broadcast %cst_128 : f32 to vector<4x9x8xf32>
    %172 = arith.mulf %171, %170 : vector<4x9x8xf32>
    %173 = vector.extract_strided_slice %169 {offsets = [0, 0, 0], sizes = [4, 9, 8], strides = [1, 1, 1]} : vector<5x9x8xf32> to vector<4x9x8xf32>
    %cst_129 = arith.constant 3.750000e-01 : f32
    %174 = vector.broadcast %cst_129 : f32 to vector<4x9x8xf32>
    %175 = arith.mulf %174, %173 : vector<4x9x8xf32>
    %176 = arith.addf %172, %175 : vector<4x9x8xf32>
    %177 = vector.extract_strided_slice %167 {offsets = [1, 0, 0], sizes = [4, 9, 8], strides = [1, 1, 1]} : vector<5x9x8xf32> to vector<4x9x8xf32>
    %cst_130 = arith.constant 3.750000e-01 : f32
    %178 = vector.broadcast %cst_130 : f32 to vector<4x9x8xf32>
    %179 = arith.mulf %178, %177 : vector<4x9x8xf32>
    %180 = arith.addf %176, %179 : vector<4x9x8xf32>
    %181 = vector.extract_strided_slice %169 {offsets = [1, 0, 0], sizes = [4, 9, 8], strides = [1, 1, 1]} : vector<5x9x8xf32> to vector<4x9x8xf32>
    %cst_131 = arith.constant 1.250000e-01 : f32
    %182 = vector.broadcast %cst_131 : f32 to vector<4x9x8xf32>
    %183 = arith.mulf %182, %181 : vector<4x9x8xf32>
    %184 = arith.addf %180, %183 : vector<4x9x8xf32>
    %185 = vector.shape_cast %164 : vector<10x9x8xf32> to vector<5x2x9x8xf32>
    %186 = vector.extract_strided_slice %185 {offsets = [0, 0, 0, 0], sizes = [5, 1, 9, 8], strides = [1, 1, 1, 1]} : vector<5x2x9x8xf32> to vector<5x1x9x8xf32>
    %187 = vector.shape_cast %186 : vector<5x1x9x8xf32> to vector<5x9x8xf32>
    %188 = vector.extract_strided_slice %185 {offsets = [0, 1, 0, 0], sizes = [5, 1, 9, 8], strides = [1, 1, 1, 1]} : vector<5x2x9x8xf32> to vector<5x1x9x8xf32>
    %189 = vector.shape_cast %188 : vector<5x1x9x8xf32> to vector<5x9x8xf32>
    %190 = vector.extract_strided_slice %187 {offsets = [0, 0, 0], sizes = [4, 9, 8], strides = [1, 1, 1]} : vector<5x9x8xf32> to vector<4x9x8xf32>
    %cst_132 = arith.constant 1.250000e-01 : f32
    %191 = vector.broadcast %cst_132 : f32 to vector<4x9x8xf32>
    %192 = arith.mulf %191, %190 : vector<4x9x8xf32>
    %193 = vector.extract_strided_slice %189 {offsets = [0, 0, 0], sizes = [4, 9, 8], strides = [1, 1, 1]} : vector<5x9x8xf32> to vector<4x9x8xf32>
    %cst_133 = arith.constant 3.750000e-01 : f32
    %194 = vector.broadcast %cst_133 : f32 to vector<4x9x8xf32>
    %195 = arith.mulf %194, %193 : vector<4x9x8xf32>
    %196 = arith.addf %192, %195 : vector<4x9x8xf32>
    %197 = vector.extract_strided_slice %187 {offsets = [1, 0, 0], sizes = [4, 9, 8], strides = [1, 1, 1]} : vector<5x9x8xf32> to vector<4x9x8xf32>
    %cst_134 = arith.constant 3.750000e-01 : f32
    %198 = vector.broadcast %cst_134 : f32 to vector<4x9x8xf32>
    %199 = arith.mulf %198, %197 : vector<4x9x8xf32>
    %200 = arith.addf %196, %199 : vector<4x9x8xf32>
    %201 = vector.extract_strided_slice %189 {offsets = [1, 0, 0], sizes = [4, 9, 8], strides = [1, 1, 1]} : vector<5x9x8xf32> to vector<4x9x8xf32>
    %cst_135 = arith.constant 1.250000e-01 : f32
    %202 = vector.broadcast %cst_135 : f32 to vector<4x9x8xf32>
    %203 = arith.mulf %202, %201 : vector<4x9x8xf32>
    %204 = arith.addf %200, %203 : vector<4x9x8xf32>
    %205 = vector.extract_strided_slice %184 {offsets = [0, 0, 0], sizes = [4, 8, 8], strides = [1, 1, 1]} : vector<4x9x8xf32> to vector<4x8x8xf32>
    %cst_136 = arith.constant 1.250000e-01 : f32
    %206 = vector.broadcast %cst_136 : f32 to vector<4x8x8xf32>
    %207 = arith.mulf %206, %205 : vector<4x8x8xf32>
    %208 = vector.extract_strided_slice %204 {offsets = [0, 0, 0], sizes = [4, 8, 8], strides = [1, 1, 1]} : vector<4x9x8xf32> to vector<4x8x8xf32>
    %cst_137 = arith.constant 3.750000e-01 : f32
    %209 = vector.broadcast %cst_137 : f32 to vector<4x8x8xf32>
    %210 = arith.mulf %209, %208 : vector<4x8x8xf32>
    %211 = arith.addf %207, %210 : vector<4x8x8xf32>
    %212 = vector.extract_strided_slice %184 {offsets = [0, 1, 0], sizes = [4, 8, 8], strides = [1, 1, 1]} : vector<4x9x8xf32> to vector<4x8x8xf32>
    %cst_138 = arith.constant 3.750000e-01 : f32
    %213 = vector.broadcast %cst_138 : f32 to vector<4x8x8xf32>
    %214 = arith.mulf %213, %212 : vector<4x8x8xf32>
    %215 = arith.addf %211, %214 : vector<4x8x8xf32>
    %216 = vector.extract_strided_slice %204 {offsets = [0, 1, 0], sizes = [4, 8, 8], strides = [1, 1, 1]} : vector<4x9x8xf32> to vector<4x8x8xf32>
    %cst_139 = arith.constant 1.250000e-01 : f32
    %217 = vector.broadcast %cst_139 : f32 to vector<4x8x8xf32>
    %218 = arith.mulf %217, %216 : vector<4x8x8xf32>
    %219 = arith.addf %215, %218 : vector<4x8x8xf32>
    %c0_140 = arith.constant 0 : index
    %c0_141 = arith.constant 0 : index
    %c0_142 = arith.constant 0 : index
    %220 = tpu.strided_load %arg12[%c0_140, %c0_141, %c0_142] {strides = array<i32: 1, 2, 1>} : memref<10x18x8xf32, #tpu.memory_space<vmem>>, vector<10x9x8xf32>
    %c0_143 = arith.constant 0 : index
    %c1_144 = arith.constant 1 : index
    %c0_145 = arith.constant 0 : index
    %221 = tpu.strided_load %arg12[%c0_143, %c1_144, %c0_145] {strides = array<i32: 1, 2, 1>} : memref<10x18x8xf32, #tpu.memory_space<vmem>>, vector<10x9x8xf32>
    %222 = vector.shape_cast %220 : vector<10x9x8xf32> to vector<5x2x9x8xf32>
    %223 = vector.extract_strided_slice %222 {offsets = [0, 0, 0, 0], sizes = [5, 1, 9, 8], strides = [1, 1, 1, 1]} : vector<5x2x9x8xf32> to vector<5x1x9x8xf32>
    %224 = vector.shape_cast %223 : vector<5x1x9x8xf32> to vector<5x9x8xf32>
    %225 = vector.extract_strided_slice %222 {offsets = [0, 1, 0, 0], sizes = [5, 1, 9, 8], strides = [1, 1, 1, 1]} : vector<5x2x9x8xf32> to vector<5x1x9x8xf32>
    %226 = vector.shape_cast %225 : vector<5x1x9x8xf32> to vector<5x9x8xf32>
    %227 = vector.extract_strided_slice %224 {offsets = [0, 0, 0], sizes = [4, 9, 8], strides = [1, 1, 1]} : vector<5x9x8xf32> to vector<4x9x8xf32>
    %cst_146 = arith.constant 1.250000e-01 : f32
    %228 = vector.broadcast %cst_146 : f32 to vector<4x9x8xf32>
    %229 = arith.mulf %228, %227 : vector<4x9x8xf32>
    %230 = vector.extract_strided_slice %226 {offsets = [0, 0, 0], sizes = [4, 9, 8], strides = [1, 1, 1]} : vector<5x9x8xf32> to vector<4x9x8xf32>
    %cst_147 = arith.constant 3.750000e-01 : f32
    %231 = vector.broadcast %cst_147 : f32 to vector<4x9x8xf32>
    %232 = arith.mulf %231, %230 : vector<4x9x8xf32>
    %233 = arith.addf %229, %232 : vector<4x9x8xf32>
    %234 = vector.extract_strided_slice %224 {offsets = [1, 0, 0], sizes = [4, 9, 8], strides = [1, 1, 1]} : vector<5x9x8xf32> to vector<4x9x8xf32>
    %cst_148 = arith.constant 3.750000e-01 : f32
    %235 = vector.broadcast %cst_148 : f32 to vector<4x9x8xf32>
    %236 = arith.mulf %235, %234 : vector<4x9x8xf32>
    %237 = arith.addf %233, %236 : vector<4x9x8xf32>
    %238 = vector.extract_strided_slice %226 {offsets = [1, 0, 0], sizes = [4, 9, 8], strides = [1, 1, 1]} : vector<5x9x8xf32> to vector<4x9x8xf32>
    %cst_149 = arith.constant 1.250000e-01 : f32
    %239 = vector.broadcast %cst_149 : f32 to vector<4x9x8xf32>
    %240 = arith.mulf %239, %238 : vector<4x9x8xf32>
    %241 = arith.addf %237, %240 : vector<4x9x8xf32>
    %242 = vector.shape_cast %221 : vector<10x9x8xf32> to vector<5x2x9x8xf32>
    %243 = vector.extract_strided_slice %242 {offsets = [0, 0, 0, 0], sizes = [5, 1, 9, 8], strides = [1, 1, 1, 1]} : vector<5x2x9x8xf32> to vector<5x1x9x8xf32>
    %244 = vector.shape_cast %243 : vector<5x1x9x8xf32> to vector<5x9x8xf32>
    %245 = vector.extract_strided_slice %242 {offsets = [0, 1, 0, 0], sizes = [5, 1, 9, 8], strides = [1, 1, 1, 1]} : vector<5x2x9x8xf32> to vector<5x1x9x8xf32>
    %246 = vector.shape_cast %245 : vector<5x1x9x8xf32> to vector<5x9x8xf32>
    %247 = vector.extract_strided_slice %244 {offsets = [0, 0, 0], sizes = [4, 9, 8], strides = [1, 1, 1]} : vector<5x9x8xf32> to vector<4x9x8xf32>
    %cst_150 = arith.constant 1.250000e-01 : f32
    %248 = vector.broadcast %cst_150 : f32 to vector<4x9x8xf32>
    %249 = arith.mulf %248, %247 : vector<4x9x8xf32>
    %250 = vector.extract_strided_slice %246 {offsets = [0, 0, 0], sizes = [4, 9, 8], strides = [1, 1, 1]} : vector<5x9x8xf32> to vector<4x9x8xf32>
    %cst_151 = arith.constant 3.750000e-01 : f32
    %251 = vector.broadcast %cst_151 : f32 to vector<4x9x8xf32>
    %252 = arith.mulf %251, %250 : vector<4x9x8xf32>
    %253 = arith.addf %249, %252 : vector<4x9x8xf32>
    %254 = vector.extract_strided_slice %244 {offsets = [1, 0, 0], sizes = [4, 9, 8], strides = [1, 1, 1]} : vector<5x9x8xf32> to vector<4x9x8xf32>
    %cst_152 = arith.constant 3.750000e-01 : f32
    %255 = vector.broadcast %cst_152 : f32 to vector<4x9x8xf32>
    %256 = arith.mulf %255, %254 : vector<4x9x8xf32>
    %257 = arith.addf %253, %256 : vector<4x9x8xf32>
    %258 = vector.extract_strided_slice %246 {offsets = [1, 0, 0], sizes = [4, 9, 8], strides = [1, 1, 1]} : vector<5x9x8xf32> to vector<4x9x8xf32>
    %cst_153 = arith.constant 1.250000e-01 : f32
    %259 = vector.broadcast %cst_153 : f32 to vector<4x9x8xf32>
    %260 = arith.mulf %259, %258 : vector<4x9x8xf32>
    %261 = arith.addf %257, %260 : vector<4x9x8xf32>
    %262 = vector.extract_strided_slice %241 {offsets = [0, 0, 0], sizes = [4, 8, 8], strides = [1, 1, 1]} : vector<4x9x8xf32> to vector<4x8x8xf32>
    %cst_154 = arith.constant 1.250000e-01 : f32
    %263 = vector.broadcast %cst_154 : f32 to vector<4x8x8xf32>
    %264 = arith.mulf %263, %262 : vector<4x8x8xf32>
    %265 = vector.extract_strided_slice %261 {offsets = [0, 0, 0], sizes = [4, 8, 8], strides = [1, 1, 1]} : vector<4x9x8xf32> to vector<4x8x8xf32>
    %cst_155 = arith.constant 3.750000e-01 : f32
    %266 = vector.broadcast %cst_155 : f32 to vector<4x8x8xf32>
    %267 = arith.mulf %266, %265 : vector<4x8x8xf32>
    %268 = arith.addf %264, %267 : vector<4x8x8xf32>
    %269 = vector.extract_strided_slice %241 {offsets = [0, 1, 0], sizes = [4, 8, 8], strides = [1, 1, 1]} : vector<4x9x8xf32> to vector<4x8x8xf32>
    %cst_156 = arith.constant 3.750000e-01 : f32
    %270 = vector.broadcast %cst_156 : f32 to vector<4x8x8xf32>
    %271 = arith.mulf %270, %269 : vector<4x8x8xf32>
    %272 = arith.addf %268, %271 : vector<4x8x8xf32>
    %273 = vector.extract_strided_slice %261 {offsets = [0, 1, 0], sizes = [4, 8, 8], strides = [1, 1, 1]} : vector<4x9x8xf32> to vector<4x8x8xf32>
    %cst_157 = arith.constant 1.250000e-01 : f32
    %274 = vector.broadcast %cst_157 : f32 to vector<4x8x8xf32>
    %275 = arith.mulf %274, %273 : vector<4x8x8xf32>
    %276 = arith.addf %272, %275 : vector<4x8x8xf32>
    %277 = arith.addf %276, %219 : vector<4x8x8xf32>
    %cst_158 = arith.constant 0.707106769 : f32
    %278 = vector.broadcast %cst_158 : f32 to vector<4x8x8xf32>
    %279 = arith.mulf %278, %277 : vector<4x8x8xf32>
    %c0_159 = arith.constant 0 : index
    %c0_160 = arith.constant 0 : index
    %c0_161 = arith.constant 0 : index
    %c0_162 = arith.constant 0 : index
    %280 = vector.load %arg8[%c0_159, %c0_160, %c0_161, %c0_162] : memref<1x4x8x8xf32, #tpu.memory_space<vmem>>, vector<1x4x8x8xf32>
    %281 = vector.shape_cast %280 : vector<1x4x8x8xf32> to vector<4x8x8xf32>
    %282 = vector.shape_cast %279 : vector<4x8x8xf32> to vector<1x4x8x8xf32>
    tpu.vector_store %arg8[%c0_159, %c0_160, %c0_161, %c0_162], %282 {strides = array<i32>} : memref<1x4x8x8xf32, #tpu.memory_space<vmem>>, vector<1x4x8x8xf32>,
    return
  }
  func.func @transform_0(%arg0: i32, %arg1: i32) -> (i32, i32, i32, i32) {
    %c0_i32 = arith.constant 0 : i32
    %c0_i32_0 = arith.constant 0 : i32
    %c0_i32_1 = arith.constant 0 : i32
    %c0_i32_2 = arith.constant 0 : i32
    return %arg0, %c0_i32, %c0_i32_0, %c0_i32_1 : i32, i32, i32, i32
  }
  func.func @transform_1(%arg0: i32, %arg1: i32) -> (i32, i32, i32) {
    %c0_i32 = arith.constant 0 : i32
    %c0_i32_0 = arith.constant 0 : i32
    %c0_i32_1 = arith.constant 0 : i32
    %c0_i32_2 = arith.constant 0 : i32
    return %c0_i32, %c0_i32_0, %c0_i32_1 : i32, i32, i32
  }
  func.func @transform_2(%arg0: i32, %arg1: i32) -> (i32, i32) {
    %c0_i32 = arith.constant 0 : i32
    %c0_i32_0 = arith.constant 0 : i32
    %c0_i32_1 = arith.constant 0 : i32
    return %c0_i32, %c0_i32_0 : i32, i32
  }
  func.func @transform_3(%arg0: i32, %arg1: i32) -> (i32, i32, i32) {
    %c0_i32 = arith.constant 0 : i32
    %c0_i32_0 = arith.constant 0 : i32
    %c0_i32_1 = arith.constant 0 : i32
    %c0_i32_2 = arith.constant 0 : i32
    return %c0_i32, %c0_i32_0, %c0_i32_1 : i32, i32, i32
  }
  func.func @transform_4(%arg0: i32, %arg1: i32) -> (i32, i32) {
    %c0_i32 = arith.constant 0 : i32
    %c0_i32_0 = arith.constant 0 : i32
    %c0_i32_1 = arith.constant 0 : i32
    return %c0_i32, %c0_i32_0 : i32, i32
  }
  func.func @transform_5(%arg0: i32, %arg1: i32) -> (i32, i32) {
    %c0_i32 = arith.constant 0 : i32
    %c0_i32_0 = arith.constant 0 : i32
    %c0_i32_1 = arith.constant 0 : i32
    return %c0_i32, %c0_i32_0 : i32, i32
  }
  func.func @transform_6(%arg0: i32, %arg1: i32) -> (i32, i32, i32, i32) {
    %c0_i32 = arith.constant 0 : i32
    %c0_i32_0 = arith.constant 0 : i32
    %c0_i32_1 = arith.constant 0 : i32
    return %arg0, %arg1, %c0_i32, %c0_i32_0 : i32, i32, i32, i32
  }
}

</mosaic_0001>

<bundles_post_ra>
// kernel: tpu_custom_call.1
= control target key start
LH: loop header
LB: loop body
LE: loop exit
PB: predicated region body
PF: predicated region fallthrough
CT: control target
= control target key end

     0   :  { %s9234_s0 = inlined_call_operand.hbm [shape: f32[2,16,16,4], index: 0, kind: input, shape index: {}]   ;;  %s9235_s1 = inlined_call_operand.hbm [shape: f32[3,12,4], index: 1, kind: input, shape index: {}]   ;;  %s9236_s2 = inlined_call_operand.hbm [shape: f32[1,4], index: 2, kind: input, shape index: {}]   ;;  %s9237_s3 = inlined_call_operand.hbm [shape: f32[3,12,8], index: 3, kind: input, shape index: {}]   ;;  %s9238_s4 = inlined_call_operand.hbm [shape: f32[1,8], index: 4, kind: input, shape index: {}]   ;;  %s9239_s5 = inlined_call_operand.hbm [shape: f32[4,8], index: 5, kind: input, shape index: {}]   ;;  %s9240_s6 = inlined_call_operand.hbm [shape: f32[2,8,8,8], index: 6, kind: output, shape index: {}]  }
   0x1   :  { %9255 = sst [smem:[#allocation27_spill]] %s9234_s0 }
   0x2   :  { %9256 = sst [smem:[#allocation28_spill]] %s9235_s1 }
   0x3   :  { %9257 = sst [smem:[#allocation29_spill]] %s9236_s2 }
   0x4   :  { %9258 = sst [smem:[#allocation30_spill]] %s9237_s3 }
   0x5   :  { %9259 = sst [smem:[#allocation31_spill]] %s9238_s4 }
   0x6   :  { %9260 = sst [smem:[#allocation32_spill]] %s9240_s6 }
   0x7   :  { %11 = vsyncpa [#allocation7], 0 }
   0x8   :  { %13 = vsyncpa [#allocation7 + $0x1], 0 }
   0x9   :  { %14 = vsyncpa [#allocation10], 0 }
   0xa   :  { %15 = vsyncpa [#allocation13], 0 }
   0xb   :  { %16 = vsyncpa [#allocation16], 0 }
   0xc   :  { %17 = vsyncpa [#allocation8], 0 }
   0xd   :  { %19 = vsyncpa [#allocation8 + $0x1], 0  ;;  %s6686_s21 = smov 0   ;;  %s6688_s22 = smov 0  }
   0xe   :  { %s6690_s23 = smov 0   ;;  %s6692_s24 = smov 0  }
   0xf   :  { %s6694_s25 = smov 0   ;;  %s6696_s26 = smov 0  }
  0x10   :  { %s6698_s27 = smov 0   ;;  %s6700_s28 = smov 0  }
  0x11   :  { %s6702_s29 = smov 0   ;;  %s6704_s30 = smov 0  }
  0x12   :  { %s6706_s7 = smov 0  }
  0x13 LB: > { %9261 = sst [smem:[#allocation23_spill]] %s6611_s27  ;;  %s5277_s8 = sadd.s32 4294967295, %s6627_s7   ;;  %s6627_s7 = sphi %s6706_s7, %s25_s7   ;;  %s6623_s30 = sphi %s6704_s30, %s9319_s30   ;;  %s6619_s29 = sphi %s6702_s29, %s9318_s29   ;;  %s6615_s28 = sphi %s6700_s28, %s9317_s28   ;;  %s6611_s27 = sphi %s6698_s27, %s9316_s27   ;;  %s6607_s26 = sphi %s6696_s26, %s9315_s26   ;;  %s6603_s25 = sphi %s6694_s25, %s9314_s25   ;;  %s6599_s24 = sphi %s6692_s24, %s9313_s24   ;;  %s6595_s23 = sphi %s6690_s23, %s9312_s23   ;;  %s6591_s22 = sphi %s6688_s22, %s9311_s22   ;;  %s6587_s21 = sphi %s6686_s21, %s9310_s21  }
  0x14   : > { %9262 = sst [smem:[#allocation24_spill]] %s6615_s28  ;;  %p5279_p0 = scmp.ge.s32.totalorder %s6627_s7, 1 }
  0x15   : > { %p6743_p1 = scmp.eq.s32.totalorder %s5277_s8, 0  ;;  %p6747_p2 = scmp.eq.s32.totalorder %s5277_s8, 3 }
  0x16   : > { %p201_p3 = scmp.lt.s32.totalorder %s6627_s7, 5  ;;  %s6629_s12 = smov [#allocation9]  }
  0x17   : > { %s9263_s9 = scalar_select %p6743_p1, 1, 0 }
  0x18   : > { %s9264_s10 = scalar_select %p6747_p2, 1, 0 }
  0x19   : > { %p6752_p4 = pnand %p5279_p0, %p201_p3  ;;  %s213_s13 = sshll.u32 %s6629_s12, 4  ;;  %s6756_s13 = int_to_ptr.vmem [resolvable:$true] %s213_s13 }
  0x1a   : > { %9265 = sst [smem:[#allocation25_spill]] %s9264_s10  ;;  %s6630_s15 = smov [#allocation12]  }
  0x1b   : > { %s9266_s11 = scalar_select %p6752_p4, 1, 0 }
  0x1c   : > { %p6075_p5 = pneg %p6752_p4  ;;  %s237_s16 = sshll.u32 %s6630_s15, 4  ;;  %s6766_s16 = int_to_ptr.vmem [resolvable:$true] %s237_s16 }
  0x1d   : > { %9267 = sst [smem:[#allocation26_spill]] %s9266_s11  ;;  %s6631_s17 = smov [#allocation11]  }
  0x1e   : > { %p6762_p6 = pnand %p6075_p5, %p6743_p1  ;;  %s227_s18 = sshll.u32 %s6631_s17, 4  ;;  %s6768_s18 = int_to_ptr.vmem [resolvable:$true] %s227_s18 }
  0x1f   : > { %s9269_s1 = sld [smem:[#allocation28_spill]] }
  0x20   : > { %p6778_p8 = pneg %p6762_p6 }
  0x25   : > { %s6323_s8 = scalar_lea.hbm %s9269_s1, 768 }
  0x26   : > { %p6324_p7 = scmp.ne.s32.totalorder %s9269_s1, %s6323_s8  ;;  %p6330_p11 = scmp.lt.u32.totalorder %s6323_s8, %s9269_s1 }
  0x28   : > { %p6326_p9 = pnand %p6778_p8, %p6324_p7 }
  0x2a   : > { %p6327_p10 = pneg %p6326_p9 }
  0x2c   : > { %p6332_p12 = pnand %p6330_p11, %p6327_p10 }
  0x2e   : > { %6335 = shalt.err (!%p6332_p12)
}
  0x2f   : > { %s6336_s6 = scalar_lea.vmem %s6756_s13, 768  ;;  %p6344_p5 = scmp.lt.s32.totalorder %s6756_s13, %s6756_s13 }
  0x30   : > { %p6337_p13 = scmp.ne.s32.totalorder %s6756_s13, %s6336_s6  ;;  %p6345_p4 = scmp.lt.s32.totalorder %s6336_s6, %s6336_s6 }
  0x32   : > { %p6339_p0 = pnand %p6337_p13, %p6778_p8  ;;  %p6346_p7 = por %p6345_p4, %p6344_p5 }
  0x34   : > { %p6340_p3 = pneg %p6339_p0 }
  0x36   : > { %p6347_p9 = pnand %p6346_p7, %p6340_p3 }
  0x38   : > { %6350 = shalt.err (!%p6347_p9)
}
  0x39   : > { %s9252_s19 = smov 128   ;;  %s9253_s20 = smov 8  }
  0x3a   : > { %6078 = dma.hbm_to_vmem [thread:$0]  (!%p6762_p6), %s9269_s1, 768, %s6756_s13, [#allocation10], %s9252_s19, %s9252_s19, %s9253_s20  }
  0x3b   : > { %s9271_s3 = sld [smem:[#allocation30_spill]] }
  0x41   : > { %s6351_s6 = scalar_lea.hbm %s9271_s3, 768 }
  0x42   : > { %p6352_p4 = scmp.ne.s32.totalorder %s9271_s3, %s6351_s6  ;;  %p6358_p12 = scmp.lt.u32.totalorder %s6351_s6, %s9271_s3 }
  0x44   : > { %p6354_p10 = pnand %p6352_p4, %p6778_p8 }
  0x46   : > { %p6355_p11 = pneg %p6354_p10 }
  0x48   : > { %p6360_p13 = pnand %p6358_p12, %p6355_p11 }
  0x4a   : > { %6363 = shalt.err (!%p6360_p13)
}
  0x4b   : > { %s6364_s13 = scalar_lea.vmem %s6766_s16, 768  ;;  %p6372_p7 = scmp.lt.s32.totalorder %s6766_s16, %s6766_s16 }
  0x4c   : > { %p6365_p0 = scmp.ne.s32.totalorder %s6766_s16, %s6364_s13  ;;  %p6373_p9 = scmp.lt.s32.totalorder %s6364_s13, %s6364_s13 }
  0x4e   : > { %p6367_p3 = pnand %p6365_p0, %p6778_p8  ;;  %p6374_p4 = por %p6373_p9, %p6372_p7 }
  0x50   : > { %p6368_p5 = pneg %p6367_p3 }
  0x52   : > { %p6375_p10 = pnand %p6374_p4, %p6368_p5 }
  0x54   : > { %6378 = shalt.err (!%p6375_p10)
}
  0x55   : > { %6084 = dma.hbm_to_vmem [thread:$0]  (!%p6762_p6), %s9271_s3, 768, %s6766_s16, [#allocation13], %s9252_s19, %s9252_s19, %s9253_s20  }
  0x56   : > { %s9272_s2 = sld [smem:[#allocation29_spill]] }
  0x5c   : > { %s6379_s8 = scalar_lea.hbm %s9272_s2, 16 }
  0x5d   : > { %p6380_p11 = scmp.ne.s32.totalorder %s9272_s2, %s6379_s8  ;;  %p6386_p0 = scmp.lt.u32.totalorder %s6379_s8, %s9272_s2 }
  0x5f   : > { %p6382_p12 = pnand %p6380_p11, %p6778_p8 }
  0x61   : > { %p6383_p13 = pneg %p6382_p12 }
  0x63   : > { %p6388_p3 = pnand %p6386_p0, %p6383_p13 }
  0x65   : > { %6391 = shalt.err (!%p6388_p3)
}
  0x66   : > { %s6392_s16 = scalar_lea.vmem %s6768_s18, 16  ;;  %s6399_s13 = scalar_lea.vmem %s6768_s18, 32 }
  0x67   : > { %p6393_p5 = scmp.ne.s32.totalorder %s6768_s18, %s6392_s16  ;;  %p6400_p4 = scmp.lt.s32.totalorder %s6768_s18, %s6768_s18 }
  0x68   : > { %p6401_p10 = scmp.lt.s32.totalorder %s6399_s13, %s6392_s16 }
  0x69   : > { %p6395_p7 = pnand %p6393_p5, %p6778_p8 }
  0x6a   : > { %p6402_p11 = por %p6401_p10, %p6400_p4 }
  0x6b   : > { %p6396_p9 = pneg %p6395_p7 }
  0x6d   : > { %p6403_p12 = pnand %p6402_p11, %p6396_p9 }
  0x6f   : > { %6406 = shalt.err (!%p6403_p12)
}
  0x70   : > { %6081 = dma.hbm_to_vmem [thread:$0]  (!%p6762_p6), %s9272_s2, 16, %s6768_s18, [#allocation10]  }
  0x71   : > { %s6634_s10 = smov [#allocation14]   ;;  %s6635_s8 = smov [#allocation15]  }
  0x72   : > { %s251_s11 = sshll.u32 %s6634_s10, 4  ;;  %s262_s12 = sshll.u32 %s6635_s8, 4  ;;  %s252_s11 = int_to_ptr.vmem [resolvable:$true] %s251_s11  ;;  %s6852_s12 = int_to_ptr.vmem [resolvable:$true] %s262_s12 }
  0x73   : > { %s9273_s4 = sld [smem:[#allocation31_spill]] }
  0x79   : > { %s6407_s6 = scalar_lea.hbm %s9273_s4, 16 }
  0x7a   : > { %p6408_p13 = scmp.ne.s32.totalorder %s9273_s4, %s6407_s6  ;;  %p6414_p5 = scmp.lt.u32.totalorder %s6407_s6, %s9273_s4 }
  0x7c   : > { %p6410_p0 = pnand %p6408_p13, %p6778_p8 }
  0x7e   : > { %p6411_p3 = pneg %p6410_p0 }
  0x80   : > { %p6416_p7 = pnand %p6414_p5, %p6411_p3 }
  0x82   : > { %6419 = shalt.err (!%p6416_p7)
}
  0x83   : > { %s6420_s27 = scalar_lea.vmem %s252_s11, 16  ;;  %s6427_s10 = scalar_lea.vmem %s252_s11, 32 }
  0x84   : > { %p6421_p9 = scmp.ne.s32.totalorder %s252_s11, %s6420_s27  ;;  %p6428_p11 = scmp.lt.s32.totalorder %s252_s11, %s252_s11 }
  0x85   : > { %p6429_p12 = scmp.lt.s32.totalorder %s6427_s10, %s6420_s27 }
  0x86   : > { %p6423_p4 = pnand %p6421_p9, %p6778_p8 }
  0x87   : > { %p6430_p2 = por %p6429_p12, %p6428_p11 }
  0x88   : > { %p6424_p10 = pneg %p6423_p4 }
  0x8a   : > { %p6431_p1 = pnand %p6430_p2, %p6424_p10 }
  0x8c   : > { %6434 = shalt.err (!%p6431_p1)
}
  0x8d   : > { %6087 = dma.hbm_to_vmem [thread:$0]  (!%p6762_p6), %s9273_s4, 16, %s252_s11, [#allocation13]  }
  0x8e   : > { %s6435_s16 = scalar_lea.hbm %s9239_s5, 64 }
  0x8f   : > { %p6436_p13 = scmp.ne.s32.totalorder %s9239_s5, %s6435_s16  ;;  %p6442_p1 = scmp.lt.u32.totalorder %s6435_s16, %s9239_s5 }
  0x91   : > { %p6438_p0 = pnand %p6436_p13, %p6778_p8 }
  0x93   : > { %p6439_p3 = pneg %p6438_p0 }
  0x95   : > { %p6444_p2 = pnand %p6442_p1, %p6439_p3 }
  0x97   : > { %6447 = shalt.err (!%p6444_p2)
}
  0x98   : > { %s6448_s11 = scalar_lea.vmem %s6852_s12, 64  ;;  %p6456_p4 = scmp.lt.s32.totalorder %s6852_s12, %s6852_s12 }
  0x99   : > { %p6449_p5 = scmp.ne.s32.totalorder %s6852_s12, %s6448_s11  ;;  %p6457_p10 = scmp.lt.s32.totalorder %s6448_s11, %s6448_s11 }
  0x9b   : > { %p6451_p7 = pnand %p6449_p5, %p6778_p8  ;;  %p6458_p11 = por %p6457_p10, %p6456_p4 }
  0x9d   : > { %p6452_p9 = pneg %p6451_p7 }
  0x9f   : > { %p6459_p12 = pnand %p6458_p11, %p6452_p9 }
  0xa1   : > { %6462 = shalt.err (!%p6459_p12)
}
  0xa2   : > { %6090 = dma.hbm_to_vmem [thread:$0]  (!%p6762_p6), %s9239_s5, 64, %s6852_s12, [#allocation16]  }
  0xa3   : > { %s5278_s28 = sadd.s32 4294967294, %s6627_s7   ;;  %s34_s14 = sadd.s32 1, %s6619_s29 }
  0xa4   : > { %p35_p8 = scmp.ge.s32.totalorder %s34_s14, 2  ;;  %s37_s15 = sadd.s32 1, %s6623_s30 }
  0xa5   : > { %s44_s17 = sadd.s32 1, %s6607_s26  ;;  %p51_p13 = scmp.ne.s32.totalorder %s6607_s26, %s6603_s25 }
  0xa6   : > { %s9321_s14 = smov (%p35_p8, %s34_s14), 0  ;;  %s9274_s6 = sld [smem:[#allocation25_spill]] }
  0xa7   : > { %s9323_s15 = smov (!%p35_p8, %s37_s15), %s6623_s30  ;;  %p52_p0 = scmp.eq.s32.totalorder %s6627_s7, 0 }
  0xa8   : > { %p57_p6 = scmp.ne.s32.totalorder %s6603_s25, %s6599_s24  ;;  %p39_p3 = scmp.ge.s32.totalorder %s9323_s15, 2 }
  0xa9   : > { %s173_s12 = ssub.s32 %s6619_s29, %s9321_s14  ;;  %p6909_p1 = por %p52_p0, %p51_p13 }
  0xaa   : > { %p9276_p2 = scmp.ne.s32.totalorder %s9263_s9, 0  ;;  %s9325_s15 = smov (%p39_p3, %s9323_s15), 0 }
  0xab   : > { %s177_s0 = sadd.s32 1, %s6595_s23  ;;  %p187_p7 = scmp.ne.s32.totalorder %s6595_s23, %s6591_s22 }
  0xac   : > { %p6915_p5 = por %p9276_p2, %p57_p6  ;;  %s41_s24 = ssub.s32 %s6623_s30, %s9325_s15 }
  0xad   : > { %p193_p9 = scmp.ne.s32.totalorder %s6591_s22, %s6587_s21  ;;  %p42_p4 = scmp.eq.s32.totalorder %s41_s24, 0 }
  0xae   : > { %s174_s18 = sor.u32 %s173_s12, %s41_s24  ;;  %p9278_p11 = scmp.ne.s32.totalorder %s9274_s6, 0 }
  0xaf   : > { %p175_p10 = scmp.eq.s32.totalorder %s174_s18, 0  ;;  %p194_p8 = scmp.eq.s32.totalorder %s5278_s28, 3 }
  0xb0   : > { %p6930_p12 = por %p9278_p11, %p187_p7  ;;  %p6104_p13 = scmp.lt.s32.totalorder %s6627_s7, 4 }
  0xb1   : > { %s6935_s11 = scalar_select %p42_p4, %s6607_s26, %s44_s17  }
  0xb2   : > { %s9279_s27 = scalar_select %p6930_p12, 1, 0 }
  0xb3   : > { %s6938_s10 = scalar_select %p175_p10, %s6595_s23, %s177_s0  }
  0xb4   : > { %s273_s8 = sand.u32 1, %s6607_s26   ;;  %s5496_s19 = sshll.u32 %s6623_s30, 12 }
  0xb5   : > { %p6943_p0 = por %p194_p8, %p193_p9  ;;  %s5286_s1 = sshll.u32 %s273_s8, 8 }
  0xb6   : > { %s9281_s6 = sld [smem:[#allocation27_spill]]  ;;  %p6954_p6 = pnand %p6104_p13, %p6909_p1 }
  0xb7   : > { %s9280_s20 = scalar_select %p6943_p0, 1, 0 }
  0xb8   : > { %s277_s17 = scalar_lea.vmem [#allocation6], %s5286_s1  ;;  %s6960_s2 = scalar_lea.sflag [#allocation7], %s273_s8 }
  0xb9   : > { %s284_s0 = sshll.u32 %s277_s17, 4  ;;  %p6465_p2 = pneg %p6954_p6  ;;  %s6958_s0 = int_to_ptr.vmem [resolvable:$true] %s284_s0 }
  0xbc   : > { %s6950_s18 = scalar_lea.hbm %s9281_s6, %s5496_s19  ;;  %s6468_s24 = scalar_lea.hbm %s9281_s6, 8192 }
  0xbd   : > { %s6463_s12 = scalar_lea.hbm %s6950_s18, 4096  ;;  %p6469_p1 = scmp.lt.u32.totalorder %s6950_s18, %s9281_s6 }
  0xbe   : > { %p6464_p3 = scmp.ne.s32.totalorder %s6950_s18, %s6463_s12  ;;  %p6470_p4 = scmp.lt.u32.totalorder %s6468_s24, %s6463_s12 }
  0xbf   : > { %p6472_p11 = scmp.lt.u32.totalorder %s6463_s12, %s6950_s18 }
  0xc0   : > { %p6466_p7 = pnand %p6465_p2, %p6464_p3  ;;  %p6471_p10 = por %p6470_p4, %p6469_p1 }
  0xc2   : > { %p6467_p9 = pneg %p6466_p7  ;;  %p6473_p8 = por %p6472_p11, %p6471_p10 }
  0xc4   : > { %p6474_p13 = pnand %p6473_p8, %p6467_p9 }
  0xc6   : > { %6477 = shalt.err (!%p6474_p13)
}
  0xc7   : > { %s6478_s1 = scalar_lea.vmem %s6958_s0, 4096  ;;  %s6636_s8 = smov [#allocation6]  }
  0xc8   : > { %p6479_p3 = scmp.ne.s32.totalorder %s6958_s0, %s6478_s1  ;;  %s6483_s17 = sshll.u32 %s6636_s8, 4  ;;  %s6484_s17 = int_to_ptr.vmem [resolvable:$false] %s6483_s17 }
  0xc9   : > { %s6485_s3 = scalar_lea.vmem %s6484_s17, 8192  ;;  %p6486_p12 = scmp.lt.s32.totalorder %s6958_s0, %s6484_s17 }
  0xca   : > { %p6481_p7 = pnand %p6479_p3, %p6465_p2  ;;  %p6487_p1 = scmp.lt.s32.totalorder %s6485_s3, %s6478_s1 }
  0xcc   : > { %p6482_p0 = pneg %p6481_p7  ;;  %p6488_p4 = por %p6487_p1, %p6486_p12 }
  0xce   : > { %p6489_p10 = pnand %p6488_p4, %p6482_p0 }
  0xd0   : > { %6492 = shalt.err (!%p6489_p10)
}
  0xd1   : > { %s9283_s4 = smov 8   ;;  %s9284_s12 = smov 128  }
  0xd2   : > { %6094 = dma.hbm_to_vmem [thread:$0]  (!%p6954_p6), %s6950_s18, 4096, %s6958_s0, %s6960_s2, %s9284_s12, %s9284_s12, %s9283_s4  }
  0xd3   : > { %s9285_s19 = sld [smem:[#allocation26_spill]] }
  0xd9   : > { %p9286_p2 = scmp.ne.s32.totalorder %s9285_s19, 0 }
  0xda   : > { %s298_s16 = sand.u32 (!%p9286_p2), 1, %s6603_s25  }
  0xdb   : > { %296 = sbr.rel (%p9286_p2) target bundleno = 2766 (0xace), region = 44  ;;  %s5290_s24 = sshll.u32 (!%p9286_p2), %s298_s16, 8 }
  0xdc   : > { %s299_s1 = scalar_lea.sflag (!%p9286_p2), [#allocation7], %s298_s16  ;;  %s6994_s8 = scalar_lea.vmem (!%p9286_p2), [#allocation6], %s5290_s24 }
  0xe2   : > { %6566 = dma.done.wait (%p6915_p5), %s299_s1, 4096  }
  0xe3   : > { %6568 = vsyncadd (%p6915_p5), %s299_s1, 4294963200  ;;  %p9287_p12 = scmp.ne.s32.totalorder %s9263_s9, 0 }
  0xe5   : > { %6570 = dma.done.wait (%p9287_p12), [#allocation10], 784  }
  0xe6   : > { %6572 = vsyncadd (%p9287_p12), [#allocation10], 4294966512 }
  0xe7   : > { %6574 = dma.done.wait (%p9287_p12), [#allocation13], 784  }
  0xe8   : > { %6576 = vsyncadd (%p9287_p12), [#allocation13], 4294966512 }
  0xe9   : > { %6578 = dma.done.wait (%p9287_p12), [#allocation16], 64  }
  0xea   : > { %6580 = vsyncadd (%p9287_p12), [#allocation16], 4294967232  ;;  %vm353_vm0 = vcmask 24576   ;;  %vm406_vm1 = vcmask 57344   ;;  %v6637_v0 = vmov 0.0   ;;  %s9288_s2 = sld [smem:[#allocation23_spill]] }
  0xeb   : > { %354 = vst.msk [vmem:[#allocation2] sm:$0x1] %vm353_vm0, %v6637_v0  ;;  %355 = vst.msk [vmem:[#allocation2 + $0x18] sm:$0x1] %vm353_vm0, %v6637_v0  ;;  %vm481_vm2 = vcmask 31744   ;;  %s348_s18 = sand.u32 1, %s6591_s22  }
  0xec   : > { %356 = vst.msk [vmem:[#allocation2 + $0x30] sm:$0x1] %vm353_vm0, %v6637_v0  ;;  %357 = vst.msk [vmem:[#allocation2 + $0x48] sm:$0x1] %vm353_vm0, %v6637_v0  ;;  %s7299_s28 = sshll.u32 %s348_s18, 5 }
  0xed   : > { %358 = vst.msk [vmem:[#allocation2 + $0x60] sm:$0x1] %vm353_vm0, %v6637_v0  ;;  %359 = vst.msk [vmem:[#allocation2 + $0x78] sm:$0x1] %vm353_vm0, %v6637_v0  ;;  %s7335_s17 = scalar_lea.vmem [#allocation17], %s7299_s28 }
  0xee   : > { %360 = vst.msk [vmem:[#allocation2 + $0x90] sm:$0x1] %vm353_vm0, %v6637_v0  ;;  %361 = vst.msk [vmem:[#allocation2 + $0xa8] sm:$0x1] %vm353_vm0, %v6637_v0 }
  0xef   : > { %362 = vst.msk [vmem:[#allocation2 + $0xc0] sm:$0x1] %vm353_vm0, %v6637_v0  ;;  %363 = vst.msk [vmem:[#allocation2 + $0xd8] sm:$0x1] %vm353_vm0, %v6637_v0 }
  0xf0   : > { %364 = vst.msk [vmem:[#allocation2 + $0xf0] sm:$0x1] %vm353_vm0, %v6637_v0  ;;  %365 = vst.msk [vmem:[#allocation2 + $0x108] sm:$0x1] %vm353_vm0, %v6637_v0  ;;  %s5497_s9 = sshll.u32 %s9288_s2, 7  ;;  %s5297_s0 = sshll.u32 %s9288_s2, 3 }
  0xf1   : > { %366 = vst.msk [vmem:[#allocation2 + $0x120] sm:$0x1] %vm353_vm0, %v6637_v0  ;;  %367 = vst.msk [vmem:[#allocation2 + $0x138] sm:$0x1] %vm353_vm0, %v6637_v0  ;;  %s7198_s13 = scalar_lea.vmem %s6994_s8, %s5497_s9 [#allocation6]  ;;  %p5299_p5 = scmp.le.s32.totalorder %s9288_s2, 0 }
  0xf2   : > { %368 = vst.msk [vmem:[#allocation2 + $0x11] sm:$0x1] %vm353_vm0, %v6637_v0  ;;  %369 = vst.msk [vmem:[#allocation2 + $0x29] sm:$0x1] %vm353_vm0, %v6637_v0  ;;  %v7201_v1 = vld [vmem:[%s7198_s13 + $0x10] sm:$0xff]  ;;  %v7204_v2 = vld [vmem:[%s7198_s13] sm:$0xff] }
  0xf3   : > { %370 = vst.msk [vmem:[#allocation2 + $0x41] sm:$0x1] %vm353_vm0, %v6637_v0  ;;  %371 = vst.msk [vmem:[#allocation2 + $0x59] sm:$0x1] %vm353_vm0, %v6637_v0  ;;  %v7207_v3 = vld [vmem:[%s7198_s13 + $0x18] sm:$0xff]  ;;  %v467_v4 = vmul.f32 %v7201_v1, %v7201_v1  ;;  %v465_v5 = vmul.f32 %v7204_v2, %v7204_v2  ;;  %v7216_v7 = vld [vmem:[%s7198_s13 + $0x8] sm:$0xff] }
  0xf4   : > { %372 = vst.msk [vmem:[#allocation2 + $0x71] sm:$0x1] %vm353_vm0, %v6637_v0  ;;  %373 = vst.msk [vmem:[#allocation2 + $0x89] sm:$0x1] %vm353_vm0, %v6637_v0  ;;  %v468_v6 = vmul.f32 %v7207_v3, %v7207_v3  ;;  %v466_v8 = vmul.f32 %v7216_v7, %v7216_v7  ;;  %v7221_v9 = vld [vmem:[%s7198_s13 + $0x28] sm:$0xff]  ;;  %v7224_v10 = vld [vmem:[%s7198_s13 + $0x20] sm:$0xff] }
  0xf5   : > { %374 = vst.msk [vmem:[#allocation2 + $0xa1] sm:$0x1] %vm353_vm0, %v6637_v0  ;;  %375 = vst.msk [vmem:[#allocation2 + $0xb9] sm:$0x1] %vm353_vm0, %v6637_v0  ;;  %v488_v11 = vsel %vm481_vm2, %v467_v4, 0.0  ;;  %v482_v12 = vsel %vm481_vm2, %v465_v5, 0.0  ;;  %v470_v15 = vmul.f32 %v7221_v9, %v7221_v9  ;;  %v469_v16 = vmul.f32 %v7224_v10, %v7224_v10 }
  0xf6   : > { %376 = vst.msk [vmem:[#allocation2 + $0xd1] sm:$0x1] %vm353_vm0, %v6637_v0  ;;  %377 = vst.msk [vmem:[#allocation2 + $0xe9] sm:$0x1] %vm353_vm0, %v6637_v0  ;;  %489 = vadd.xlane.f32.xlu1 %v488_v11  ;;  %483 = vadd.xlane.f32.xlu0 %v482_v12  ;;  %v491_v13 = vsel %vm481_vm2, %v468_v6, 0.0  ;;  %v485_v14 = vsel %vm481_vm2, %v466_v8, 0.0 }
  0xf7   : > { %378 = vst.msk [vmem:[#allocation2 + $0x101] sm:$0x1] %vm353_vm0, %v6637_v0  ;;  %379 = vst.msk [vmem:[#allocation2 + $0x119] sm:$0x1] %vm353_vm0, %v6637_v0  ;;  %v7235_v17 = vld [vmem:[%s7198_s13 + $0x38] sm:$0xff]  ;;  %v7238_v18 = vld [vmem:[%s7198_s13 + $0x30] sm:$0xff] }
  0xf8   : > { %380 = vst.msk [vmem:[#allocation2 + $0x131] sm:$0x1] %vm353_vm0, %v6637_v0  ;;  %381 = vst.msk [vmem:[#allocation2 + $0x149] sm:$0x1] %vm353_vm0, %v6637_v0  ;;  %v497_v19 = vsel %vm481_vm2, %v470_v15, 0.0  ;;  %v494_v20 = vsel %vm481_vm2, %v469_v16, 0.0  ;;  %v472_v21 = vmul.f32 %v7235_v17, %v7235_v17  ;;  %v471_v22 = vmul.f32 %v7238_v18, %v7238_v18 }
  0xf9   : > { %382 = vst.msk [vmem:[#allocation3] sm:$0x1] %vm353_vm0, %v6637_v0  ;;  %383 = vst.msk [vmem:[#allocation3 + $0x18] sm:$0x1] %vm353_vm0, %v6637_v0  ;;  %v7247_v23 = vld [vmem:[%s7198_s13 + $0x48] sm:$0xff]  ;;  %v7250_v24 = vld [vmem:[%s7198_s13 + $0x40] sm:$0xff] }
  0xfa   : > { %384 = vst.msk [vmem:[#allocation3 + $0x30] sm:$0x1] %vm353_vm0, %v6637_v0  ;;  %385 = vst.msk [vmem:[#allocation3 + $0x48] sm:$0x1] %vm353_vm0, %v6637_v0  ;;  %492 = vadd.xlane.f32.xlu1 %v491_v13  ;;  %486 = vadd.xlane.f32.xlu0 %v485_v14  ;;  %v503_v25 = vsel %vm481_vm2, %v472_v21, 0.0  ;;  %v500_v26 = vsel %vm481_vm2, %v471_v22, 0.0  ;;  %v474_v27 = vmul.f32 %v7247_v23, %v7247_v23 }
  0xfb   : > { %386 = vst.msk [vmem:[#allocation3 + $0x60] sm:$0x1] %vm353_vm0, %v6637_v0  ;;  %387 = vst.msk [vmem:[#allocation3 + $0x78] sm:$0x1] %vm353_vm0, %v6637_v0  ;;  %v473_v28 = vmul.f32 %v7250_v24, %v7250_v24  ;;  %v7259_v29 = vld [vmem:[%s7198_s13 + $0x58] sm:$0xff]  ;;  %v7262_v30 = vld [vmem:[%s7198_s13 + $0x50] sm:$0xff] }
  0xfc   : > { %388 = vst.msk [vmem:[#allocation3 + $0x90] sm:$0x1] %vm353_vm0, %v6637_v0  ;;  %389 = vst.msk [vmem:[#allocation3 + $0xa8] sm:$0x1] %vm353_vm0, %v6637_v0  ;;  %v509_v31 = vsel %vm481_vm2, %v474_v27, 0.0  ;;  %v476_v33 = vmul.f32 %v7259_v29, %v7259_v29  ;;  %v475_v34 = vmul.f32 %v7262_v30, %v7262_v30  ;;  %v7271_v35 = vld [vmem:[%s7198_s13 + $0x68] sm:$0xff] }
  0xfd   : > { %390 = vst.msk [vmem:[#allocation3 + $0xc0] sm:$0x1] %vm353_vm0, %v6637_v0  ;;  %391 = vst.msk [vmem:[#allocation3 + $0xd8] sm:$0x1] %vm353_vm0, %v6637_v0  ;;  %v506_v32 = vsel %vm481_vm2, %v473_v28, 0.0  ;;  %v7274_v36 = vld [vmem:[%s7198_s13 + $0x60] sm:$0xff]  ;;  %v478_v39 = vmul.f32 %v7271_v35, %v7271_v35 }
  0xfe   : > { %392 = vst.msk [vmem:[#allocation3 + $0xf0] sm:$0x1] %vm353_vm0, %v6637_v0  ;;  %393 = vst.msk [vmem:[#allocation3 + $0x108] sm:$0x1] %vm353_vm0, %v6637_v0  ;;  %498 = vadd.xlane.f32.xlu1 %v497_v19  ;;  %495 = vadd.xlane.f32.xlu0 %v494_v20  ;;  %v515_v37 = vsel %vm481_vm2, %v476_v33, 0.0  ;;  %v512_v38 = vsel %vm481_vm2, %v475_v34, 0.0  ;;  %v477_v40 = vmul.f32 %v7274_v36, %v7274_v36 }
  0xff   : > { %394 = vst.msk [vmem:[#allocation3 + $0x11] sm:$0x1] %vm353_vm0, %v6637_v0  ;;  %395 = vst.msk [vmem:[#allocation3 + $0x29] sm:$0x1] %vm353_vm0, %v6637_v0  ;;  %v7283_v41 = vld [vmem:[%s7198_s13 + $0x78] sm:$0xff]  ;;  %v7286_v42 = vld [vmem:[%s7198_s13 + $0x70] sm:$0xff] }
 0x100   : > { %396 = vst.msk [vmem:[#allocation3 + $0x41] sm:$0x1] %vm353_vm0, %v6637_v0  ;;  %397 = vst.msk [vmem:[#allocation3 + $0x59] sm:$0x1] %vm353_vm0, %v6637_v0  ;;  %v521_v43 = vsel %vm481_vm2, %v478_v39, 0.0  ;;  %v518_v44 = vsel %vm481_vm2, %v477_v40, 0.0  ;;  %v480_v45 = vmul.f32 %v7283_v41, %v7283_v41  ;;  %v479_v46 = vmul.f32 %v7286_v42, %v7286_v42 }
 0x101   : > { %398 = vst.msk [vmem:[#allocation3 + $0x71] sm:$0x1] %vm353_vm0, %v6637_v0  ;;  %399 = vst.msk [vmem:[#allocation3 + $0x89] sm:$0x1] %vm353_vm0, %v6637_v0  ;;  %s5300_s4 = sadd.s32 (!%p5299_p5), 4294967293, %s5297_s0 }
 0x102   : > { %400 = vst.msk [vmem:[#allocation3 + $0xa1] sm:$0x1] %vm353_vm0, %v6637_v0  ;;  %401 = vst.msk [vmem:[#allocation3 + $0xb9] sm:$0x1] %vm353_vm0, %v6637_v0  ;;  %504 = vadd.xlane.f32.xlu1 %v503_v25  ;;  %501 = vadd.xlane.f32.xlu0 %v500_v26  ;;  %v527_v47 = vsel %vm481_vm2, %v480_v45, 0.0  ;;  %v524_v48 = vsel %vm481_vm2, %v479_v46, 0.0 }
 0x103   : > { %402 = vst.msk [vmem:[#allocation3 + $0xd1] sm:$0x1] %vm353_vm0, %v6637_v0  ;;  %403 = vst.msk [vmem:[#allocation3 + $0xe9] sm:$0x1] %vm353_vm0, %v6637_v0  ;;  %s5301_s12 = sshll.u32 (!%p5299_p5), %s5300_s4, 4 }
 0x104   : > { %404 = vst.msk [vmem:[#allocation3 + $0x101] sm:$0x1] %vm353_vm0, %v6637_v0  ;;  %405 = vst.msk [vmem:[#allocation3 + $0x119] sm:$0x1] %vm353_vm0, %v6637_v0  ;;  %s666_s19 = scalar_lea.vmem (!%p5299_p5), %s6994_s8, %s5301_s12 [#allocation6] }
 0x105   : > { %407 = vst.msk [vmem:[#allocation4] sm:$0x1] %vm406_vm1, %v6637_v0  ;;  %408 = vst.msk [vmem:[#allocation4 + $0x18] sm:$0x1] %vm406_vm1, %v6637_v0 }
 0x106   : > { %409 = vst.msk [vmem:[#allocation4 + $0x30] sm:$0x1] %vm406_vm1, %v6637_v0  ;;  %410 = vst.msk [vmem:[#allocation4 + $0x48] sm:$0x1] %vm406_vm1, %v6637_v0  ;;  %510 = vadd.xlane.f32.xlu1 %v509_v31  ;;  %507 = vadd.xlane.f32.xlu0 %v506_v32 }
 0x107   : > { %411 = vst.msk [vmem:[#allocation4 + $0x60] sm:$0x1] %vm406_vm1, %v6637_v0  ;;  %412 = vst.msk [vmem:[#allocation4 + $0x78] sm:$0x1] %vm406_vm1, %v6637_v0 }
 0x108   : > { %413 = vst.msk [vmem:[#allocation4 + $0x90] sm:$0x1] %vm406_vm1, %v6637_v0  ;;  %414 = vst.msk [vmem:[#allocation4 + $0xa8] sm:$0x1] %vm406_vm1, %v6637_v0 }
 0x109   : > { %415 = vst.msk [vmem:[#allocation4 + $0xc0] sm:$0x1] %vm406_vm1, %v6637_v0  ;;  %416 = vst.msk [vmem:[#allocation4 + $0xd8] sm:$0x1] %vm406_vm1, %v6637_v0 }
 0x10a   : > { %417 = vst.msk [vmem:[#allocation4 + $0x11] sm:$0x1] %vm406_vm1, %v6637_v0  ;;  %418 = vst.msk [vmem:[#allocation4 + $0x29] sm:$0x1] %vm406_vm1, %v6637_v0  ;;  %516 = vadd.xlane.f32.xlu1 %v515_v37  ;;  %513 = vadd.xlane.f32.xlu0 %v512_v38 }
 0x10b   : > { %419 = vst.msk [vmem:[#allocation4 + $0x41] sm:$0x1] %vm406_vm1, %v6637_v0  ;;  %420 = vst.msk [vmem:[#allocation4 + $0x59] sm:$0x1] %vm406_vm1, %v6637_v0 }
 0x10c   : > { %421 = vst.msk [vmem:[#allocation4 + $0x71] sm:$0x1] %vm406_vm1, %v6637_v0  ;;  %422 = vst.msk [vmem:[#allocation4 + $0x89] sm:$0x1] %vm406_vm1, %v6637_v0 }
 0x10d   : > { %423 = vst.msk [vmem:[#allocation4 + $0xa1] sm:$0x1] %vm406_vm1, %v6637_v0  ;;  %424 = vst.msk [vmem:[#allocation4 + $0xb9] sm:$0x1] %vm406_vm1, %v6637_v0 }
 0x10e   : > { %425 = vst.msk [vmem:[#allocation4 + $0xd1] sm:$0x1] %vm406_vm1, %v6637_v0  ;;  %426 = vst.msk [vmem:[#allocation4 + $0xe9] sm:$0x1] %vm406_vm1, %v6637_v0  ;;  %522 = vadd.xlane.f32.xlu1 %v521_v43  ;;  %519 = vadd.xlane.f32.xlu0 %v518_v44 }
 0x10f   : > { %427 = vst.msk [vmem:[#allocation5] sm:$0x1] %vm406_vm1, %v6637_v0  ;;  %428 = vst.msk [vmem:[#allocation5 + $0x18] sm:$0x1] %vm406_vm1, %v6637_v0 }
 0x110   : > { %429 = vst.msk [vmem:[#allocation5 + $0x30] sm:$0x1] %vm406_vm1, %v6637_v0  ;;  %430 = vst.msk [vmem:[#allocation5 + $0x48] sm:$0x1] %vm406_vm1, %v6637_v0 }
 0x111   : > { %431 = vst.msk [vmem:[#allocation5 + $0x60] sm:$0x1] %vm406_vm1, %v6637_v0  ;;  %432 = vst.msk [vmem:[#allocation5 + $0x78] sm:$0x1] %vm406_vm1, %v6637_v0 }
 0x112   : > { %433 = vst.msk [vmem:[#allocation5 + $0x90] sm:$0x1] %vm406_vm1, %v6637_v0  ;;  %434 = vst.msk [vmem:[#allocation5 + $0xa8] sm:$0x1] %vm406_vm1, %v6637_v0  ;;  %528 = vadd.xlane.f32.xlu1 %v527_v47  ;;  %525 = vadd.xlane.f32.xlu0 %v524_v48 }
 0x113   : > { %435 = vst.msk [vmem:[#allocation5 + $0xc0] sm:$0x1] %vm406_vm1, %v6637_v0  ;;  %436 = vst.msk [vmem:[#allocation5 + $0xd8] sm:$0x1] %vm406_vm1, %v6637_v0 }
 0x114   : > { %437 = vst.msk [vmem:[#allocation5 + $0x11] sm:$0x1] %vm406_vm1, %v6637_v0  ;;  %438 = vst.msk [vmem:[#allocation5 + $0x29] sm:$0x1] %vm406_vm1, %v6637_v0 }
 0x115   : > { %439 = vst.msk [vmem:[#allocation5 + $0x41] sm:$0x1] %vm406_vm1, %v6637_v0  ;;  %440 = vst.msk [vmem:[#allocation5 + $0x59] sm:$0x1] %vm406_vm1, %v6637_v0 }
 0x116   : > { %441 = vst.msk [vmem:[#allocation5 + $0x71] sm:$0x1] %vm406_vm1, %v6637_v0  ;;  %442 = vst.msk [vmem:[#allocation5 + $0x89] sm:$0x1] %vm406_vm1, %v6637_v0 }
 0x117   : > { %443 = vst.msk [vmem:[#allocation5 + $0xa1] sm:$0x1] %vm406_vm1, %v6637_v0  ;;  %444 = vst.msk [vmem:[#allocation5 + $0xb9] sm:$0x1] %vm406_vm1, %v6637_v0 }
 0x118   : > { %445 = vst.msk [vmem:[#allocation5 + $0xd1] sm:$0x1] %vm406_vm1, %v6637_v0  ;;  %446 = vst.msk [vmem:[#allocation5 + $0xe9] sm:$0x1] %vm406_vm1, %v6637_v0 }
 0x183   : > { %v490_v49 = vpop.xlane.xlu1 %489  ;;  %v484_v50 = vpop.xlane.xlu0 %483 }
 0x184   : > { %v533_v51 = vmul.f32 0.25, %v490_v49  ;;  %v531_v52 = vmul.f32 0.25, %v484_v50 }
 0x186   : > { %v549_v53 = vadd.f32 1e-08, %v533_v51  ;;  %v547_v54 = vadd.f32 1e-08, %v531_v52 }
 0x187   : > { %v493_v55 = vpop.xlane.xlu1 %492  ;;  %v487_v56 = vpop.xlane.xlu0 %486 }
 0x188   : > { %6219 = vrsqrt.f32 %v549_v53  ;;  %v534_v57 = vmul.f32 0.25, %v493_v55  ;;  %v532_v58 = vmul.f32 0.25, %v487_v56 }
 0x189   : > { %6221 = vrsqrt.f32 %v547_v54 }
 0x18a   : > { %v550_v59 = vadd.f32 1e-08, %v534_v57  ;;  %v548_v60 = vadd.f32 1e-08, %v532_v58 }
 0x18b   : > { %v499_v61 = vpop.xlane.xlu1 %498  ;;  %v496_v62 = vpop.xlane.xlu0 %495 }
 0x18c   : > { %6223 = vrsqrt.f32 %v550_v59  ;;  %v536_v63 = vmul.f32 0.25, %v499_v61  ;;  %v535_v0 = vmul.f32 0.25, %v496_v62 }
 0x18d   : > { %6225 = vrsqrt.f32 %v548_v60 }
 0x18e   : > { %v552_v4 = vadd.f32 1e-08, %v536_v63  ;;  %v551_v5 = vadd.f32 1e-08, %v535_v0 }
 0x18f   : > { %v505_v6 = vpop.xlane.xlu1 %504  ;;  %v502_v8 = vpop.xlane.xlu0 %501 }
 0x190   : > { %6227 = vrsqrt.f32 %v552_v4  ;;  %v538_v11 = vmul.f32 0.25, %v505_v6  ;;  %v537_v12 = vmul.f32 0.25, %v502_v8 }
 0x191   : > { %6229 = vrsqrt.f32 %v551_v5 }
 0x192   : > { %v6220_v13 = vpop.eup %6219  ;;  %v554_v14 = vadd.f32 1e-08, %v538_v11  ;;  %v553_v15 = vadd.f32 1e-08, %v537_v12 }
 0x193   : > { %v6222_v16 = vpop.eup %6221  ;;  %v581_v19 = vmul.f32 %v6220_v13, %v7201_v1  ;;  %v511_v20 = vpop.xlane.xlu1 %510 }
 0x194   : > { %v508_v21 = vpop.xlane.xlu0 %507  ;;  %v579_v22 = vmul.f32 %v6222_v16, %v7204_v2  ;;  %6231 = vrsqrt.f32 %v554_v14  ;;  %v540_v25 = vmul.f32 0.25, %v511_v20 }
 0x195   : > { %v539_v26 = vmul.f32 0.25, %v508_v21  ;;  %vm597_vm3 = vcmp.ge.f32.partialorder %v581_v19, 0.0  ;;  %v613_v27 = vmul.f32 0.2, %v581_v19  ;;  %6233 = vrsqrt.f32 %v553_v15 }
 0x196   : > { %v6224_v28 = vpop.eup %6223  ;;  %vm595_vm4 = vcmp.ge.f32.partialorder %v579_v22, 0.0  ;;  %v611_v31 = vmul.f32 0.2, %v579_v22  ;;  %v556_v32 = vadd.f32 1e-08, %v540_v25 }
 0x197   : > { %v6226_v33 = vpop.eup %6225  ;;  %v629_v34 = vsel %vm597_vm3, %v581_v19, %v613_v27  ;;  %v582_v37 = vmul.f32 %v6224_v28, %v7207_v3  ;;  %v555_v38 = vadd.f32 1e-08, %v539_v26  ;;  %v517_v39 = vpop.xlane.xlu1 %516 }
 0x198   : > { %v514_v40 = vpop.xlane.xlu0 %513  ;;  %646 = vst.msk [vmem:[#allocation2 + $0x61] sm:$0xff] %vm481_vm2, %v629_v34  ;;  %v627_v43 = vsel %vm595_vm4, %v579_v22, %v611_v31  ;;  %v580_v44 = vmul.f32 %v6226_v33, %v7216_v7  ;;  %6235 = vrsqrt.f32 %v556_v32  ;;  %v542_v45 = vmul.f32 0.25, %v517_v39 }
 0x199   : > { %644 = vst.msk [vmem:[#allocation2 + $0x49] sm:$0xff] %vm481_vm2, %v627_v43  ;;  %vm598_vm5 = vcmp.ge.f32.partialorder %v582_v37, 0.0  ;;  %v614_v46 = vmul.f32 0.2, %v582_v37  ;;  %6237 = vrsqrt.f32 %v555_v38  ;;  %v541_v47 = vmul.f32 0.25, %v514_v40 }
 0x19a   : > { %v6228_v48 = vpop.eup %6227  ;;  %vm596_vm6 = vcmp.ge.f32.partialorder %v580_v44, 0.0  ;;  %v612_v49 = vmul.f32 0.2, %v580_v44  ;;  %v558_v50 = vadd.f32 1e-08, %v542_v45 }
 0x19b   : > { %v6230_v51 = vpop.eup %6229  ;;  %v630_v52 = vsel %vm598_vm5, %v582_v37, %v614_v46  ;;  %v584_v53 = vmul.f32 %v6228_v48, %v7221_v9  ;;  %v557_v54 = vadd.f32 1e-08, %v541_v47  ;;  %v523_v55 = vpop.xlane.xlu1 %522 }
 0x19c   : > { %v520_v56 = vpop.xlane.xlu0 %519  ;;  %647 = vst.msk [vmem:[#allocation2 + $0x69] sm:$0xff] %vm481_vm2, %v630_v52  ;;  %v628_v57 = vsel %vm596_vm6, %v580_v44, %v612_v49  ;;  %v583_v58 = vmul.f32 %v6230_v51, %v7224_v10  ;;  %6239 = vrsqrt.f32 %v558_v50  ;;  %v544_v59 = vmul.f32 0.25, %v523_v55 }
 0x19d   : > { %645 = vst.msk [vmem:[#allocation2 + $0x51] sm:$0xff] %vm481_vm2, %v628_v57  ;;  %vm600_vm7 = vcmp.ge.f32.partialorder %v584_v53, 0.0  ;;  %v616_v60 = vmul.f32 0.2, %v584_v53  ;;  %6241 = vrsqrt.f32 %v557_v54  ;;  %v543_v61 = vmul.f32 0.25, %v520_v56 }
 0x19e   : > { %v6232_v62 = vpop.eup %6231  ;;  %vm599_vm8 = vcmp.ge.f32.partialorder %v583_v58, 0.0  ;;  %v615_v63 = vmul.f32 0.2, %v583_v58  ;;  %v560_v0 = vadd.f32 1e-08, %v544_v59 }
 0x19f   : > { %v6234_v4 = vpop.eup %6233  ;;  %v632_v5 = vsel %vm600_vm7, %v584_v53, %v616_v60  ;;  %v586_v6 = vmul.f32 %v6232_v62, %v7235_v17  ;;  %v559_v8 = vadd.f32 1e-08, %v543_v61  ;;  %v529_v11 = vpop.xlane.xlu1 %528 }
 0x1a0   : > { %v526_v12 = vpop.xlane.xlu0 %525  ;;  %649 = vst.msk [vmem:[#allocation2 + $0x81] sm:$0xff] %vm481_vm2, %v632_v5  ;;  %v631_v13 = vsel %vm599_vm8, %v583_v58, %v615_v63  ;;  %v585_v14 = vmul.f32 %v6234_v4, %v7238_v18  ;;  %6243 = vrsqrt.f32 %v560_v0  ;;  %v546_v15 = vmul.f32 0.25, %v529_v11  ;;  %v669_v4 = vld [vmem:[%s666_s19 + $0x10] sm:$0xff] (!%p5299_p5)  ;;  %v667_v5 = vld [vmem:[%s666_s19] sm:$0xff] (!%p5299_p5) }
 0x1a1   : > { %648 = vst.msk [vmem:[#allocation2 + $0x79] sm:$0xff] %vm481_vm2, %v631_v13  ;;  %vm602_vm9 = vcmp.ge.f32.partialorder %v586_v6, 0.0  ;;  %v618_v16 = vmul.f32 0.2, %v586_v6  ;;  %6245 = vrsqrt.f32 %v559_v8  ;;  %v545_v19 = vmul.f32 0.25, %v526_v12  ;;  %v668_v13 = vld [vmem:[%s666_s19 + $0x8] sm:$0xff] (!%p5299_p5) }
 0x1a2   : > { %v6236_v20 = vpop.eup %6235  ;;  %vm601_vm10 = vcmp.ge.f32.partialorder %v585_v14, 0.0  ;;  %v617_v21 = vmul.f32 0.2, %v585_v14  ;;  %v562_v22 = vadd.f32 1e-08, %v546_v15  ;;  %v675_v8 = vmul.f32 (!%p5299_p5), %v669_v4, %v669_v4  ;;  %v7343_v15 = vld [vmem:[%s666_s19 + $0x28] sm:$0xff] (!%p5299_p5) }
 0x1a3   : > { %v6238_v25 = vpop.eup %6237  ;;  %v634_v26 = vsel %vm602_vm9, %v586_v6, %v618_v16  ;;  %v588_v27 = vmul.f32 %v6236_v20, %v7247_v23  ;;  %v561_v28 = vadd.f32 1e-08, %v545_v19  ;;  %v670_v6 = vld [vmem:[%s666_s19 + $0x18] sm:$0xff] (!%p5299_p5)  ;;  %v673_v11 = vmul.f32 (!%p5299_p5), %v667_v5, %v667_v5  ;;  %v7345_v16 = vld [vmem:[%s666_s19 + $0x20] sm:$0xff] (!%p5299_p5) }
 0x1a4   : > { %651 = vst.msk [vmem:[#allocation2 + $0x99] sm:$0xff] %vm481_vm2, %v634_v26  ;;  %v633_v31 = vsel %vm601_vm10, %v585_v14, %v617_v21  ;;  %v587_v32 = vmul.f32 %v6238_v25, %v7250_v24  ;;  %6247 = vrsqrt.f32 %v562_v22  ;;  %v676_v12 = vmul.f32 (!%p5299_p5), %v670_v6, %v670_v6 }
 0x1a5   : > { %650 = vst.msk [vmem:[#allocation2 + $0x91] sm:$0xff] %vm481_vm2, %v633_v31  ;;  %vm604_vm11 = vcmp.ge.f32.partialorder %v588_v27, 0.0  ;;  %v620_v33 = vmul.f32 0.2, %v588_v27  ;;  %6249 = vrsqrt.f32 %v561_v28  ;;  %v674_v14 = vmul.f32 (!%p5299_p5), %v668_v13, %v668_v13 }
 0x1a6   : > { %v6240_v34 = vpop.eup %6239  ;;  %vm603_vm12 = vcmp.ge.f32.partialorder %v587_v32, 0.0  ;;  %v619_v37 = vmul.f32 0.2, %v587_v32  ;;  %v685_v19 = vsel (!%p5299_p5), %vm481_vm2, %v675_v8, 0.0  ;;  %v679_v20 = vsel (!%p5299_p5), %vm481_vm2, %v673_v11, 0.0 }
 0x1a7   : > { %v6242_v38 = vpop.eup %6241  ;;  %v636_v39 = vsel %vm604_vm11, %v588_v27, %v620_v33  ;;  %v590_v40 = vmul.f32 %v6240_v34, %v7259_v29  ;;  %686 = vadd.xlane.f32.xlu1 (!%p5299_p5), %v685_v19  ;;  %680 = vadd.xlane.f32.xlu0 (!%p5299_p5), %v679_v20  ;;  %v688_v21 = vsel (!%p5299_p5), %vm481_vm2, %v676_v12, 0.0  ;;  %v682_v22 = vsel (!%p5299_p5), %vm481_vm2, %v674_v14, 0.0 }
 0x1a8   : > { %653 = vst.msk [vmem:[#allocation2 + $0xb1] sm:$0xff] %vm481_vm2, %v636_v39  ;;  %v635_v43 = vsel %vm603_vm12, %v587_v32, %v619_v37  ;;  %v589_v44 = vmul.f32 %v6242_v38, %v7262_v30  ;;  %v678_v25 = vmul.f32 (!%p5299_p5), %v7343_v15, %v7343_v15  ;;  %v677_v26 = vmul.f32 (!%p5299_p5), %v7345_v16, %v7345_v16 }
 0x1a9   : > { %652 = vst.msk [vmem:[#allocation2 + $0xa9] sm:$0xff] %vm481_vm2, %v635_v43  ;;  %vm606_vm13 = vcmp.ge.f32.partialorder %v590_v40, 0.0  ;;  %v622_v45 = vmul.f32 0.2, %v590_v40 }
 0x1aa   : > { %v6244_v46 = vpop.eup %6243  ;;  %vm605_vm14 = vcmp.ge.f32.partialorder %v589_v44, 0.0  ;;  %v621_v47 = vmul.f32 0.2, %v589_v44  ;;  %v694_v27 = vsel (!%p5299_p5), %vm481_vm2, %v678_v25, 0.0  ;;  %v691_v28 = vsel (!%p5299_p5), %vm481_vm2, %v677_v26, 0.0 }
 0x1ab   : > { %v6246_v48 = vpop.eup %6245  ;;  %v638_v49 = vsel %vm606_vm13, %v590_v40, %v622_v45  ;;  %v592_v50 = vmul.f32 %v6244_v46, %v7271_v35  ;;  %689 = vadd.xlane.f32.xlu1 (!%p5299_p5), %v688_v21  ;;  %683 = vadd.xlane.f32.xlu0 (!%p5299_p5), %v682_v22 }
 0x1ac   : > { %655 = vst.msk [vmem:[#allocation2 + $0xc9] sm:$0xff] %vm481_vm2, %v638_v49  ;;  %v637_v51 = vsel %vm605_vm14, %v589_v44, %v621_v47  ;;  %v591_v52 = vmul.f32 %v6246_v48, %v7274_v36 }
 0x1ad   : > { %654 = vst.msk [vmem:[#allocation2 + $0xc1] sm:$0xff] %vm481_vm2, %v637_v51  ;;  %vm608_vm15 = vcmp.ge.f32.partialorder %v592_v50, 0.0  ;;  %v624_v53 = vmul.f32 0.2, %v592_v50 }
 0x1ae   : > { %v6248_v54 = vpop.eup %6247  ;;  %vm607_vm0 = vcmp.ge.f32.partialorder %v591_v52, 0.0  ;;  %v623_v55 = vmul.f32 0.2, %v591_v52 }
 0x1af   : > { %v6250_v56 = vpop.eup %6249  ;;  %v640_v57 = vsel %vm608_vm15, %v592_v50, %v624_v53  ;;  %v594_v58 = vmul.f32 %v6248_v54, %v7283_v41  ;;  %663 = sbr.rel (%p5299_p5) target bundleno = 595 (0x253), region = 72  ;;  %695 = vadd.xlane.f32.xlu1 (!%p5299_p5), %v694_v27  ;;  %692 = vadd.xlane.f32.xlu0 (!%p5299_p5), %v691_v28 }
 0x1b0   : > { %657 = vst.msk [vmem:[#allocation2 + $0xe1] sm:$0xff] %vm481_vm2, %v640_v57  ;;  %v639_v59 = vsel %vm607_vm0, %v591_v52, %v623_v55  ;;  %v593_v60 = vmul.f32 %v6250_v56, %v7286_v42 }
 0x1b1   : > { %656 = vst.msk [vmem:[#allocation2 + $0xd9] sm:$0xff] %vm481_vm2, %v639_v59  ;;  %vm610_vm1 = vcmp.ge.f32.partialorder %v594_v58, 0.0  ;;  %v626_v61 = vmul.f32 0.2, %v594_v58 }
 0x1b2   : > { %vm609_vm3 = vcmp.ge.f32.partialorder %v593_v60, 0.0  ;;  %v625_v62 = vmul.f32 0.2, %v593_v60 }
 0x1b3   : > { %v642_v63 = vsel %vm610_vm1, %v594_v58, %v626_v61 }
 0x1b4   : > { %659 = vst.msk [vmem:[#allocation2 + $0xf9] sm:$0xff] %vm481_vm2, %v642_v63  ;;  %v641_v0 = vsel %vm609_vm3, %v593_v60, %v625_v62 }
 0x1b5   : > { %658 = vst.msk [vmem:[#allocation2 + $0xf1] sm:$0xff] %vm481_vm2, %v641_v0 }
 0x234   : > { %v687_v31 = vpop.xlane.xlu1 %686  ;;  %v681_v32 = vpop.xlane.xlu0 %680 }
 0x235   : > { %v699_v33 = vmul.f32 0.25, %v687_v31  ;;  %v697_v34 = vmul.f32 0.25, %v681_v32 }
 0x237   : > { %v705_v37 = vadd.f32 1e-08, %v699_v33  ;;  %v703_v38 = vadd.f32 1e-08, %v697_v34 }
 0x238   : > { %v690_v39 = vpop.xlane.xlu1 %689  ;;  %v684_v40 = vpop.xlane.xlu0 %683 }
 0x239   : > { %6251 = vrsqrt.f32 %v705_v37  ;;  %v700_v43 = vmul.f32 0.25, %v690_v39  ;;  %v698_v44 = vmul.f32 0.25, %v684_v40 }
 0x23a   : > { %6253 = vrsqrt.f32 %v703_v38 }
 0x23b   : > { %v706_v45 = vadd.f32 1e-08, %v700_v43  ;;  %v704_v46 = vadd.f32 1e-08, %v698_v44 }
 0x23c   : > { %v696_v47 = vpop.xlane.xlu1 %695  ;;  %v693_v48 = vpop.xlane.xlu0 %692 }
 0x23d   : > { %6255 = vrsqrt.f32 %v706_v45  ;;  %v702_v49 = vmul.f32 0.25, %v696_v47  ;;  %v701_v50 = vmul.f32 0.25, %v693_v48 }
 0x23e   : > { %6257 = vrsqrt.f32 %v704_v46 }
 0x23f   : > { %v708_v51 = vadd.f32 1e-08, %v702_v49  ;;  %v707_v52 = vadd.f32 1e-08, %v701_v50 }
 0x241   : > { %6259 = vrsqrt.f32 %v708_v51 }
 0x242   : > { %6261 = vrsqrt.f32 %v707_v52 }
 0x243   : > { %v6252_v53 = vpop.eup %6251 }
 0x244   : > { %v6254_v54 = vpop.eup %6253  ;;  %v717_v55 = vmul.f32 %v6252_v53, %v669_v4 }
 0x245   : > { %v715_v56 = vmul.f32 %v6254_v54, %v667_v5 }
 0x246   : > { %vm723_vm4 = vcmp.ge.f32.partialorder %v717_v55, 0.0  ;;  %v729_v57 = vmul.f32 0.2, %v717_v55 }
 0x247   : > { %v6256_v58 = vpop.eup %6255  ;;  %vm721_vm5 = vcmp.ge.f32.partialorder %v715_v56, 0.0  ;;  %v727_v59 = vmul.f32 0.2, %v715_v56 }
 0x248   : > { %v6258_v60 = vpop.eup %6257  ;;  %v735_v61 = vsel %vm723_vm4, %v717_v55, %v729_v57  ;;  %v718_v62 = vmul.f32 %v6256_v58, %v670_v6 }
 0x249   : > { %741 = vst.msk [vmem:[#allocation2 + $0x19] sm:$0xff] %vm481_vm2, %v735_v61  ;;  %v733_v63 = vsel %vm721_vm5, %v715_v56, %v727_v59  ;;  %v716_v0 = vmul.f32 %v6258_v60, %v668_v13 }
 0x24a   : > { %739 = vst.msk [vmem:[#allocation2 + $0x1] sm:$0xff] %vm481_vm2, %v733_v63  ;;  %vm724_vm6 = vcmp.ge.f32.partialorder %v718_v62, 0.0  ;;  %v730_v8 = vmul.f32 0.2, %v718_v62 }
 0x24b   : > { %v6260_v11 = vpop.eup %6259  ;;  %vm722_vm7 = vcmp.ge.f32.partialorder %v716_v0, 0.0  ;;  %v728_v4 = vmul.f32 0.2, %v716_v0 }
 0x24c   : > { %v6262_v5 = vpop.eup %6261  ;;  %v736_v12 = vsel %vm724_vm6, %v718_v62, %v730_v8  ;;  %v720_v14 = vmul.f32 %v6260_v11, %v7343_v15 }
 0x24d   : > { %742 = vst.msk [vmem:[#allocation2 + $0x21] sm:$0xff] %vm481_vm2, %v736_v12  ;;  %v734_v19 = vsel %vm722_vm7, %v716_v0, %v728_v4  ;;  %v719_v6 = vmul.f32 %v6262_v5, %v7345_v16 }
 0x24e   : > { %740 = vst.msk [vmem:[#allocation2 + $0x9] sm:$0xff] %vm481_vm2, %v734_v19  ;;  %vm726_vm8 = vcmp.ge.f32.partialorder %v720_v14, 0.0  ;;  %v732_v13 = vmul.f32 0.2, %v720_v14 }
 0x24f   : > { %vm725_vm9 = vcmp.ge.f32.partialorder %v719_v6, 0.0  ;;  %v731_v20 = vmul.f32 0.2, %v719_v6 }
 0x250   : > { %v738_v21 = vsel %vm726_vm8, %v720_v14, %v732_v13 }
 0x251   : > { %744 = vst.msk [vmem:[#allocation2 + $0x39] sm:$0xff] %vm481_vm2, %v738_v21  ;;  %v737_v22 = vsel %vm725_vm9, %v719_v6, %v731_v20 }
 0x252   : > { %743 = vst.msk [vmem:[#allocation2 + $0x31] sm:$0xff] %vm481_vm2, %v737_v22 }
 0x253 PF: > { %s9290_s16 = sld [smem:[#allocation23_spill]] }
 0x259   : > { %p5302_p0 = scmp.ne.s32.totalorder %s9290_s16, 0 }
 0x25a   : > { %v6638_v15 = vmov (!%p5302_p0), 0.0  }
 0x25b   : > { %748 = sbr.rel (%p5302_p0) target bundleno = 610 (0x262), region = 76  ;;  %749 = vst.msk [vmem:[#allocation2 + $0x1] sm:$0xff] (!%p5302_p0), %vm481_vm2, %v6638_v15  ;;  %750 = vst.msk [vmem:[#allocation2 + $0x9] sm:$0xff] (!%p5302_p0), %vm481_vm2, %v6638_v15 }
 0x25c   : > { %751 = vst.msk [vmem:[#allocation2 + $0x19] sm:$0xff] (!%p5302_p0), %vm481_vm2, %v6638_v15  ;;  %752 = vst.msk [vmem:[#allocation2 + $0x21] sm:$0xff] (!%p5302_p0), %vm481_vm2, %v6638_v15 }
 0x25d   : > { %753 = vst.msk [vmem:[#allocation2 + $0x31] sm:$0xff] (!%p5302_p0), %vm481_vm2, %v6638_v15  ;;  %754 = vst.msk [vmem:[#allocation2 + $0x39] sm:$0xff] (!%p5302_p0), %vm481_vm2, %v6638_v15 }
 0x262 PF: > { %s9291_s24 = sld [smem:[#allocation23_spill]] }
 0x268   : > { %p5303_p6 = scmp.ge.s32.totalorder %s9291_s24, 1 }
 0x269   : > { %v5308_v16 = vld [vmem:[%s7198_s13 + $0x90] sm:$0xff] (!%p5303_p6)  ;;  %v5306_v25 = vld [vmem:[%s7198_s13 + $0x80] sm:$0xff] (!%p5303_p6)  ;;  %v5309_v26 = vld [vmem:[%s7198_s13 + $0x98] sm:$0xff] (!%p5303_p6) }
 0x26a   : > { %758 = sbr.rel (%p5303_p6) target bundleno = 793 (0x319), region = 80  ;;  %v770_v27 = vmul.f32 (!%p5303_p6), %v5308_v16, %v5308_v16  ;;  %v768_v28 = vmul.f32 (!%p5303_p6), %v5306_v25, %v5306_v25  ;;  %v771_v31 = vmul.f32 (!%p5303_p6), %v5309_v26, %v5309_v26  ;;  %v5307_v32 = vld [vmem:[%s7198_s13 + $0x88] sm:$0xff] (!%p5303_p6)  ;;  %v7385_v37 = vld [vmem:[%s7198_s13 + $0xa0] sm:$0xff] (!%p5303_p6) }
 0x26b   : > { %v769_v33 = vmul.f32 (!%p5303_p6), %v5307_v32, %v5307_v32  ;;  %v7382_v34 = vld [vmem:[%s7198_s13 + $0xa8] sm:$0xff] (!%p5303_p6)  ;;  %v772_v45 = vmul.f32 (!%p5303_p6), %v7385_v37, %v7385_v37 }
 0x26c   : > { %v780_v38 = vsel (!%p5303_p6), %vm481_vm2, %v770_v27, 0.0  ;;  %v774_v39 = vsel (!%p5303_p6), %vm481_vm2, %v768_v28, 0.0  ;;  %v783_v40 = vsel (!%p5303_p6), %vm481_vm2, %v771_v31, 0.0  ;;  %v773_v44 = vmul.f32 (!%p5303_p6), %v7382_v34, %v7382_v34 }
 0x26d   : > { %781 = vadd.xlane.f32.xlu1 (!%p5303_p6), %v780_v38  ;;  %775 = vadd.xlane.f32.xlu0 (!%p5303_p6), %v774_v39  ;;  %v777_v43 = vsel (!%p5303_p6), %vm481_vm2, %v769_v33, 0.0  ;;  %v786_v47 = vsel (!%p5303_p6), %vm481_vm2, %v772_v45, 0.0 }
 0x26e   : > { %v789_v46 = vsel (!%p5303_p6), %vm481_vm2, %v773_v44, 0.0 }
 0x271   : > { %784 = vadd.xlane.f32.xlu1 %v783_v40  ;;  %778 = vadd.xlane.f32.xlu0 %v777_v43 }
 0x275   : > { %790 = vadd.xlane.f32.xlu1 %v789_v46  ;;  %787 = vadd.xlane.f32.xlu0 %v786_v47 }
 0x2fa   : > { %v782_v48 = vpop.xlane.xlu1 %781  ;;  %v776_v49 = vpop.xlane.xlu0 %775 }
 0x2fb   : > { %v794_v50 = vmul.f32 0.25, %v782_v48  ;;  %v792_v51 = vmul.f32 0.25, %v776_v49 }
 0x2fd   : > { %v800_v52 = vadd.f32 1e-08, %v794_v50  ;;  %v798_v53 = vadd.f32 1e-08, %v792_v51 }
 0x2fe   : > { %v785_v54 = vpop.xlane.xlu1 %784  ;;  %v779_v55 = vpop.xlane.xlu0 %778 }
 0x2ff   : > { %6263 = vrsqrt.f32 %v800_v52  ;;  %v795_v56 = vmul.f32 0.25, %v785_v54  ;;  %v793_v57 = vmul.f32 0.25, %v779_v55 }
 0x300   : > { %6265 = vrsqrt.f32 %v798_v53 }
 0x301   : > { %v801_v58 = vadd.f32 1e-08, %v795_v56  ;;  %v799_v59 = vadd.f32 1e-08, %v793_v57 }
 0x302   : > { %v791_v60 = vpop.xlane.xlu1 %790  ;;  %v788_v61 = vpop.xlane.xlu0 %787 }
 0x303   : > { %6267 = vrsqrt.f32 %v801_v58  ;;  %v797_v62 = vmul.f32 0.25, %v791_v60  ;;  %v796_v63 = vmul.f32 0.25, %v788_v61 }
 0x304   : > { %6269 = vrsqrt.f32 %v799_v59 }
 0x305   : > { %v803_v0 = vadd.f32 1e-08, %v797_v62  ;;  %v802_v8 = vadd.f32 1e-08, %v796_v63 }
 0x307   : > { %6271 = vrsqrt.f32 %v803_v0 }
 0x308   : > { %6273 = vrsqrt.f32 %v802_v8 }
 0x309   : > { %v6264_v11 = vpop.eup %6263 }
 0x30a   : > { %v6266_v4 = vpop.eup %6265  ;;  %v812_v5 = vmul.f32 %v6264_v11, %v5308_v16 }
 0x30b   : > { %v810_v12 = vmul.f32 %v6266_v4, %v5306_v25 }
 0x30c   : > { %vm818_vm10 = vcmp.ge.f32.partialorder %v812_v5, 0.0  ;;  %v824_v14 = vmul.f32 0.2, %v812_v5 }
 0x30d   : > { %v6268_v19 = vpop.eup %6267  ;;  %vm816_vm11 = vcmp.ge.f32.partialorder %v810_v12, 0.0  ;;  %v822_v6 = vmul.f32 0.2, %v810_v12 }
 0x30e   : > { %v6270_v13 = vpop.eup %6269  ;;  %v830_v20 = vsel %vm818_vm10, %v812_v5, %v824_v14  ;;  %v813_v21 = vmul.f32 %v6268_v19, %v5309_v26 }
 0x30f   : > { %837 = vst.msk [vmem:[#allocation2 + $0x121] sm:$0xff] %vm481_vm2, %v830_v20  ;;  %v828_v22 = vsel %vm816_vm11, %v810_v12, %v822_v6  ;;  %v811_v15 = vmul.f32 %v6270_v13, %v5307_v32 }
 0x310   : > { %835 = vst.msk [vmem:[#allocation2 + $0x109] sm:$0xff] %vm481_vm2, %v828_v22  ;;  %vm819_vm12 = vcmp.ge.f32.partialorder %v813_v21, 0.0  ;;  %v825_v27 = vmul.f32 0.2, %v813_v21 }
 0x311   : > { %v6272_v28 = vpop.eup %6271  ;;  %vm817_vm13 = vcmp.ge.f32.partialorder %v811_v15, 0.0  ;;  %v823_v16 = vmul.f32 0.2, %v811_v15 }
 0x312   : > { %v6274_v25 = vpop.eup %6273  ;;  %v831_v31 = vsel %vm819_vm12, %v813_v21, %v825_v27  ;;  %v815_v33 = vmul.f32 %v6272_v28, %v7382_v34 }
 0x313   : > { %838 = vst.msk [vmem:[#allocation2 + $0x129] sm:$0xff] %vm481_vm2, %v831_v31  ;;  %v829_v38 = vsel %vm817_vm13, %v811_v15, %v823_v16  ;;  %v814_v26 = vmul.f32 %v6274_v25, %v7385_v37 }
 0x314   : > { %836 = vst.msk [vmem:[#allocation2 + $0x111] sm:$0xff] %vm481_vm2, %v829_v38  ;;  %vm821_vm14 = vcmp.ge.f32.partialorder %v815_v33, 0.0  ;;  %v827_v32 = vmul.f32 0.2, %v815_v33 }
 0x315   : > { %vm820_vm15 = vcmp.ge.f32.partialorder %v814_v26, 0.0  ;;  %v826_v39 = vmul.f32 0.2, %v814_v26 }
 0x316   : > { %v833_v40 = vsel %vm821_vm14, %v815_v33, %v827_v32 }
 0x317   : > { %840 = vst.msk [vmem:[#allocation2 + $0x141] sm:$0xff] %vm481_vm2, %v833_v40  ;;  %v832_v43 = vsel %vm820_vm15, %v814_v26, %v826_v39 }
 0x318   : > { %839 = vst.msk [vmem:[#allocation2 + $0x139] sm:$0xff] %vm481_vm2, %v832_v43 }
 0x319 PF: > { %s9292_s1 = sld [smem:[#allocation23_spill]] }
 0x31f   : > { %p5312_p9 = scmp.ne.s32.totalorder %s9292_s1, 1 }
 0x320   : > { %v6639_v34 = vmov (!%p5312_p9), 0.0  }
 0x321   : > { %844 = sbr.rel (%p5312_p9) target bundleno = 808 (0x328), region = 84  ;;  %846 = vst.msk [vmem:[#allocation2 + $0x109] sm:$0xff] (!%p5312_p9), %vm481_vm2, %v6639_v34  ;;  %847 = vst.msk [vmem:[#allocation2 + $0x111] sm:$0xff] (!%p5312_p9), %vm481_vm2, %v6639_v34 }
 0x322   : > { %848 = vst.msk [vmem:[#allocation2 + $0x121] sm:$0xff] (!%p5312_p9), %vm481_vm2, %v6639_v34  ;;  %849 = vst.msk [vmem:[#allocation2 + $0x129] sm:$0xff] (!%p5312_p9), %vm481_vm2, %v6639_v34 }
 0x323   : > { %850 = vst.msk [vmem:[#allocation2 + $0x139] sm:$0xff] (!%p5312_p9), %vm481_vm2, %v6639_v34  ;;  %851 = vst.msk [vmem:[#allocation2 + $0x141] sm:$0xff] (!%p5312_p9), %vm481_vm2, %v6639_v34 }
 0x328 PF: > { %v7414_v37 = vld [vmem:[#allocation2 + $0x31] sm:$0xff]  ;;  %v7416_v44 = vld [vmem:[#allocation2 + $0x19] sm:$0xff]  ;;  %s6640_s2 = smov 8   ;;  %s6641_s9 = smov 4   ;;  %v7424_v46 = vld [vmem:[#allocation2 + $0x21] sm:$0xff]  ;;  %vm1424_vm0 = vcmask 1043456  }
 0x329   : > { %1228 = vrot.lane.b32.xlu1 %v7414_v37, %s6640_s2  ;;  %1154 = vrot.lane.b32.xlu0 %v7416_v44, %s6641_s9  ;;  %v7422_v45 = vld [vmem:[#allocation2 + $0x39] sm:$0xff]  ;;  %v7434_v47 = vld [vmem:[#allocation2 + $0x51] sm:$0xff]  ;;  %v7436_v48 = vld [vmem:[#allocation2 + $0x49] sm:$0xff]  ;;  %vm6642_vm1 = vmmov 1   ;;  %vm1075_vm4 = vcmask 64512   ;;  %vm1351_vm5 = vcmask 97280  }
 0x32a   : > { %v1349_v49 = vld [vmem:[#allocation9 + $0x10] sm:$0xff]  ;;  %v1350_v50 = vld [vmem:[#allocation9 + $0x18] sm:$0xf]  ;;  %vm7439_vm3 = vmpackc.low %vm1424_vm0, %vm6642_vm1 }
 0x32b   : > { %v5925_v52 = vpack.c.bf16 %v1350_v50, %v1349_v49  ;;  %v7455_v53 = vld [vmem:[#allocation2 + $0x69] sm:$0xff]  ;;  %v7457_v54 = vld [vmem:[#allocation2 + $0x61] sm:$0xff]  ;;  %v7469_v56 = vld [vmem:[#allocation2 + $0x79] sm:$0xff] }
 0x32c   : > { %v7467_v55 = vld [vmem:[#allocation2 + $0x81] sm:$0xff]  ;;  %v7479_v57 = vld [vmem:[#allocation2 + $0x99] sm:$0xff]  ;;  %v7481_v58 = vld [vmem:[#allocation2 + $0x91] sm:$0xff] }
 0x32d   : > { %1230 = vrot.lane.b32.xlu1 %v7422_v45, %s6640_s2  ;;  %1156 = vrot.lane.b32.xlu0 %v7424_v46, %s6641_s9  ;;  %v7491_v59 = vld [vmem:[#allocation2 + $0xb1] sm:$0xff]  ;;  %v7493_v60 = vld [vmem:[#allocation2 + $0xa9] sm:$0xff]  ;;  %v7505_v62 = vld [vmem:[#allocation2 + $0xc1] sm:$0xff] }
 0x32e   : > { %5927 = vmatprep.subr.msk.bf16.mxu0 %vm7439_vm3, %v5925_v52  ;;  %v7503_v61 = vld [vmem:[#allocation2 + $0xc9] sm:$0xff]  ;;  %v7515_v63 = vld [vmem:[#allocation2 + $0xe1] sm:$0xff]  ;;  %v7517_v0 = vld [vmem:[#allocation2 + $0xd9] sm:$0xff] }
 0x32f   : > { %5930 = vmatpush3.bf16.msk.msra.mxu0 %vm7439_vm3, %v5925_v52  ;;  %v7527_v8 = vld [vmem:[#allocation2 + $0xf9] sm:$0xff]  ;;  %v7529_v11 = vld [vmem:[#allocation2 + $0xf1] sm:$0xff]  ;;  %v7541_v5 = vld [vmem:[#allocation2 + $0x109] sm:$0xff] }
 0x330   : > { %v7539_v4 = vld [vmem:[#allocation2 + $0x111] sm:$0xff]  ;;  %v1127_v12 = vld [vmem:[#allocation2 + $0x129] sm:$0xff]  ;;  %v1126_v14 = vld [vmem:[#allocation2 + $0x121] sm:$0xff] }
 0x331   : > { %1160 = vrot.lane.b32.xlu1 %v7422_v45, %s6641_s9  ;;  %1158 = vrot.lane.b32.xlu0 %v7414_v37, %s6641_s9  ;;  %v1100_v19 = vld [vmem:[#allocation9] sm:$0xff]  ;;  %v1101_v6 = vld [vmem:[#allocation9 + $0x8] sm:$0xf]  ;;  %v1129_v20 = vld [vmem:[#allocation2 + $0x141] sm:$0xff] }
 0x332   : > { %v5931_v13 = vpack.c.bf16 %v1101_v6, %v1100_v19  ;;  %v1128_v21 = vld [vmem:[#allocation2 + $0x139] sm:$0xff]  ;;  %v7569_v28 = vld [vmem:[#allocation2 + $0x30] sm:$0xff]  ;;  %v7581_v25 = vld [vmem:[#allocation2 + $0x48] sm:$0xff] }
 0x333   : > { %v7559_v22 = vld [vmem:[#allocation2 + $0x20] sm:$0xff]  ;;  %v7561_v15 = vld [vmem:[#allocation2 + $0x18] sm:$0xff]  ;;  %v7579_v16 = vld [vmem:[#allocation2 + $0x50] sm:$0xff] }
 0x334   : > { %5933 = vmatprep.subr.msk.bf16.mxu0 %vm7439_vm3, %v5931_v13  ;;  %v7567_v27 = vld [vmem:[#allocation2 + $0x38] sm:$0xff]  ;;  %v1102_v31 = vld [vmem:[#allocation2 + $0x1] sm:$0xff]  ;;  %v1103_v43 = vld [vmem:[#allocation2 + $0x9] sm:$0xff] }
 0x335   : > { %1234 = vrot.lane.b32.xlu1 %v7434_v47, %s6640_s2  ;;  %1232 = vrot.lane.b32.xlu0 %v7436_v48, %s6640_s2  ;;  %v7591_v33 = vld [vmem:[#allocation2 + $0x68] sm:$0xff]  ;;  %v7593_v38 = vld [vmem:[#allocation2 + $0x60] sm:$0xff] }
 0x339   : > { %1164 = vrot.lane.b32.xlu1 %v7434_v47, %s6641_s9  ;;  %1162 = vrot.lane.b32.xlu0 %v7436_v48, %s6641_s9 }
 0x33d   : > { %1238 = vrot.lane.b32.xlu1 %v7455_v53, %s6640_s2  ;;  %1236 = vrot.lane.b32.xlu0 %v7457_v54, %s6640_s2 }
 0x341   : > { %1168 = vrot.lane.b32.xlu1 %v7455_v53, %s6641_s9  ;;  %1166 = vrot.lane.b32.xlu0 %v7457_v54, %s6641_s9 }
 0x345   : > { %1242 = vrot.lane.b32.xlu1 %v7467_v55, %s6640_s2  ;;  %1240 = vrot.lane.b32.xlu0 %v7469_v56, %s6640_s2 }
 0x349   : > { %1172 = vrot.lane.b32.xlu1 %v7467_v55, %s6641_s9  ;;  %1170 = vrot.lane.b32.xlu0 %v7469_v56, %s6641_s9 }
 0x34d   : > { %1246 = vrot.lane.b32.xlu1 %v7479_v57, %s6640_s2  ;;  %1244 = vrot.lane.b32.xlu0 %v7481_v58, %s6640_s2 }
 0x351   : > { %1176 = vrot.lane.b32.xlu1 %v7479_v57, %s6641_s9  ;;  %1174 = vrot.lane.b32.xlu0 %v7481_v58, %s6641_s9 }
 0x355   : > { %1250 = vrot.lane.b32.xlu1 %v7491_v59, %s6640_s2  ;;  %1248 = vrot.lane.b32.xlu0 %v7493_v60, %s6640_s2 }
 0x359   : > { %1180 = vrot.lane.b32.xlu1 %v7491_v59, %s6641_s9  ;;  %1178 = vrot.lane.b32.xlu0 %v7493_v60, %s6641_s9 }
 0x35d   : > { %1254 = vrot.lane.b32.xlu1 %v7503_v61, %s6640_s2  ;;  %1252 = vrot.lane.b32.xlu0 %v7505_v62, %s6640_s2 }
 0x361   : > { %1184 = vrot.lane.b32.xlu1 %v7503_v61, %s6641_s9  ;;  %1182 = vrot.lane.b32.xlu0 %v7505_v62, %s6641_s9 }
 0x365   : > { %1258 = vrot.lane.b32.xlu1 %v7515_v63, %s6640_s2  ;;  %1256 = vrot.lane.b32.xlu0 %v7517_v0, %s6640_s2 }
 0x369   : > { %1188 = vrot.lane.b32.xlu1 %v7515_v63, %s6641_s9  ;;  %1186 = vrot.lane.b32.xlu0 %v7517_v0, %s6641_s9 }
 0x36d   : > { %1262 = vrot.lane.b32.xlu1 %v7527_v8, %s6640_s2  ;;  %1260 = vrot.lane.b32.xlu0 %v7529_v11, %s6640_s2 }
 0x371   : > { %1192 = vrot.lane.b32.xlu1 %v7527_v8, %s6641_s9  ;;  %1190 = vrot.lane.b32.xlu0 %v7529_v11, %s6641_s9 }
 0x375   : > { %1266 = vrot.lane.b32.xlu1 %v7539_v4, %s6640_s2  ;;  %1264 = vrot.lane.b32.xlu0 %v7541_v5, %s6640_s2 }
 0x379   : > { %1196 = vrot.lane.b32.xlu1 %v7539_v4, %s6641_s9  ;;  %1194 = vrot.lane.b32.xlu0 %v7541_v5, %s6641_s9 }
 0x37d   : > { %1270 = vrot.lane.b32.xlu1 %v1127_v12, %s6640_s2  ;;  %1268 = vrot.lane.b32.xlu0 %v1126_v14, %s6640_s2 }
 0x381   : > { %1200 = vrot.lane.b32.xlu1 %v1127_v12, %s6641_s9  ;;  %1198 = vrot.lane.b32.xlu0 %v1126_v14, %s6641_s9  ;;  %v7609_v12 = vld [vmem:[#allocation2 + $0x80] sm:$0xff]  ;;  %v7611_v14 = vld [vmem:[#allocation2 + $0x78] sm:$0xff] }
 0x385   : > { %1274 = vrot.lane.b32.xlu1 %v1129_v20, %s6640_s2  ;;  %1272 = vrot.lane.b32.xlu0 %v1128_v21, %s6640_s2 }
 0x389   : > { %907 = vrot.lane.b32.xlu1 %v7559_v22, %s6641_s9  ;;  %905 = vrot.lane.b32.xlu0 %v7561_v15, %s6641_s9 }
 0x38d   : > { %981 = vrot.lane.b32.xlu1 %v7567_v27, %s6640_s2  ;;  %979 = vrot.lane.b32.xlu0 %v7569_v28, %s6640_s2 }
 0x391   : > { %911 = vrot.lane.b32.xlu1 %v7567_v27, %s6641_s9  ;;  %909 = vrot.lane.b32.xlu0 %v7569_v28, %s6641_s9 }
 0x395   : > { %985 = vrot.lane.b32.xlu1 %v7579_v16, %s6640_s2  ;;  %983 = vrot.lane.b32.xlu0 %v7581_v25, %s6640_s2 }
 0x399   : > { %915 = vrot.lane.b32.xlu1 %v7579_v16, %s6641_s9  ;;  %913 = vrot.lane.b32.xlu0 %v7581_v25, %s6641_s9 }
 0x39b   : > { %v1229_v26 = vpop.permute.xlu1 %1228  ;;  %v1155_v32 = vpop.permute.xlu0 %1154 }
 0x39c   : > { %v1300_v39 = vsel %vm481_vm2, %v1102_v31, %v1155_v32 }
 0x39d   : > { %989 = vrot.lane.b32.xlu1 %v7591_v33, %s6640_s2  ;;  %987 = vrot.lane.b32.xlu0 %v7593_v38, %s6640_s2  ;;  %v1324_v40 = vsel %vm1075_vm4, %v1300_v39, %v1229_v26 }
 0x39e   : > { %5671 = vmatprep.mubr.msk.f32.mxu0 %vm1351_vm5, %v1324_v40  ;;  %v7633_v40 = vld [vmem:[#allocation2 + $0x90] sm:$0xff] }
 0x39f   : > { %v1231_v34 = vpop.permute.xlu1 %1230  ;;  %v1157_v49 = vpop.permute.xlu0 %1156 }
 0x3a0   : > { %v1301_v50 = vsel %vm481_vm2, %v1103_v43, %v1157_v49 }
 0x3a1   : > { %919 = vrot.lane.b32.xlu1 %v7591_v33, %s6641_s9  ;;  %917 = vrot.lane.b32.xlu0 %v7593_v38, %s6641_s9  ;;  %v1325_v52 = vsel %vm1075_vm4, %v1301_v50, %v1231_v34 }
 0x3a2   : > { %5672 = vmatmul.mubr.msk.f32.vlgmr.msra.gmra.mrb[0].mxu0 %vm1351_vm5, %v1325_v52 }
 0x3a3   : > { %v1161_v19 = vpop.permute.xlu1 %1160  ;;  %v1159_v6 = vpop.permute.xlu0 %1158  ;;  %5936 = vmatpush3.bf16.msk.msra.mxu0 %vm7439_vm3, %v5931_v13 }
 0x3a4   : > { %v1303_v20 = vsel %vm481_vm2, %v7424_v46, %v1161_v19  ;;  %v1302_v21 = vsel %vm481_vm2, %v7416_v44, %v1159_v6  ;;  %v7631_v46 = vld [vmem:[#allocation2 + $0x98] sm:$0xff] }
 0x3a5   : > { %993 = vrot.lane.b32.xlu1 %v7609_v12, %s6640_s2  ;;  %991 = vrot.lane.b32.xlu0 %v7611_v14, %s6640_s2 }
 0x3a7   : > { %v1235_v31 = vpop.permute.xlu1 %1234  ;;  %v1233_v26 = vpop.permute.xlu0 %1232 }
 0x3a8   : > { %v1327_v32 = vsel %vm1075_vm4, %v1303_v20, %v1235_v31  ;;  %v1326_v39 = vsel %vm1075_vm4, %v1302_v21, %v1233_v26  ;;  %v7653_v20 = vld [vmem:[#allocation2 + $0xa8] sm:$0xff] }
 0x3a9   : > { %5674 = vmatprep.mubr.msk.f32.mxu0 %vm1351_vm5, %v1326_v39  ;;  %923 = vrot.lane.b32.xlu1 %v7609_v12, %s6641_s9 }
 0x3aa   : > { %921 = vrot.lane.b32.xlu0 %v7611_v14, %s6641_s9  ;;  %5675 = vmatmul.mubr.msk.f32.gmra.mrb[2].mxu0 %vm1351_vm5, %v1327_v32 }
 0x3ab   : > { %v1165_v13 = vpop.permute.xlu1 %1164  ;;  %v1163_v44 = vpop.permute.xlu0 %1162 }
 0x3ac   : > { %v1305_v43 = vsel %vm481_vm2, %v7422_v45, %v1165_v13  ;;  %v1304_v34 = vsel %vm481_vm2, %v7414_v37, %v1163_v44  ;;  %v7651_v45 = vld [vmem:[#allocation2 + $0xb0] sm:$0xff] }
 0x3ad   : > { %997 = vrot.lane.b32.xlu1 %v7631_v46, %s6640_s2 }
 0x3ae   : > { %995 = vrot.lane.b32.xlu0 %v7633_v40, %s6640_s2 }
 0x3af   : > { %v1239_v49 = vpop.permute.xlu1 %1238  ;;  %v1237_v50 = vpop.permute.xlu0 %1236 }
 0x3b0   : > { %v1329_v52 = vsel %vm1075_vm4, %v1305_v43, %v1239_v49  ;;  %v1328_v19 = vsel %vm1075_vm4, %v1304_v34, %v1237_v50  ;;  %v7673_v43 = vld [vmem:[#allocation2 + $0xc0] sm:$0xff] }
 0x3b1   : > { %5677 = vmatprep.mubr.msk.f32.mxu0 %vm1351_vm5, %v1328_v19  ;;  %927 = vrot.lane.b32.xlu1 %v7631_v46, %s6641_s9 }
 0x3b2   : > { %925 = vrot.lane.b32.xlu0 %v7633_v40, %s6641_s9  ;;  %5678 = vmatmul.mubr.msk.f32.gmra.mrb[4].mxu0 %vm1351_vm5, %v1329_v52 }
 0x3b3   : > { %v1169_v6 = vpop.permute.xlu1 %1168  ;;  %v1167_v37 = vpop.permute.xlu0 %1166 }
 0x3b4   : > { %v1307_v21 = vsel %vm481_vm2, %v7434_v47, %v1169_v6  ;;  %v1306_v31 = vsel %vm481_vm2, %v7436_v48, %v1167_v37  ;;  %v7671_v47 = vld [vmem:[#allocation2 + $0xc8] sm:$0xff] }
 0x3b5   : > { %1001 = vrot.lane.b32.xlu1 %v7651_v45, %s6640_s2 }
 0x3b6   : > { %999 = vrot.lane.b32.xlu0 %v7653_v20, %s6640_s2 }
 0x3b7   : > { %v1243_v26 = vpop.permute.xlu1 %1242  ;;  %v1241_v32 = vpop.permute.xlu0 %1240 }
 0x3b8   : > { %v1331_v39 = vsel %vm1075_vm4, %v1307_v21, %v1243_v26  ;;  %v1330_v13 = vsel %vm1075_vm4, %v1306_v31, %v1241_v32  ;;  %v7693_v21 = vld [vmem:[#allocation2 + $0xd8] sm:$0xff] }
 0x3b9   : > { %5680 = vmatprep.mubr.msk.f32.mxu0 %vm1351_vm5, %v1330_v13  ;;  %931 = vrot.lane.b32.xlu1 %v7651_v45, %s6641_s9 }
 0x3ba   : > { %929 = vrot.lane.b32.xlu0 %v7653_v20, %s6641_s9  ;;  %5681 = vmatmul.mubr.msk.f32.gmra.mrb[6].mxu0 %vm1351_vm5, %v1331_v39 }
 0x3bb   : > { %v1173_v44 = vpop.permute.xlu1 %1172  ;;  %v1171_v48 = vpop.permute.xlu0 %1170 }
 0x3bc   : > { %v1309_v34 = vsel %vm481_vm2, %v7455_v53, %v1173_v44  ;;  %v1308_v49 = vsel %vm481_vm2, %v7457_v54, %v1171_v48  ;;  %v7691_v53 = vld [vmem:[#allocation2 + $0xe0] sm:$0xff] }
 0x3bd   : > { %1005 = vrot.lane.b32.xlu1 %v7671_v47, %s6640_s2 }
 0x3be   : > { %1003 = vrot.lane.b32.xlu0 %v7673_v43, %s6640_s2 }
 0x3bf   : > { %v1247_v50 = vpop.permute.xlu1 %1246  ;;  %v1245_v52 = vpop.permute.xlu0 %1244 }
 0x3c0   : > { %v1333_v19 = vsel %vm1075_vm4, %v1309_v34, %v1247_v50  ;;  %v1332_v6 = vsel %vm1075_vm4, %v1308_v49, %v1245_v52  ;;  %v7713_v34 = vld [vmem:[#allocation2 + $0xf0] sm:$0xff] }
 0x3c1   : > { %5683 = vmatprep.mubr.msk.f32.mxu0 %vm1351_vm5, %v1332_v6  ;;  %935 = vrot.lane.b32.xlu1 %v7671_v47, %s6641_s9 }
 0x3c2   : > { %933 = vrot.lane.b32.xlu0 %v7673_v43, %s6641_s9  ;;  %5684 = vmatmul.mubr.msk.f32.gmra.mrb[8].mxu0 %vm1351_vm5, %v1333_v19 }
 0x3c3   : > { %v1177_v37 = vpop.permute.xlu1 %1176  ;;  %v1175_v54 = vpop.permute.xlu0 %1174 }
 0x3c4   : > { %v1311_v31 = vsel %vm481_vm2, %v7467_v55, %v1177_v37  ;;  %v1310_v26 = vsel %vm481_vm2, %v7469_v56, %v1175_v54  ;;  %v7711_v55 = vld [vmem:[#allocation2 + $0xf8] sm:$0xff] }
 0x3c5   : > { %1009 = vrot.lane.b32.xlu1 %v7691_v53, %s6640_s2 }
 0x3c6   : > { %1007 = vrot.lane.b32.xlu0 %v7693_v21, %s6640_s2 }
 0x3c7   : > { %v1251_v32 = vpop.permute.xlu1 %1250  ;;  %v1249_v39 = vpop.permute.xlu0 %1248 }
 0x3c8   : > { %v1335_v13 = vsel %vm1075_vm4, %v1311_v31, %v1251_v32  ;;  %v1334_v44 = vsel %vm1075_vm4, %v1310_v26, %v1249_v39  ;;  %v7733_v31 = vld [vmem:[#allocation2 + $0x108] sm:$0xff] }
 0x3c9   : > { %5686 = vmatprep.mubr.msk.f32.mxu0 %vm1351_vm5, %v1334_v44  ;;  %939 = vrot.lane.b32.xlu1 %v7691_v53, %s6641_s9 }
 0x3ca   : > { %937 = vrot.lane.b32.xlu0 %v7693_v21, %s6641_s9  ;;  %5687 = vmatmul.mubr.msk.f32.gmra.mrb[10].mxu0 %vm1351_vm5, %v1335_v13 }
 0x3cb   : > { %v1181_v48 = vpop.permute.xlu1 %1180  ;;  %v1179_v56 = vpop.permute.xlu0 %1178 }
 0x3cc   : > { %v1313_v49 = vsel %vm481_vm2, %v7479_v57, %v1181_v48  ;;  %v1312_v50 = vsel %vm481_vm2, %v7481_v58, %v1179_v56  ;;  %v7731_v57 = vld [vmem:[#allocation2 + $0x110] sm:$0xff] }
 0x3cd   : > { %1013 = vrot.lane.b32.xlu1 %v7711_v55, %s6640_s2  ;;  %v2120_v56 = vld [vmem:[#allocation9 + $0x20] sm:$0xff] }
 0x3ce   : > { %1011 = vrot.lane.b32.xlu0 %v7713_v34, %s6640_s2 }
 0x3cf   : > { %v1255_v52 = vpop.permute.xlu1 %1254  ;;  %v1253_v19 = vpop.permute.xlu0 %1252 }
 0x3d0   : > { %v1337_v6 = vsel %vm1075_vm4, %v1313_v49, %v1255_v52  ;;  %v1336_v37 = vsel %vm1075_vm4, %v1312_v50, %v1253_v19  ;;  %v2121_v49 = vld [vmem:[#allocation9 + $0x28] sm:$0xf]  ;;  %v877_v52 = vld [vmem:[#allocation2 + $0x120] sm:$0xff] }
 0x3d1   : > { %5689 = vmatprep.mubr.msk.f32.mxu0 %vm1351_vm5, %v1336_v37  ;;  %943 = vrot.lane.b32.xlu1 %v7711_v55, %s6641_s9  ;;  %v7751_v19 = vpack.c.bf16 %v2121_v49, %v2120_v56 }
 0x3d2   : > { %941 = vrot.lane.b32.xlu0 %v7713_v34, %s6641_s9  ;;  %5690 = vmatmul.mubr.msk.f32.gmra.mrb[12].mxu0 %vm1351_vm5, %v1337_v6 }
 0x3d3   : > { %v1185_v54 = vpop.permute.xlu1 %1184  ;;  %v1183_v58 = vpop.permute.xlu0 %1182  ;;  %5939 = vmatprep.subr.msk.bf16.mxu0 %vm7439_vm3, %v7751_v19 }
 0x3d4   : > { %v1315_v26 = vsel %vm481_vm2, %v7491_v59, %v1185_v54  ;;  %v1314_v32 = vsel %vm481_vm2, %v7493_v60, %v1183_v58  ;;  %v878_v59 = vld [vmem:[#allocation2 + $0x128] sm:$0xff] }
 0x3d5   : > { %1017 = vrot.lane.b32.xlu1 %v7731_v57, %s6640_s2 }
 0x3d6   : > { %1015 = vrot.lane.b32.xlu0 %v7733_v31, %s6640_s2 }
 0x3d7   : > { %v1259_v39 = vpop.permute.xlu1 %1258  ;;  %v1257_v13 = vpop.permute.xlu0 %1256 }
 0x3d8   : > { %v1339_v44 = vsel %vm1075_vm4, %v1315_v26, %v1259_v39  ;;  %v1338_v48 = vsel %vm1075_vm4, %v1314_v32, %v1257_v13  ;;  %v880_v39 = vld [vmem:[#allocation2 + $0x140] sm:$0xff] }
 0x3d9   : > { %5692 = vmatprep.mubr.msk.f32.mxu0 %vm1351_vm5, %v1338_v48  ;;  %947 = vrot.lane.b32.xlu1 %v7731_v57, %s6641_s9 }
 0x3da   : > { %945 = vrot.lane.b32.xlu0 %v7733_v31, %s6641_s9  ;;  %5693 = vmatmul.mubr.msk.f32.gmra.mrb[14].mxu0 %vm1351_vm5, %v1339_v44  ;;  %v879_v44 = vld [vmem:[#allocation2 + $0x138] sm:$0xff] }
 0x3db   : > { %v1189_v60 = vpop.permute.xlu1 %1188  ;;  %v1187_v50 = vpop.permute.xlu0 %1186 }
 0x3dc   : > { %v1317_v6 = vsel %vm481_vm2, %v7503_v61, %v1189_v60  ;;  %v1316_v37 = vsel %vm481_vm2, %v7505_v62, %v1187_v50  ;;  %v7770_v62 = vld [vmem:[#allocation2 + $0x22] sm:$0xff]  ;;  %v7776_v60 = vld [vmem:[#allocation2 + $0x1a] sm:$0xff] }
 0x3dd   : > { %1021 = vrot.lane.b32.xlu1 %v878_v59, %s6640_s2 }
 0x3de   : > { %1019 = vrot.lane.b32.xlu0 %v877_v52, %s6640_s2 }
 0x3df   : > { %v1263_v54 = vpop.permute.xlu1 %1262  ;;  %v1261_v58 = vpop.permute.xlu0 %1260 }
 0x3e0   : > { %v1341_v26 = vsel %vm1075_vm4, %v1317_v6, %v1263_v54  ;;  %v1340_v32 = vsel %vm1075_vm4, %v1316_v37, %v1261_v58  ;;  %v7788_v37 = vld [vmem:[#allocation2 + $0x32] sm:$0xff] }
 0x3e1   : > { %5695 = vmatprep.mubr.msk.f32.mxu0 %vm1351_vm5, %v1340_v32  ;;  %951 = vrot.lane.b32.xlu1 %v878_v59, %s6641_s9 }
 0x3e2   : > { %949 = vrot.lane.b32.xlu0 %v877_v52, %s6641_s9  ;;  %5696 = vmatmul.mubr.msk.f32.gmra.mrb[16].mxu0 %vm1351_vm5, %v1341_v26 }
 0x3e3   : > { %v1193_v13 = vpop.permute.xlu1 %1192  ;;  %v1191_v61 = vpop.permute.xlu0 %1190 }
 0x3e4   : > { %v1319_v48 = vsel %vm481_vm2, %v7515_v63, %v1193_v13  ;;  %v1318_v59 = vsel %vm481_vm2, %v7517_v0, %v1191_v61  ;;  %v7786_v63 = vld [vmem:[#allocation2 + $0x3a] sm:$0xff] }
 0x3e5   : > { %1025 = vrot.lane.b32.xlu1 %v880_v39, %s6640_s2 }
 0x3e6   : > { %1023 = vrot.lane.b32.xlu0 %v879_v44, %s6640_s2  ;;  %v7808_v44 = vld [vmem:[#allocation2 + $0x4a] sm:$0xff] }
 0x3e7   : > { %v1267_v56 = vpop.permute.xlu1 %1266  ;;  %v1265_v49 = vpop.permute.xlu0 %1264 }
 0x3e8   : > { %v1343_v50 = vsel %vm1075_vm4, %v1319_v48, %v1267_v56  ;;  %v1342_v52 = vsel %vm1075_vm4, %v1318_v59, %v1265_v49 }
 0x3e9   : > { %5698 = vmatprep.mubr.msk.f32.mxu0 %vm1351_vm5, %v1342_v52  ;;  %1927 = vrot.lane.b32.xlu1 %v7770_v62, %s6641_s9 }
 0x3ea   : > { %1925 = vrot.lane.b32.xlu0 %v7776_v60, %s6641_s9  ;;  %5699 = vmatmul.mubr.msk.f32.gmra.mrb[18].mxu0 %vm1351_vm5, %v1343_v50 }
 0x3eb   : > { %v1197_v0 = vpop.permute.xlu1 %1196  ;;  %v1195_v6 = vpop.permute.xlu0 %1194 }
 0x3ec   : > { %v1321_v54 = vsel %vm481_vm2, %v7527_v8, %v1197_v0  ;;  %v1320_v58 = vsel %vm481_vm2, %v7529_v11, %v1195_v6  ;;  %v7806_v8 = vld [vmem:[#allocation2 + $0x52] sm:$0xff]  ;;  %v7828_v6 = vld [vmem:[#allocation2 + $0x62] sm:$0xff] }
 0x3ed   : > { %2001 = vrot.lane.b32.xlu1 %v7786_v63, %s6640_s2 }
 0x3ee   : > { %1999 = vrot.lane.b32.xlu0 %v7788_v37, %s6640_s2 }
 0x3ef   : > { %v1271_v26 = vpop.permute.xlu1 %1270  ;;  %v1269_v32 = vpop.permute.xlu0 %1268 }
 0x3f0   : > { %v1345_v39 = vsel %vm1075_vm4, %v1321_v54, %v1271_v26  ;;  %v1344_v13 = vsel %vm1075_vm4, %v1320_v58, %v1269_v32  ;;  %v854_v54 = vld [vmem:[#allocation2 + $0x8] sm:$0xff]  ;;  %v853_v58 = vld [vmem:[#allocation2] sm:$0xff] }
 0x3f1   : > { %5701 = vmatprep.mubr.msk.f32.mxu0 %vm1351_vm5, %v1344_v13  ;;  %1931 = vrot.lane.b32.xlu1 %v7786_v63, %s6641_s9 }
 0x3f2   : > { %1929 = vrot.lane.b32.xlu0 %v7788_v37, %s6641_s9  ;;  %5702 = vmatmul.mubr.msk.f32.gmra.mrb[20].mxu0 %vm1351_vm5, %v1345_v39 }
 0x3f3   : > { %v1201_v61 = vpop.permute.xlu1 %1200  ;;  %v1199_v11 = vpop.permute.xlu0 %1198 }
 0x3f4   : > { %v1323_v48 = vsel %vm481_vm2, %v7539_v4, %v1201_v61  ;;  %v1322_v59 = vsel %vm481_vm2, %v7541_v5, %v1199_v11  ;;  %v7826_v4 = vld [vmem:[#allocation2 + $0x6a] sm:$0xff] }
 0x3f5   : > { %2005 = vrot.lane.b32.xlu1 %v7806_v8, %s6640_s2 }
 0x3f6   : > { %2003 = vrot.lane.b32.xlu0 %v7808_v44, %s6640_s2 }
 0x3f7   : > { %v1275_v56 = vpop.permute.xlu1 %1274  ;;  %v1273_v49 = vpop.permute.xlu0 %1272 }
 0x3f8   : > { %v1347_v50 = vsel %vm1075_vm4, %v1323_v48, %v1275_v56  ;;  %v1346_v52 = vsel %vm1075_vm4, %v1322_v59, %v1273_v49  ;;  %v7844_v48 = vld [vmem:[#allocation2 + $0x82] sm:$0xff]  ;;  %v7846_v49 = vld [vmem:[#allocation2 + $0x7a] sm:$0xff] }
 0x3f9   : > { %5704 = vmatprep.mubr.msk.f32.mxu0 %vm1351_vm5, %v1346_v52  ;;  %1935 = vrot.lane.b32.xlu1 %v7806_v8, %s6641_s9 }
 0x3fa   : > { %1933 = vrot.lane.b32.xlu0 %v7808_v44, %s6641_s9  ;;  %5705 = vmatmul.mubr.msk.f32.gmra.mrb[22].mxu0 %vm1351_vm5, %v1347_v50 }
 0x3fb   : > { %v908_v0 = vpop.permute.xlu1 %907  ;;  %v906_v5 = vpop.permute.xlu0 %905 }
 0x3fc   : > { %v1052_v26 = vsel %vm481_vm2, %v854_v54, %v908_v0  ;;  %v1051_v32 = vsel %vm481_vm2, %v853_v58, %v906_v5 }
 0x3fd   : > { %2009 = vrot.lane.b32.xlu1 %v7826_v4, %s6640_s2 }
 0x3fe   : > { %2007 = vrot.lane.b32.xlu0 %v7828_v6, %s6640_s2 }
 0x3ff   : > { %v982_v39 = vpop.permute.xlu1 %981  ;;  %v980_v13 = vpop.permute.xlu0 %979 }
 0x400   : > { %v1077_v61 = vsel %vm1075_vm4, %v1052_v26, %v982_v39  ;;  %v1076_v11 = vsel %vm1075_vm4, %v1051_v32, %v980_v13  ;;  %v7869_v26 = vld [vmem:[#allocation2 + $0x92] sm:$0xff] }
 0x401   : > { %1939 = vrot.lane.b32.xlu1 %v7826_v4, %s6641_s9  ;;  %5711 = vmatprep.mubr.msk.f32.mxu0 %vm1351_vm5, %v1076_v11 }
 0x402   : > { %1937 = vrot.lane.b32.xlu0 %v7828_v6, %s6641_s9  ;;  %5712 = vmatmul.mubr.msk.f32.vlgmr.msra.gmra.mrb[0].mxu0 %vm1351_vm5, %v1077_v61 }
 0x403   : > { %v912_v59 = vpop.permute.xlu1 %911  ;;  %v910_v56 = vpop.permute.xlu0 %909  ;;  %5942 = vmatpush3.bf16.msk.msra.mxu0 %vm7439_vm3, %v7751_v19 }
 0x404   : > { %v1054_v50 = vsel %vm481_vm2, %v7559_v22, %v912_v59  ;;  %v1053_v52 = vsel %vm481_vm2, %v7561_v15, %v910_v56  ;;  %v7867_v22 = vld [vmem:[#allocation2 + $0x9a] sm:$0xff] }
 0x405   : > { %2013 = vrot.lane.b32.xlu1 %v7844_v48, %s6640_s2 }
 0x406   : > { %2011 = vrot.lane.b32.xlu0 %v7846_v49, %s6640_s2 }
 0x407   : > { %v986_v0 = vpop.permute.xlu1 %985  ;;  %v984_v5 = vpop.permute.xlu0 %983 }
 0x408   : > { %v1079_v54 = vsel %vm1075_vm4, %v1054_v50, %v986_v0  ;;  %v1078_v58 = vsel %vm1075_vm4, %v1053_v52, %v984_v5  ;;  %v7889_v50 = vld [vmem:[#allocation2 + $0xaa] sm:$0xff] }
 0x409   : > { %1943 = vrot.lane.b32.xlu1 %v7844_v48, %s6641_s9  ;;  %5714 = vmatprep.mubr.msk.f32.mxu0 %vm1351_vm5, %v1078_v58 }
 0x40a   : > { %1941 = vrot.lane.b32.xlu0 %v7846_v49, %s6641_s9  ;;  %5715 = vmatmul.mubr.msk.f32.gmra.mrb[2].mxu0 %vm1351_vm5, %v1079_v54 }
 0x40b   : > { %v916_v19 = vpop.permute.xlu1 %915  ;;  %v914_v15 = vpop.permute.xlu0 %913 }
 0x40c   : > { %v1056_v32 = vsel %vm481_vm2, %v7567_v27, %v916_v19  ;;  %v1055_v39 = vsel %vm481_vm2, %v7569_v28, %v914_v15  ;;  %v7887_v27 = vld [vmem:[#allocation2 + $0xb2] sm:$0xff] }
 0x40d   : > { %2017 = vrot.lane.b32.xlu1 %v7867_v22, %s6640_s2 }
 0x40e   : > { %2015 = vrot.lane.b32.xlu0 %v7869_v26, %s6640_s2 }
 0x40f   : > { %v990_v13 = vpop.permute.xlu1 %989  ;;  %v988_v61 = vpop.permute.xlu0 %987 }
 0x410   : > { %v1081_v11 = vsel %vm1075_vm4, %v1056_v32, %v990_v13  ;;  %v1080_v59 = vsel %vm1075_vm4, %v1055_v39, %v988_v61 }
 0x411   : > { %1947 = vrot.lane.b32.xlu1 %v7867_v22, %s6641_s9  ;;  %5717 = vmatprep.mubr.msk.f32.mxu0 %vm1351_vm5, %v1080_v59 }
 0x412   : > { %1945 = vrot.lane.b32.xlu0 %v7869_v26, %s6641_s9  ;;  %5718 = vmatmul.mubr.msk.f32.gmra.mrb[4].mxu0 %vm1351_vm5, %v1081_v11 }
 0x413   : > { %v920_v56 = vpop.permute.xlu1 %919  ;;  %v918_v28 = vpop.permute.xlu0 %917 }
 0x414   : > { %v1058_v52 = vsel %vm481_vm2, %v7579_v16, %v920_v56  ;;  %v1057_v0 = vsel %vm481_vm2, %v7581_v25, %v918_v28  ;;  %v7907_v16 = vld [vmem:[#allocation2 + $0xca] sm:$0xff]  ;;  %v7909_v25 = vld [vmem:[#allocation2 + $0xc2] sm:$0xff] }
 0x415   : > { %2021 = vrot.lane.b32.xlu1 %v7887_v27, %s6640_s2  ;;  %v7926_v28 = vld [vmem:[#allocation2 + $0xe2] sm:$0xff] }
 0x416   : > { %2019 = vrot.lane.b32.xlu0 %v7889_v50, %s6640_s2 }
 0x417   : > { %v994_v5 = vpop.permute.xlu1 %993  ;;  %v992_v54 = vpop.permute.xlu0 %991 }
 0x418   : > { %v1083_v58 = vsel %vm1075_vm4, %v1058_v52, %v994_v5  ;;  %v1082_v19 = vsel %vm1075_vm4, %v1057_v0, %v992_v54  ;;  %v7929_v52 = vld [vmem:[#allocation2 + $0xda] sm:$0xff] }
 0x419   : > { %1951 = vrot.lane.b32.xlu1 %v7887_v27, %s6641_s9  ;;  %5720 = vmatprep.mubr.msk.f32.mxu0 %vm1351_vm5, %v1082_v19 }
 0x41a   : > { %1949 = vrot.lane.b32.xlu0 %v7889_v50, %s6641_s9  ;;  %5721 = vmatmul.mubr.msk.f32.gmra.mrb[6].mxu0 %vm1351_vm5, %v1083_v58 }
 0x41b   : > { %v924_v15 = vpop.permute.xlu1 %923 }
 0x41c   : > { %v922_v32 = vpop.permute.xlu0 %921  ;;  %v1060_v39 = vsel %vm481_vm2, %v7591_v33, %v924_v15 }
 0x41d   : > { %2025 = vrot.lane.b32.xlu1 %v7907_v16, %s6640_s2  ;;  %v1059_v61 = vsel %vm481_vm2, %v7593_v38, %v922_v32  ;;  %v7946_v32 = vld [vmem:[#allocation2 + $0xfa] sm:$0xff] }
 0x41e   : > { %2023 = vrot.lane.b32.xlu0 %v7909_v25, %s6640_s2 }
 0x41f   : > { %v998_v13 = vpop.permute.xlu1 %997 }
 0x420   : > { %v1085_v11 = vsel %vm1075_vm4, %v1060_v39, %v998_v13  ;;  %v996_v59 = vpop.permute.xlu0 %995  ;;  %v7949_v39 = vld [vmem:[#allocation2 + $0xf2] sm:$0xff] }
 0x421   : > { %v1084_v56 = vsel %vm1075_vm4, %v1059_v61, %v996_v59  ;;  %1955 = vrot.lane.b32.xlu1 %v7907_v16, %s6641_s9 }
 0x422   : > { %1953 = vrot.lane.b32.xlu0 %v7909_v25, %s6641_s9  ;;  %5723 = vmatprep.mubr.msk.f32.mxu0 %vm1351_vm5, %v1084_v56 }
 0x423   : > { %5724 = vmatmul.mubr.msk.f32.gmra.mrb[8].mxu0 %vm1351_vm5, %v1085_v11  ;;  %v928_v33 = vpop.permute.xlu1 %927 }
 0x424   : > { %v926_v38 = vpop.permute.xlu0 %925  ;;  %v1062_v0 = vsel %vm481_vm2, %v7609_v12, %v928_v33 }
 0x425   : > { %2029 = vrot.lane.b32.xlu1 %v7926_v28, %s6640_s2  ;;  %v1061_v54 = vsel %vm481_vm2, %v7611_v14, %v926_v38  ;;  %v7966_v38 = vld [vmem:[#allocation2 + $0x112] sm:$0xff] }
 0x426   : > { %2027 = vrot.lane.b32.xlu0 %v7929_v52, %s6640_s2 }
 0x427   : > { %v1002_v5 = vpop.permute.xlu1 %1001 }
 0x428   : > { %v1087_v58 = vsel %vm1075_vm4, %v1062_v0, %v1002_v5  ;;  %v1000_v19 = vpop.permute.xlu0 %999  ;;  %v7969_v0 = vld [vmem:[#allocation2 + $0x10a] sm:$0xff] }
 0x429   : > { %v1086_v15 = vsel %vm1075_vm4, %v1061_v54, %v1000_v19  ;;  %1959 = vrot.lane.b32.xlu1 %v7926_v28, %s6641_s9 }
 0x42a   : > { %1957 = vrot.lane.b32.xlu0 %v7929_v52, %s6641_s9  ;;  %5726 = vmatprep.mubr.msk.f32.mxu0 %vm1351_vm5, %v1086_v15 }
 0x42b   : > { %5727 = vmatmul.mubr.msk.f32.gmra.mrb[10].mxu0 %vm1351_vm5, %v1087_v58  ;;  %v932_v12 = vpop.permute.xlu1 %931 }
 0x42c   : > { %v930_v14 = vpop.permute.xlu0 %929  ;;  %v1064_v13 = vsel %vm481_vm2, %v7631_v46, %v932_v12 }
 0x42d   : > { %2033 = vrot.lane.b32.xlu1 %v7946_v32, %s6640_s2  ;;  %v1063_v11 = vsel %vm481_vm2, %v7633_v40, %v930_v14  ;;  %v1898_v14 = vld [vmem:[#allocation2 + $0x12a] sm:$0xff] }
 0x42e   : > { %2031 = vrot.lane.b32.xlu0 %v7949_v39, %s6640_s2 }
 0x42f   : > { %v1006_v61 = vpop.permute.xlu1 %1005 }
 0x430   : > { %v1089_v59 = vsel %vm1075_vm4, %v1064_v13, %v1006_v61  ;;  %v1004_v56 = vpop.permute.xlu0 %1003  ;;  %v1897_v13 = vld [vmem:[#allocation2 + $0x122] sm:$0xff] }
 0x431   : > { %v1088_v33 = vsel %vm1075_vm4, %v1063_v11, %v1004_v56  ;;  %1963 = vrot.lane.b32.xlu1 %v7946_v32, %s6641_s9 }
 0x432   : > { %1961 = vrot.lane.b32.xlu0 %v7949_v39, %s6641_s9  ;;  %5729 = vmatprep.mubr.msk.f32.mxu0 %vm1351_vm5, %v1088_v33 }
 0x433   : > { %5730 = vmatmul.mubr.msk.f32.gmra.mrb[12].mxu0 %vm1351_vm5, %v1089_v59  ;;  %v936_v46 = vpop.permute.xlu1 %935 }
 0x434   : > { %v934_v40 = vpop.permute.xlu0 %933  ;;  %v1066_v5 = vsel %vm481_vm2, %v7651_v45, %v936_v46 }
 0x435   : > { %2037 = vrot.lane.b32.xlu1 %v7966_v38, %s6640_s2  ;;  %v1065_v58 = vsel %vm481_vm2, %v7653_v20, %v934_v40  ;;  %v1900_v40 = vld [vmem:[#allocation2 + $0x142] sm:$0xff] }
 0x436   : > { %2035 = vrot.lane.b32.xlu0 %v7969_v0, %s6640_s2 }
 0x437   : > { %v1010_v54 = vpop.permute.xlu1 %1009 }
 0x438   : > { %v1091_v19 = vsel %vm1075_vm4, %v1066_v5, %v1010_v54  ;;  %v1008_v15 = vpop.permute.xlu0 %1007 }
 0x439   : > { %v1090_v12 = vsel %vm1075_vm4, %v1065_v58, %v1008_v15  ;;  %1967 = vrot.lane.b32.xlu1 %v7966_v38, %s6641_s9 }
 0x43a   : > { %1965 = vrot.lane.b32.xlu0 %v7969_v0, %s6641_s9  ;;  %5732 = vmatprep.mubr.msk.f32.mxu0 %vm1351_vm5, %v1090_v12 }
 0x43b   : > { %5733 = vmatmul.mubr.msk.f32.gmra.mrb[14].mxu0 %vm1351_vm5, %v1091_v19  ;;  %v940_v45 = vpop.permute.xlu1 %939 }
 0x43c   : > { %v938_v61 = vpop.permute.xlu0 %937  ;;  %v1068_v20 = vsel %vm481_vm2, %v7671_v47, %v940_v45  ;;  %v1899_v47 = vld [vmem:[#allocation2 + $0x13a] sm:$0xff] }
 0x43d   : > { %2041 = vrot.lane.b32.xlu1 %v1898_v14, %s6640_s2  ;;  %v1067_v59 = vsel %vm481_vm2, %v7673_v43, %v938_v61 }
 0x43e   : > { %2039 = vrot.lane.b32.xlu0 %v1897_v13, %s6640_s2 }
 0x43f   : > { %v1014_v11 = vpop.permute.xlu1 %1013 }
 0x440   : > { %v1093_v56 = vsel %vm1075_vm4, %v1068_v20, %v1014_v11  ;;  %v1012_v33 = vpop.permute.xlu0 %1011 }
 0x441   : > { %v1092_v46 = vsel %vm1075_vm4, %v1067_v59, %v1012_v33  ;;  %1971 = vrot.lane.b32.xlu1 %v1898_v14, %s6641_s9 }
 0x442   : > { %1969 = vrot.lane.b32.xlu0 %v1897_v13, %s6641_s9  ;;  %5735 = vmatprep.mubr.msk.f32.mxu0 %vm1351_vm5, %v1092_v46 }
 0x443   : > { %5736 = vmatmul.mubr.msk.f32.gmra.mrb[16].mxu0 %vm1351_vm5, %v1093_v56  ;;  %v944_v5 = vpop.permute.xlu1 %943 }
 0x444   : > { %v942_v54 = vpop.permute.xlu0 %941  ;;  %v1070_v43 = vsel %vm481_vm2, %v7691_v53, %v944_v5 }
 0x445   : > { %2045 = vrot.lane.b32.xlu1 %v1900_v40, %s6640_s2  ;;  %v1069_v19 = vsel %vm481_vm2, %v7693_v21, %v942_v54 }
 0x446   : > { %2043 = vrot.lane.b32.xlu0 %v1899_v47, %s6640_s2 }
 0x447   : > { %v1018_v58 = vpop.permute.xlu1 %1017 }
 0x448   : > { %v1095_v15 = vsel %vm1075_vm4, %v1070_v43, %v1018_v58  ;;  %v1016_v12 = vpop.permute.xlu0 %1015  ;;  %v1874_v43 = vld [vmem:[#allocation2 + $0xa] sm:$0xff] }
 0x449   : > { %v1094_v14 = vsel %vm1075_vm4, %v1069_v19, %v1016_v12  ;;  %v1873_v19 = vld [vmem:[#allocation2 + $0x2] sm:$0xff] }
 0x44a   : > { %5738 = vmatprep.mubr.msk.f32.mxu0 %vm1351_vm5, %v1094_v14 }
 0x44b   : > { %5739 = vmatmul.mubr.msk.f32.gmra.mrb[18].mxu0 %vm1351_vm5, %v1095_v15  ;;  %v948_v45 = vpop.permute.xlu1 %947 }
 0x44c   : > { %v946_v13 = vpop.permute.xlu0 %945  ;;  %v1072_v61 = vsel %vm481_vm2, %v7711_v55, %v948_v45 }
 0x44d   : > { %v1071_v53 = vsel %vm481_vm2, %v7713_v34, %v946_v13 }
 0x44f   : > { %v1022_v20 = vpop.permute.xlu1 %1021 }
 0x450   : > { %v1097_v21 = vsel %vm1075_vm4, %v1072_v61, %v1022_v20  ;;  %v1020_v11 = vpop.permute.xlu0 %1019 }
 0x451   : > { %v1096_v59 = vsel %vm1075_vm4, %v1071_v53, %v1020_v11 }
 0x452   : > { %5741 = vmatprep.mubr.msk.f32.mxu0 %vm1351_vm5, %v1096_v59 }
 0x453   : > { %5742 = vmatmul.mubr.msk.f32.gmra.mrb[20].mxu0 %vm1351_vm5, %v1097_v21  ;;  %v952_v56 = vpop.permute.xlu1 %951 }
 0x454   : > { %v950_v33 = vpop.permute.xlu0 %949  ;;  %v1074_v46 = vsel %vm481_vm2, %v7731_v57, %v952_v56 }
 0x455   : > { %v1073_v55 = vsel %vm481_vm2, %v7733_v31, %v950_v33 }
 0x457   : > { %v1026_v40 = vpop.permute.xlu1 %1025 }
 0x458   : > { %v1099_v34 = vsel %vm1075_vm4, %v1074_v46, %v1026_v40  ;;  %v1024_v5 = vpop.permute.xlu0 %1023 }
 0x459   : > { %v1098_v47 = vsel %vm1075_vm4, %v1073_v55, %v1024_v5 }
 0x45a   : > { %5744 = vmatprep.mubr.msk.f32.mxu0 %vm1351_vm5, %v1098_v47 }
 0x45b   : > { %5745 = vmatmul.mubr.msk.f32.gmra.mrb[22].mxu0 %vm1351_vm5, %v1099_v34  ;;  %v1928_v54 = vpop.permute.xlu1 %1927 }
 0x45c   : > { %v1926_v58 = vpop.permute.xlu0 %1925  ;;  %v2072_v15 = vsel %vm481_vm2, %v1874_v43, %v1928_v54 }
 0x45d   : > { %v2071_v12 = vsel %vm481_vm2, %v1873_v19, %v1926_v58 }
 0x45f   : > { %v2002_v57 = vpop.permute.xlu1 %2001 }
 0x460   : > { %v2096_v31 = vsel %vm1075_vm4, %v2072_v15, %v2002_v57  ;;  %v2000_v14 = vpop.permute.xlu0 %1999 }
 0x461   : > { %v2095_v45 = vsel %vm1075_vm4, %v2071_v12, %v2000_v14 }
 0x462   : > { %5751 = vmatprep.mubr.msk.f32.mxu0 %vm1351_vm5, %v2095_v45 }
 0x463   : > { %5752 = vmatmul.mubr.msk.f32.vlgmr.msra.gmra.mrb[0].mxu0 %vm1351_vm5, %v2096_v31  ;;  %v1932_v13 = vpop.permute.xlu1 %1931 }
 0x464   : > { %v1930_v61 = vpop.permute.xlu0 %1929  ;;  %v2074_v20 = vsel %vm481_vm2, %v7770_v62, %v1932_v13 }
 0x465   : > { %v2073_v21 = vsel %vm481_vm2, %v7776_v60, %v1930_v61 }
 0x467   : > { %v2006_v53 = vpop.permute.xlu1 %2005 }
 0x468   : > { %v2098_v11 = vsel %vm1075_vm4, %v2074_v20, %v2006_v53  ;;  %v2004_v59 = vpop.permute.xlu0 %2003 }
 0x469   : > { %v2097_v56 = vsel %vm1075_vm4, %v2073_v21, %v2004_v59 }
 0x46a   : > { %5754 = vmatprep.mubr.msk.f32.mxu0 %vm1351_vm5, %v2097_v56 }
 0x46b   : > { %5755 = vmatmul.mubr.msk.f32.gmra.mrb[2].mxu0 %vm1351_vm5, %v2098_v11  ;;  %v1936_v33 = vpop.permute.xlu1 %1935 }
 0x46c   : > { %v1934_v46 = vpop.permute.xlu0 %1933  ;;  %v2076_v40 = vsel %vm481_vm2, %v7786_v63, %v1936_v33 }
 0x46d   : > { %v2075_v62 = vsel %vm481_vm2, %v7788_v37, %v1934_v46 }
 0x46f   : > { %v2010_v55 = vpop.permute.xlu1 %2009 }
 0x470   : > { %v2100_v60 = vsel %vm1075_vm4, %v2076_v40, %v2010_v55  ;;  %v2008_v34 = vpop.permute.xlu0 %2007 }
 0x471   : > { %v2099_v5 = vsel %vm1075_vm4, %v2075_v62, %v2008_v34 }
 0x472   : > { %5757 = vmatprep.mubr.msk.f32.mxu0 %vm1351_vm5, %v2099_v5 }
 0x473   : > { %5758 = vmatmul.mubr.msk.f32.gmra.mrb[4].mxu0 %vm1351_vm5, %v2100_v60  ;;  %v1940_v47 = vpop.permute.xlu1 %1939 }
 0x474   : > { %v1938_v54 = vpop.permute.xlu0 %1937  ;;  %v2078_v43 = vsel %vm481_vm2, %v7806_v8, %v1940_v47 }
 0x475   : > { %v2077_v63 = vsel %vm481_vm2, %v7808_v44, %v1938_v54 }
 0x477   : > { %v2014_v58 = vpop.permute.xlu1 %2013 }
 0x478   : > { %v2102_v37 = vsel %vm1075_vm4, %v2078_v43, %v2014_v58  ;;  %v2012_v19 = vpop.permute.xlu0 %2011 }
 0x479   : > { %v2101_v15 = vsel %vm1075_vm4, %v2077_v63, %v2012_v19 }
 0x47a   : > { %5760 = vmatprep.mubr.msk.f32.mxu0 %vm1351_vm5, %v2101_v15 }
 0x47b   : > { %5761 = vmatmul.mubr.msk.f32.gmra.mrb[6].mxu0 %vm1351_vm5, %v2102_v37  ;;  %v1944_v57 = vpop.permute.xlu1 %1943 }
 0x47c   : > { %v1942_v12 = vpop.permute.xlu0 %1941  ;;  %v2080_v31 = vsel %vm481_vm2, %v7826_v4, %v1944_v57 }
 0x47d   : > { %v2079_v8 = vsel %vm481_vm2, %v7828_v6, %v1942_v12 }
 0x47f   : > { %v2018_v14 = vpop.permute.xlu1 %2017 }
 0x480   : > { %v2104_v44 = vsel %vm1075_vm4, %v2080_v31, %v2018_v14  ;;  %v2016_v45 = vpop.permute.xlu0 %2015 }
 0x481   : > { %v2103_v13 = vsel %vm1075_vm4, %v2079_v8, %v2016_v45 }
 0x482   : > { %5763 = vmatprep.mubr.msk.f32.mxu0 %vm1351_vm5, %v2103_v13 }
 0x483   : > { %5764 = vmatmul.mubr.msk.f32.gmra.mrb[8].mxu0 %vm1351_vm5, %v2104_v44  ;;  %v1948_v61 = vpop.permute.xlu1 %1947 }
 0x484   : > { %v1946_v20 = vpop.permute.xlu0 %1945  ;;  %v2082_v53 = vsel %vm481_vm2, %v7844_v48, %v1948_v61 }
 0x485   : > { %v2081_v4 = vsel %vm481_vm2, %v7846_v49, %v1946_v20 }
 0x487   : > { %v2022_v21 = vpop.permute.xlu1 %2021 }
 0x488   : > { %v2106_v6 = vsel %vm1075_vm4, %v2082_v53, %v2022_v21  ;;  %v2020_v11 = vpop.permute.xlu0 %2019 }
 0x489   : > { %v2105_v59 = vsel %vm1075_vm4, %v2081_v4, %v2020_v11 }
 0x48a   : > { %5766 = vmatprep.mubr.msk.f32.mxu0 %vm1351_vm5, %v2105_v59 }
 0x48b   : > { %5767 = vmatmul.mubr.msk.f32.gmra.mrb[10].mxu0 %vm1351_vm5, %v2106_v6  ;;  %v1952_v56 = vpop.permute.xlu1 %1951 }
 0x48c   : > { %v1950_v33 = vpop.permute.xlu0 %1949  ;;  %v2084_v46 = vsel %vm481_vm2, %v7867_v22, %v1952_v56 }
 0x48d   : > { %v2083_v48 = vsel %vm481_vm2, %v7869_v26, %v1950_v33 }
 0x48f   : > { %v2026_v40 = vpop.permute.xlu1 %2025 }
 0x490   : > { %v2108_v49 = vsel %vm1075_vm4, %v2084_v46, %v2026_v40  ;;  %v2024_v55 = vpop.permute.xlu0 %2023  ;;  %v8119_v40 = vld [vmem:[#allocation11] ss:$0 sm:$0xff] }
 0x491   : > { %v2107_v62 = vsel %vm1075_vm4, %v2083_v48, %v2024_v55 }
 0x492   : > { %5769 = vmatprep.mubr.msk.f32.mxu0 %vm1351_vm5, %v2107_v62 }
 0x493   : > { %5770 = vmatmul.mubr.msk.f32.gmra.mrb[12].mxu0 %vm1351_vm5, %v2108_v49  ;;  %v1956_v60 = vpop.permute.xlu1 %1955 }
 0x494   : > { %v1954_v34 = vpop.permute.xlu0 %1953  ;;  %v2086_v5 = vsel %vm481_vm2, %v7887_v27, %v1956_v60 }
 0x495   : > { %v2085_v22 = vsel %vm481_vm2, %v7889_v50, %v1954_v34 }
 0x497   : > { %v2030_v47 = vpop.permute.xlu1 %2029 }
 0x498   : > { %v2110_v26 = vsel %vm1075_vm4, %v2086_v5, %v2030_v47  ;;  %v2028_v54 = vpop.permute.xlu0 %2027 }
 0x499   : > { %v2109_v43 = vsel %vm1075_vm4, %v2085_v22, %v2028_v54 }
 0x49a   : > { %5772 = vmatprep.mubr.msk.f32.mxu0 %vm1351_vm5, %v2109_v43 }
 0x49b   : > { %5773 = vmatmul.mubr.msk.f32.gmra.mrb[14].mxu0 %vm1351_vm5, %v2110_v26  ;;  %v1960_v58 = vpop.permute.xlu1 %1959 }
 0x49c   : > { %v1958_v63 = vpop.permute.xlu0 %1957  ;;  %v2088_v37 = vsel %vm481_vm2, %v7907_v16, %v1960_v58 }
 0x49d   : > { %v2087_v27 = vsel %vm481_vm2, %v7909_v25, %v1958_v63 }
 0x49f   : > { %v2034_v19 = vpop.permute.xlu1 %2033 }
 0x4a0   : > { %v2112_v50 = vsel %vm1075_vm4, %v2088_v37, %v2034_v19  ;;  %v2032_v15 = vpop.permute.xlu0 %2031 }
 0x4a1   : > { %v2111_v57 = vsel %vm1075_vm4, %v2087_v27, %v2032_v15 }
 0x4a2   : > { %5775 = vmatprep.mubr.msk.f32.mxu0 %vm1351_vm5, %v2111_v57 }
 0x4a3   : > { %5776 = vmatmul.mubr.msk.f32.gmra.mrb[16].mxu0 %vm1351_vm5, %v2112_v50  ;;  %v1964_v12 = vpop.permute.xlu1 %1963 }
 0x4a4   : > { %v1962_v31 = vpop.permute.xlu0 %1961  ;;  %v2090_v14 = vsel %vm481_vm2, %v7926_v28, %v1964_v12 }
 0x4a5   : > { %v2089_v16 = vsel %vm481_vm2, %v7929_v52, %v1962_v31 }
 0x4a7   : > { %v2038_v8 = vpop.permute.xlu1 %2037 }
 0x4a8   : > { %v2114_v25 = vsel %vm1075_vm4, %v2090_v14, %v2038_v8  ;;  %v2036_v44 = vpop.permute.xlu0 %2035 }
 0x4a9   : > { %v2113_v45 = vsel %vm1075_vm4, %v2089_v16, %v2036_v44 }
 0x4aa   : > { %5778 = vmatprep.mubr.msk.f32.mxu0 %vm1351_vm5, %v2113_v45 }
 0x4ab   : > { %5779 = vmatmul.mubr.msk.f32.gmra.mrb[18].mxu0 %vm1351_vm5, %v2114_v25  ;;  %v1968_v13 = vpop.permute.xlu1 %1967 }
 0x4ac   : > { %v1966_v61 = vpop.permute.xlu0 %1965  ;;  %v2092_v20 = vsel %vm481_vm2, %v7946_v32, %v1968_v13 }
 0x4ad   : > { %v2091_v28 = vsel %vm481_vm2, %v7949_v39, %v1966_v61 }
 0x4af   : > { %v2042_v53 = vpop.permute.xlu1 %2041 }
 0x4b0   : > { %v2116_v52 = vsel %vm1075_vm4, %v2092_v20, %v2042_v53  ;;  %v2040_v21 = vpop.permute.xlu0 %2039 }
 0x4b1   : > { %v2115_v4 = vsel %vm1075_vm4, %v2091_v28, %v2040_v21 }
 0x4b2   : > { %5781 = vmatprep.mubr.msk.f32.mxu0 %vm1351_vm5, %v2115_v4 }
 0x4b3   : > { %5782 = vmatmul.mubr.msk.f32.gmra.mrb[20].mxu0 %vm1351_vm5, %v2116_v52  ;;  %v1972_v6 = vpop.permute.xlu1 %1971 }
 0x4b4   : > { %v1970_v11 = vpop.permute.xlu0 %1969  ;;  %v2094_v59 = vsel %vm481_vm2, %v7966_v38, %v1972_v6 }
 0x4b5   : > { %v2093_v32 = vsel %vm481_vm2, %v7969_v0, %v1970_v11 }
 0x4b7   : > { %v2046_v56 = vpop.permute.xlu1 %2045 }
 0x4b8   : > { %v2118_v39 = vsel %vm1075_vm4, %v2094_v59, %v2046_v56  ;;  %v2044_v33 = vpop.permute.xlu0 %2043 }
 0x4b9   : > { %v2117_v46 = vsel %vm1075_vm4, %v2093_v32, %v2044_v33 }
 0x4ba   : > { %5784 = vmatprep.mubr.msk.f32.mxu0 %vm1351_vm5, %v2117_v46 }
 0x4bb   : > { %5785 = vmatmul.mubr.msk.f32.gmra.mrb[22].mxu0 %vm1351_vm5, %v2118_v39 }
 0x536   : > { %v5753_v48 = vpop.f32.mrb[0].mxu0 }
 0x537   : > { %v8122_v49 = vadd.f32 %v5753_v48, %v8119_v40  ;;  %v2263_v38 = vpop.f32.mrb[1].mxu0 }
 0x538   : > { %v8125_v55 = vadd.f32 %v8119_v40, %v2263_v38 }
 0x539   : > { %v2437_v0 = vmul.f32 %v8122_v49, %v8122_v49 }
 0x53a   : > { %v2436_v62 = vmul.f32 %v8125_v55, %v8125_v55 }
 0x53b   : > { %v2463_v60 = vsel %vm481_vm2, %v2437_v0, 0.0 }
 0x53c   : > { %2464 = vadd.xlane.f32.xlu1 %v2463_v60  ;;  %v2460_v34 = vsel %vm481_vm2, %v2436_v62, 0.0 }
 0x53d   : > { %2461 = vadd.xlane.f32.xlu0 %v2460_v34 }
 0x53e   : > { %v5756_v5 = vpop.f32.mrb[2].mxu0 }
 0x53f   : > { %v8134_v47 = vadd.f32 %v5756_v5, %v8119_v40  ;;  %v2273_v22 = vpop.f32.mrb[3].mxu0 }
 0x540   : > { %v8137_v26 = vadd.f32 %v8119_v40, %v2273_v22 }
 0x541   : > { %v2439_v54 = vmul.f32 %v8134_v47, %v8134_v47 }
 0x542   : > { %v2438_v58 = vmul.f32 %v8137_v26, %v8137_v26 }
 0x543   : > { %v2469_v43 = vsel %vm481_vm2, %v2439_v54, 0.0 }
 0x544   : > { %2470 = vadd.xlane.f32.xlu0 %v2469_v43  ;;  %v2466_v27 = vsel %vm481_vm2, %v2438_v58, 0.0 }
 0x546   : > { %v5759_v63 = vpop.f32.mrb[4].mxu0 }
 0x547   : > { %v8145_v37 = vadd.f32 %v5759_v63, %v8119_v40  ;;  %v2283_v19 = vpop.f32.mrb[5].mxu0 }
 0x548   : > { %v8149_v50 = vadd.f32 %v8119_v40, %v2283_v19  ;;  %2467 = vadd.xlane.f32.xlu0 %v2466_v27 }
 0x549   : > { %v2441_v15 = vmul.f32 %v8145_v37, %v8145_v37 }
 0x54a   : > { %v2440_v57 = vmul.f32 %v8149_v50, %v8149_v50 }
 0x54b   : > { %v2475_v12 = vsel %vm481_vm2, %v2441_v15, 0.0 }
 0x54c   : > { %2476 = vadd.xlane.f32.xlu0 %v2475_v12  ;;  %v2472_v31 = vsel %vm481_vm2, %v2440_v57, 0.0 }
 0x54d   : > { %2473 = vadd.xlane.f32.xlu1 %v2472_v31 }
 0x54e   : > { %v5762_v14 = vpop.f32.mrb[6].mxu0 }
 0x54f   : > { %v8158_v8 = vadd.f32 %v5762_v14, %v8119_v40  ;;  %v2293_v16 = vpop.f32.mrb[7].mxu0 }
 0x550   : > { %v8161_v25 = vadd.f32 %v8119_v40, %v2293_v16 }
 0x551   : > { %v2443_v44 = vmul.f32 %v8158_v8, %v8158_v8 }
 0x552   : > { %v2442_v45 = vmul.f32 %v8161_v25, %v8161_v25 }
 0x553   : > { %v2481_v13 = vsel %vm481_vm2, %v2443_v44, 0.0 }
 0x554   : > { %2482 = vadd.xlane.f32.xlu0 %v2481_v13  ;;  %v2478_v61 = vsel %vm481_vm2, %v2442_v45, 0.0 }
 0x555   : > { %2479 = vadd.xlane.f32.xlu1 %v2478_v61 }
 0x556   : > { %v5765_v20 = vpop.f32.mrb[8].mxu0 }
 0x557   : > { %v8170_v53 = vadd.f32 %v5765_v20, %v8119_v40  ;;  %v2303_v28 = vpop.f32.mrb[9].mxu0 }
 0x558   : > { %v8173_v52 = vadd.f32 %v8119_v40, %v2303_v28 }
 0x559   : > { %v2445_v21 = vmul.f32 %v8170_v53, %v8170_v53 }
 0x55a   : > { %v2444_v4 = vmul.f32 %v8173_v52, %v8173_v52 }
 0x55b   : > { %v2487_v6 = vsel %vm481_vm2, %v2445_v21, 0.0 }
 0x55c   : > { %2488 = vadd.xlane.f32.xlu0 %v2487_v6  ;;  %v2484_v11 = vsel %vm481_vm2, %v2444_v4, 0.0 }
 0x55d   : > { %2485 = vadd.xlane.f32.xlu1 %v2484_v11 }
 0x55e   : > { %v5768_v59 = vpop.f32.mrb[10].mxu0 }
 0x55f   : > { %v8182_v56 = vadd.f32 %v5768_v59, %v8119_v40  ;;  %v2313_v32 = vpop.f32.mrb[11].mxu0 }
 0x560   : > { %v8185_v39 = vadd.f32 %v8119_v40, %v2313_v32 }
 0x561   : > { %v2447_v33 = vmul.f32 %v8182_v56, %v8182_v56 }
 0x562   : > { %v2446_v46 = vmul.f32 %v8185_v39, %v8185_v39 }
 0x563   : > { %v2493_v48 = vsel %vm481_vm2, %v2447_v33, 0.0 }
 0x564   : > { %2494 = vadd.xlane.f32.xlu0 %v2493_v48  ;;  %v2490_v38 = vsel %vm481_vm2, %v2446_v46, 0.0 }
 0x565   : > { %2491 = vadd.xlane.f32.xlu1 %v2490_v38 }
 0x566   : > { %v5771_v0 = vpop.f32.mrb[12].mxu0 }
 0x567   : > { %v8194_v62 = vadd.f32 %v5771_v0, %v8119_v40  ;;  %v2323_v60 = vpop.f32.mrb[13].mxu0 }
 0x568   : > { %v8197_v34 = vadd.f32 %v8119_v40, %v2323_v60 }
 0x569   : > { %v2449_v5 = vmul.f32 %v8194_v62, %v8194_v62 }
 0x56a   : > { %v2448_v22 = vmul.f32 %v8197_v34, %v8197_v34 }
 0x56b   : > { %v2499_v54 = vsel %vm481_vm2, %v2449_v5, 0.0 }
 0x56c   : > { %2500 = vadd.xlane.f32.xlu0 %v2499_v54  ;;  %v2496_v43 = vsel %vm481_vm2, %v2448_v22, 0.0 }
 0x56d   : > { %2497 = vadd.xlane.f32.xlu1 %v2496_v43 }
 0x56e   : > { %v5774_v58 = vpop.f32.mrb[14].mxu0 }
 0x56f   : > { %v8206_v63 = vadd.f32 %v5774_v58, %v8119_v40  ;;  %v2333_v19 = vpop.f32.mrb[15].mxu0 }
 0x570   : > { %v8209_v27 = vadd.f32 %v8119_v40, %v2333_v19 }
 0x571   : > { %v2451_v15 = vmul.f32 %v8206_v63, %v8206_v63 }
 0x572   : > { %v2450_v57 = vmul.f32 %v8209_v27, %v8209_v27 }
 0x573   : > { %v2505_v12 = vsel %vm481_vm2, %v2451_v15, 0.0 }
 0x574   : > { %2506 = vadd.xlane.f32.xlu0 %v2505_v12  ;;  %v2502_v31 = vsel %vm481_vm2, %v2450_v57, 0.0 }
 0x575   : > { %2503 = vadd.xlane.f32.xlu1 %v2502_v31 }
 0x576   : > { %v5777_v14 = vpop.f32.mrb[16].mxu0 }
 0x577   : > { %v8218_v16 = vadd.f32 %v5777_v14, %v8119_v40  ;;  %v2343_v44 = vpop.f32.mrb[17].mxu0 }
 0x578   : > { %v8221_v45 = vadd.f32 %v8119_v40, %v2343_v44 }
 0x579   : > { %v2453_v13 = vmul.f32 %v8218_v16, %v8218_v16 }
 0x57a   : > { %v2452_v61 = vmul.f32 %v8221_v45, %v8221_v45 }
 0x57b   : > { %v2511_v20 = vsel %vm481_vm2, %v2453_v13, 0.0 }
 0x57c   : > { %2512 = vadd.xlane.f32.xlu0 %v2511_v20  ;;  %v2508_v28 = vsel %vm481_vm2, %v2452_v61, 0.0 }
 0x57d   : > { %2509 = vadd.xlane.f32.xlu1 %v2508_v28 }
 0x57e   : > { %v5780_v21 = vpop.f32.mrb[18].mxu0 }
 0x57f   : > { %v8230_v4 = vadd.f32 %v5780_v21, %v8119_v40  ;;  %v2353_v6 = vpop.f32.mrb[19].mxu0 }
 0x580   : > { %v8233_v11 = vadd.f32 %v8119_v40, %v2353_v6 }
 0x581   : > { %v2455_v59 = vmul.f32 %v8230_v4, %v8230_v4 }
 0x582   : > { %v2454_v32 = vmul.f32 %v8233_v11, %v8233_v11 }
 0x583   : > { %v2517_v33 = vsel %vm481_vm2, %v2455_v59, 0.0 }
 0x584   : > { %2518 = vadd.xlane.f32.xlu0 %v2517_v33  ;;  %v2514_v46 = vsel %vm481_vm2, %v2454_v32, 0.0 }
 0x585   : > { %2515 = vadd.xlane.f32.xlu1 %v2514_v46 }
 0x586   : > { %v5783_v48 = vpop.f32.mrb[20].mxu0 }
 0x587   : > { %v8242_v38 = vadd.f32 %v5783_v48, %v8119_v40  ;;  %v2363_v0 = vpop.f32.mrb[21].mxu0 }
 0x588   : > { %v8245_v60 = vadd.f32 %v8119_v40, %v2363_v0 }
 0x589   : > { %v2457_v5 = vmul.f32 %v8242_v38, %v8242_v38 }
 0x58a   : > { %v2456_v22 = vmul.f32 %v8245_v60, %v8245_v60 }
 0x58b   : > { %v2523_v54 = vsel %vm481_vm2, %v2457_v5, 0.0 }
 0x58c   : > { %2524 = vadd.xlane.f32.xlu0 %v2523_v54  ;;  %v2520_v43 = vsel %vm481_vm2, %v2456_v22, 0.0 }
 0x58d   : > { %2521 = vadd.xlane.f32.xlu1 %v2520_v43 }
 0x58e   : > { %v5786_v58 = vpop.f32.mrb[22].mxu0 }
 0x58f   : > { %v8254_v19 = vadd.f32 %v5786_v58, %v8119_v40  ;;  %v2373_v15 = vpop.f32.mrb[23].mxu0 }
 0x590   : > { %v8257_v57 = vadd.f32 %v8119_v40, %v2373_v15 }
 0x591   : > { %v2459_v12 = vmul.f32 %v8254_v19, %v8254_v19 }
 0x592   : > { %v2458_v31 = vmul.f32 %v8257_v57, %v8257_v57 }
 0x593   : > { %v2529_v14 = vsel %vm481_vm2, %v2459_v12, 0.0 }
 0x594   : > { %2530 = vadd.xlane.f32.xlu0 %v2529_v14  ;;  %v2526_v44 = vsel %vm481_vm2, %v2458_v31, 0.0 }
 0x595   : > { %2527 = vadd.xlane.f32.xlu1 %v2526_v44 }
 0x5c9   : > { %v2465_v13 = vpop.xlane.xlu1 %2464 }
 0x5ca   : > { %v2533_v61 = vmul.f32 0.25, %v2465_v13  ;;  %v2462_v20 = vpop.xlane.xlu0 %2461 }
 0x5cb   : > { %v2532_v28 = vmul.f32 0.25, %v2462_v20 }
 0x5cc   : > { %v2557_v21 = vadd.f32 1e-08, %v2533_v61 }
 0x5cd   : > { %v2556_v6 = vadd.f32 1e-08, %v2532_v28 }
 0x5ce   : > { %6275 = vrsqrt.f32 %v2557_v21 }
 0x5cf   : > { %6277 = vrsqrt.f32 %v2556_v6 }
 0x5d1   : > { %v2471_v40 = vpop.xlane.xlu0 %2470 }
 0x5d2   : > { %v2535_v59 = vmul.f32 0.25, %v2471_v40 }
 0x5d4   : > { %v2559_v32 = vadd.f32 1e-08, %v2535_v59 }
 0x5d5   : > { %v2468_v33 = vpop.xlane.xlu0 %2467 }
 0x5d6   : > { %6279 = vrsqrt.f32 %v2559_v32  ;;  %v2534_v46 = vmul.f32 0.25, %v2468_v33 }
 0x5d8   : > { %v6276_v48 = vpop.eup %6275  ;;  %v2558_v0 = vadd.f32 1e-08, %v2534_v46 }
 0x5d9   : > { %v6278_v5 = vpop.eup %6277  ;;  %v2605_v22 = vmul.f32 %v6276_v48, %v8122_v49  ;;  %v2477_v54 = vpop.xlane.xlu0 %2476 }
 0x5da   : > { %v2604_v43 = vmul.f32 %v6278_v5, %v8125_v55  ;;  %6281 = vrsqrt.f32 %v2558_v0  ;;  %v2537_v58 = vmul.f32 0.25, %v2477_v54  ;;  %v2474_v15 = vpop.xlane.xlu1 %2473 }
 0x5db   : > { %vm2629_vm6 = vcmp.ge.f32.partialorder %v2605_v22, 0.0  ;;  %v2653_v12 = vmul.f32 0.2, %v2605_v22  ;;  %v2536_v31 = vmul.f32 0.25, %v2474_v15 }
 0x5dc   : > { %vm2628_vm7 = vcmp.ge.f32.partialorder %v2604_v43, 0.0  ;;  %v2652_v14 = vmul.f32 0.2, %v2604_v43  ;;  %v2561_v44 = vadd.f32 1e-08, %v2537_v58 }
 0x5dd   : > { %v2677_v13 = vsel %vm2629_vm6, %v2605_v22, %v2653_v12  ;;  %v2560_v61 = vadd.f32 1e-08, %v2536_v31 }
 0x5de   : > { %2701 = vst.msk [vmem:[#allocation3 + $0x9] sm:$0xff] %vm481_vm2, %v2677_v13  ;;  %v2676_v20 = vsel %vm2628_vm7, %v2604_v43, %v2652_v14  ;;  %6283 = vrsqrt.f32 %v2561_v44 }
 0x5df   : > { %2700 = vst.msk [vmem:[#allocation3 + $0x1] sm:$0xff] %vm481_vm2, %v2676_v20  ;;  %6285 = vrsqrt.f32 %v2560_v61 }
 0x5e0   : > { %v6280_v49 = vpop.eup %6279 }
 0x5e1   : > { %v2607_v55 = vmul.f32 %v6280_v49, %v8134_v47  ;;  %v2483_v28 = vpop.xlane.xlu0 %2482 }
 0x5e2   : > { %v2539_v21 = vmul.f32 0.25, %v2483_v28  ;;  %v2480_v6 = vpop.xlane.xlu1 %2479 }
 0x5e3   : > { %vm2631_vm8 = vcmp.ge.f32.partialorder %v2607_v55, 0.0  ;;  %v2655_v40 = vmul.f32 0.2, %v2607_v55  ;;  %v2538_v59 = vmul.f32 0.25, %v2480_v6 }
 0x5e4   : > { %v6282_v32 = vpop.eup %6281  ;;  %v2563_v33 = vadd.f32 1e-08, %v2539_v21 }
 0x5e5   : > { %v2679_v46 = vsel %vm2631_vm8, %v2607_v55, %v2655_v40  ;;  %v2606_v48 = vmul.f32 %v6282_v32, %v8137_v26  ;;  %v2562_v0 = vadd.f32 1e-08, %v2538_v59 }
 0x5e6   : > { %2703 = vst.msk [vmem:[#allocation3 + $0x21] sm:$0xff] %vm481_vm2, %v2679_v46  ;;  %6287 = vrsqrt.f32 %v2563_v33 }
 0x5e7   : > { %vm2630_vm9 = vcmp.ge.f32.partialorder %v2606_v48, 0.0  ;;  %v2654_v5 = vmul.f32 0.2, %v2606_v48  ;;  %6289 = vrsqrt.f32 %v2562_v0 }
 0x5e8   : > { %v6284_v22 = vpop.eup %6283 }
 0x5e9   : > { %v6286_v47 = vpop.eup %6285  ;;  %v2678_v54 = vsel %vm2630_vm9, %v2606_v48, %v2654_v5  ;;  %v2609_v43 = vmul.f32 %v6284_v22, %v8145_v37  ;;  %v2489_v58 = vpop.xlane.xlu0 %2488 }
 0x5ea   : > { %2702 = vst.msk [vmem:[#allocation3 + $0x19] sm:$0xff] %vm481_vm2, %v2678_v54  ;;  %v2608_v15 = vmul.f32 %v6286_v47, %v8149_v50  ;;  %v2541_v12 = vmul.f32 0.25, %v2489_v58  ;;  %v2486_v31 = vpop.xlane.xlu1 %2485 }
 0x5eb   : > { %vm2633_vm10 = vcmp.ge.f32.partialorder %v2609_v43, 0.0  ;;  %v2657_v26 = vmul.f32 0.2, %v2609_v43  ;;  %v2540_v14 = vmul.f32 0.25, %v2486_v31 }
 0x5ec   : > { %vm2632_vm11 = vcmp.ge.f32.partialorder %v2608_v15, 0.0  ;;  %v2656_v44 = vmul.f32 0.2, %v2608_v15  ;;  %v2565_v13 = vadd.f32 1e-08, %v2541_v12 }
 0x5ed   : > { %v2681_v61 = vsel %vm2633_vm10, %v2609_v43, %v2657_v26  ;;  %v2564_v20 = vadd.f32 1e-08, %v2540_v14 }
 0x5ee   : > { %2705 = vst.msk [vmem:[#allocation3 + $0x39] sm:$0xff] %vm481_vm2, %v2681_v61  ;;  %v2680_v49 = vsel %vm2632_vm11, %v2608_v15, %v2656_v44  ;;  %6291 = vrsqrt.f32 %v2565_v13 }
 0x5ef   : > { %2704 = vst.msk [vmem:[#allocation3 + $0x31] sm:$0xff] %vm481_vm2, %v2680_v49  ;;  %6293 = vrsqrt.f32 %v2564_v20 }
 0x5f0   : > { %v6288_v37 = vpop.eup %6287 }
 0x5f1   : > { %v6290_v55 = vpop.eup %6289  ;;  %v2611_v50 = vmul.f32 %v6288_v37, %v8158_v8  ;;  %v2495_v28 = vpop.xlane.xlu0 %2494 }
 0x5f2   : > { %v2610_v21 = vmul.f32 %v6290_v55, %v8161_v25  ;;  %v2543_v6 = vmul.f32 0.25, %v2495_v28  ;;  %v2492_v40 = vpop.xlane.xlu1 %2491 }
 0x5f3   : > { %vm2635_vm12 = vcmp.ge.f32.partialorder %v2611_v50, 0.0  ;;  %v2659_v59 = vmul.f32 0.2, %v2611_v50  ;;  %v2542_v32 = vmul.f32 0.25, %v2492_v40 }
 0x5f4   : > { %vm2634_vm13 = vcmp.ge.f32.partialorder %v2610_v21, 0.0  ;;  %v2658_v33 = vmul.f32 0.2, %v2610_v21  ;;  %v2567_v46 = vadd.f32 1e-08, %v2543_v6 }
 0x5f5   : > { %v2683_v48 = vsel %vm2635_vm12, %v2611_v50, %v2659_v59  ;;  %v2566_v0 = vadd.f32 1e-08, %v2542_v32 }
 0x5f6   : > { %2707 = vst.msk [vmem:[#allocation3 + $0x51] sm:$0xff] %vm481_vm2, %v2683_v48  ;;  %v2682_v5 = vsel %vm2634_vm13, %v2610_v21, %v2658_v33  ;;  %6295 = vrsqrt.f32 %v2567_v46 }
 0x5f7   : > { %2706 = vst.msk [vmem:[#allocation3 + $0x49] sm:$0xff] %vm481_vm2, %v2682_v5  ;;  %6297 = vrsqrt.f32 %v2566_v0 }
 0x5f8   : > { %v6292_v8 = vpop.eup %6291 }
 0x5f9   : > { %v6294_v22 = vpop.eup %6293  ;;  %v2613_v25 = vmul.f32 %v6292_v8, %v8170_v53  ;;  %v2501_v47 = vpop.xlane.xlu0 %2500 }
 0x5fa   : > { %v2612_v54 = vmul.f32 %v6294_v22, %v8173_v52  ;;  %v2545_v43 = vmul.f32 0.25, %v2501_v47  ;;  %v2498_v58 = vpop.xlane.xlu1 %2497 }
 0x5fb   : > { %vm2637_vm14 = vcmp.ge.f32.partialorder %v2613_v25, 0.0  ;;  %v2661_v15 = vmul.f32 0.2, %v2613_v25  ;;  %v2544_v12 = vmul.f32 0.25, %v2498_v58 }
 0x5fc   : > { %vm2636_vm15 = vcmp.ge.f32.partialorder %v2612_v54, 0.0  ;;  %v2660_v31 = vmul.f32 0.2, %v2612_v54  ;;  %v2569_v26 = vadd.f32 1e-08, %v2545_v43 }
 0x5fd   : > { %v2685_v14 = vsel %vm2637_vm14, %v2613_v25, %v2661_v15  ;;  %v2568_v44 = vadd.f32 1e-08, %v2544_v12 }
 0x5fe   : > { %2709 = vst.msk [vmem:[#allocation3 + $0x69] sm:$0xff] %vm481_vm2, %v2685_v14  ;;  %v2684_v13 = vsel %vm2636_vm15, %v2612_v54, %v2660_v31  ;;  %6299 = vrsqrt.f32 %v2569_v26 }
 0x5ff   : > { %2708 = vst.msk [vmem:[#allocation3 + $0x61] sm:$0xff] %vm481_vm2, %v2684_v13  ;;  %6301 = vrsqrt.f32 %v2568_v44 }
 0x600   : > { %v6296_v53 = vpop.eup %6295 }
 0x601   : > { %v6298_v61 = vpop.eup %6297  ;;  %v2615_v52 = vmul.f32 %v6296_v53, %v8182_v56  ;;  %v2507_v20 = vpop.xlane.xlu0 %2506 }
 0x602   : > { %v2614_v49 = vmul.f32 %v6298_v61, %v8185_v39  ;;  %v2547_v37 = vmul.f32 0.25, %v2507_v20  ;;  %v2504_v55 = vpop.xlane.xlu1 %2503 }
 0x603   : > { %vm2639_vm1 = vcmp.ge.f32.partialorder %v2615_v52, 0.0  ;;  %v2663_v50 = vmul.f32 0.2, %v2615_v52  ;;  %v2546_v28 = vmul.f32 0.25, %v2504_v55 }
 0x604   : > { %vm2638_vm6 = vcmp.ge.f32.partialorder %v2614_v49, 0.0  ;;  %v2662_v21 = vmul.f32 0.2, %v2614_v49  ;;  %v2571_v6 = vadd.f32 1e-08, %v2547_v37 }
 0x605   : > { %v2687_v40 = vsel %vm2639_vm1, %v2615_v52, %v2663_v50  ;;  %v2570_v59 = vadd.f32 1e-08, %v2546_v28 }
 0x606   : > { %2711 = vst.msk [vmem:[#allocation3 + $0x81] sm:$0xff] %vm481_vm2, %v2687_v40  ;;  %v2686_v32 = vsel %vm2638_vm6, %v2614_v49, %v2662_v21  ;;  %6303 = vrsqrt.f32 %v2571_v6 }
 0x607   : > { %2710 = vst.msk [vmem:[#allocation3 + $0x79] sm:$0xff] %vm481_vm2, %v2686_v32  ;;  %6305 = vrsqrt.f32 %v2570_v59 }
 0x608   : > { %v6300_v56 = vpop.eup %6299 }
 0x609   : > { %v6302_v33 = vpop.eup %6301  ;;  %v2617_v39 = vmul.f32 %v6300_v56, %v8194_v62  ;;  %v2513_v46 = vpop.xlane.xlu0 %2512 }
 0x60a   : > { %v2616_v48 = vmul.f32 %v6302_v33, %v8197_v34  ;;  %v2549_v0 = vmul.f32 0.25, %v2513_v46  ;;  %v2510_v5 = vpop.xlane.xlu1 %2509 }
 0x60b   : > { %vm2641_vm7 = vcmp.ge.f32.partialorder %v2617_v39, 0.0  ;;  %v2665_v8 = vmul.f32 0.2, %v2617_v39  ;;  %v2548_v22 = vmul.f32 0.25, %v2510_v5 }
 0x60c   : > { %vm2640_vm8 = vcmp.ge.f32.partialorder %v2616_v48, 0.0  ;;  %v2664_v25 = vmul.f32 0.2, %v2616_v48  ;;  %v2573_v47 = vadd.f32 1e-08, %v2549_v0 }
 0x60d   : > { %v2689_v54 = vsel %vm2641_vm7, %v2617_v39, %v2665_v8  ;;  %v2572_v43 = vadd.f32 1e-08, %v2548_v22 }
 0x60e   : > { %2713 = vst.msk [vmem:[#allocation3 + $0x99] sm:$0xff] %vm481_vm2, %v2689_v54  ;;  %v2688_v58 = vsel %vm2640_vm8, %v2616_v48, %v2664_v25  ;;  %6307 = vrsqrt.f32 %v2573_v47  ;;  %vm2729_vm8 = vcmask (!%p5302_p0), 25600  }
 0x60f   : > { %2712 = vst.msk [vmem:[#allocation3 + $0x91] sm:$0xff] %vm481_vm2, %v2688_v58  ;;  %6309 = vrsqrt.f32 %v2572_v43 }
 0x610   : > { %v6304_v62 = vpop.eup %6303 }
 0x611   : > { %v6306_v15 = vpop.eup %6305  ;;  %v2619_v34 = vmul.f32 %v6304_v62, %v8206_v63  ;;  %v2519_v12 = vpop.xlane.xlu0 %2518 }
 0x612   : > { %v2618_v31 = vmul.f32 %v6306_v15, %v8209_v27  ;;  %v2551_v26 = vmul.f32 0.25, %v2519_v12  ;;  %v2516_v14 = vpop.xlane.xlu1 %2515 }
 0x613   : > { %vm2643_vm9 = vcmp.ge.f32.partialorder %v2619_v34, 0.0  ;;  %v2667_v44 = vmul.f32 0.2, %v2619_v34  ;;  %v2550_v13 = vmul.f32 0.25, %v2516_v14 }
 0x614   : > { %vm2642_vm10 = vcmp.ge.f32.partialorder %v2618_v31, 0.0  ;;  %v2666_v53 = vmul.f32 0.2, %v2618_v31  ;;  %v2575_v61 = vadd.f32 1e-08, %v2551_v26 }
 0x615   : > { %v2691_v52 = vsel %vm2643_vm9, %v2619_v34, %v2667_v44  ;;  %v2574_v20 = vadd.f32 1e-08, %v2550_v13 }
 0x616   : > { %2715 = vst.msk [vmem:[#allocation3 + $0xb1] sm:$0xff] %vm481_vm2, %v2691_v52  ;;  %v2690_v49 = vsel %vm2642_vm10, %v2618_v31, %v2666_v53  ;;  %6311 = vrsqrt.f32 %v2575_v61 }
 0x617   : > { %2714 = vst.msk [vmem:[#allocation3 + $0xa9] sm:$0xff] %vm481_vm2, %v2690_v49  ;;  %6313 = vrsqrt.f32 %v2574_v20  ;;  %v6643_v49 = vmov (!%p5302_p0), 0.0  }
 0x618   : > { %v6308_v63 = vpop.eup %6307  ;;  %2727 = vst.msk [vmem:[#allocation3] sm:$0xff] (!%p5302_p0), %vm481_vm2, %v6643_v49  ;;  %2728 = vst.msk [vmem:[#allocation3 + $0x8] sm:$0xff] (!%p5302_p0), %vm481_vm2, %v6643_v49 }
 0x619   : > { %v6310_v37 = vpop.eup %6309  ;;  %v2621_v27 = vmul.f32 %v6308_v63, %v8218_v16  ;;  %v2525_v55 = vpop.xlane.xlu0 %2524  ;;  %2731 = vst.msk [vmem:[#allocation3 + $0x18] sm:$0xff] (!%p5302_p0), %vm481_vm2, %v6643_v49  ;;  %2732 = vst.msk [vmem:[#allocation3 + $0x20] sm:$0xff] (!%p5302_p0), %vm481_vm2, %v6643_v49 }
 0x61a   : > { %v2620_v50 = vmul.f32 %v6310_v37, %v8221_v45  ;;  %v2553_v28 = vmul.f32 0.25, %v2525_v55  ;;  %v2522_v21 = vpop.xlane.xlu1 %2521  ;;  %2730 = vst.msk [vmem:[#allocation3 + $0x10] sm:$0x3] (!%p5302_p0), %vm2729_vm8, %v6643_v49  ;;  %2733 = vst.msk [vmem:[#allocation3 + $0x28] sm:$0x3] (!%p5302_p0), %vm2729_vm8, %v6643_v49 }
 0x61b   : > { %vm2645_vm11 = vcmp.ge.f32.partialorder %v2621_v27, 0.0  ;;  %v2669_v6 = vmul.f32 0.2, %v2621_v27  ;;  %v2552_v40 = vmul.f32 0.25, %v2522_v21 }
 0x61c   : > { %vm2644_vm12 = vcmp.ge.f32.partialorder %v2620_v50, 0.0  ;;  %v2668_v59 = vmul.f32 0.2, %v2620_v50  ;;  %v2577_v32 = vadd.f32 1e-08, %v2553_v28 }
 0x61d   : > { %v2693_v56 = vsel %vm2645_vm11, %v2621_v27, %v2669_v6  ;;  %v2576_v33 = vadd.f32 1e-08, %v2552_v40 }
 0x61e   : > { %2717 = vst.msk [vmem:[#allocation3 + $0xc9] sm:$0xff] %vm481_vm2, %v2693_v56  ;;  %v2692_v39 = vsel %vm2644_vm12, %v2620_v50, %v2668_v59  ;;  %6315 = vrsqrt.f32 %v2577_v32 }
 0x61f   : > { %2716 = vst.msk [vmem:[#allocation3 + $0xc1] sm:$0xff] %vm481_vm2, %v2692_v39  ;;  %6317 = vrsqrt.f32 %v2576_v33 }
 0x620   : > { %v6312_v16 = vpop.eup %6311 }
 0x621   : > { %v6314_v46 = vpop.eup %6313  ;;  %v2623_v45 = vmul.f32 %v6312_v16, %v8230_v4  ;;  %v2531_v48 = vpop.xlane.xlu0 %2530 }
 0x622   : > { %v2622_v0 = vmul.f32 %v6314_v46, %v8233_v11  ;;  %v2555_v5 = vmul.f32 0.25, %v2531_v48  ;;  %v2528_v8 = vpop.xlane.xlu1 %2527 }
 0x623   : > { %vm2647_vm13 = vcmp.ge.f32.partialorder %v2623_v45, 0.0  ;;  %v2671_v22 = vmul.f32 0.2, %v2623_v45  ;;  %v2554_v25 = vmul.f32 0.25, %v2528_v8 }
 0x624   : > { %vm2646_vm14 = vcmp.ge.f32.partialorder %v2622_v0, 0.0  ;;  %v2670_v47 = vmul.f32 0.2, %v2622_v0  ;;  %v2579_v54 = vadd.f32 1e-08, %v2555_v5 }
 0x625   : > { %v2695_v43 = vsel %vm2647_vm13, %v2623_v45, %v2671_v22  ;;  %v2578_v58 = vadd.f32 1e-08, %v2554_v25 }
 0x626   : > { %2719 = vst.msk [vmem:[#allocation3 + $0xe1] sm:$0xff] %vm481_vm2, %v2695_v43  ;;  %v2694_v62 = vsel %vm2646_vm14, %v2622_v0, %v2670_v47  ;;  %6319 = vrsqrt.f32 %v2579_v54 }
 0x627   : > { %2718 = vst.msk [vmem:[#allocation3 + $0xd9] sm:$0xff] %vm481_vm2, %v2694_v62  ;;  %6321 = vrsqrt.f32 %v2578_v58 }
 0x628   : > { %v6316_v4 = vpop.eup %6315 }
 0x629   : > { %v6318_v15 = vpop.eup %6317  ;;  %v2625_v11 = vmul.f32 %v6316_v4, %v8242_v38 }
 0x62a   : > { %v2624_v34 = vmul.f32 %v6318_v15, %v8245_v60 }
 0x62b   : > { %vm2649_vm15 = vcmp.ge.f32.partialorder %v2625_v11, 0.0  ;;  %v2673_v12 = vmul.f32 0.2, %v2625_v11 }
 0x62c   : > { %vm2648_vm1 = vcmp.ge.f32.partialorder %v2624_v34, 0.0  ;;  %v2672_v31 = vmul.f32 0.2, %v2624_v34 }
 0x62d   : > { %v2697_v26 = vsel %vm2649_vm15, %v2625_v11, %v2673_v12 }
 0x62e   : > { %2721 = vst.msk [vmem:[#allocation3 + $0xf9] sm:$0xff] %vm481_vm2, %v2697_v26  ;;  %v2696_v14 = vsel %vm2648_vm1, %v2624_v34, %v2672_v31 }
 0x62f   : > { %2720 = vst.msk [vmem:[#allocation3 + $0xf1] sm:$0xff] %vm481_vm2, %v2696_v14 }
 0x630   : > { %v6320_v44 = vpop.eup %6319 }
 0x631   : > { %v6322_v13 = vpop.eup %6321  ;;  %v2627_v53 = vmul.f32 %v6320_v44, %v8254_v19  ;;  %2726 = sbr.rel (%p5302_p0) target bundleno = 1592 (0x638), region = 88 }
 0x632   : > { %v2626_v61 = vmul.f32 %v6322_v13, %v8257_v57 }
 0x633   : > { %vm2651_vm6 = vcmp.ge.f32.partialorder %v2627_v53, 0.0  ;;  %v2675_v38 = vmul.f32 0.2, %v2627_v53 }
 0x634   : > { %vm2650_vm7 = vcmp.ge.f32.partialorder %v2626_v61, 0.0  ;;  %v2674_v60 = vmul.f32 0.2, %v2626_v61 }
 0x635   : > { %v2699_v52 = vsel %vm2651_vm6, %v2627_v53, %v2675_v38 }
 0x636   : > { %2723 = vst.msk [vmem:[#allocation3 + $0x111] sm:$0xff] %vm481_vm2, %v2699_v52  ;;  %v2698_v20 = vsel %vm2650_vm7, %v2626_v61, %v2674_v60 }
 0x637   : > { %2722 = vst.msk [vmem:[#allocation3 + $0x109] sm:$0xff] %vm481_vm2, %v2698_v20 }
 0x638 PF: > { %2736 = sbr.rel (%p5312_p9) target bundleno = 1599 (0x63f), region = 92  ;;  %vm2740_vm9 = vcmask (!%p5312_p9), 25600   ;;  %v6644_v19 = vmov (!%p5312_p9), 0.0  }
 0x639   : > { %2738 = vst.msk [vmem:[#allocation3 + $0xf0] sm:$0xff] (!%p5312_p9), %vm481_vm2, %v6644_v19  ;;  %2739 = vst.msk [vmem:[#allocation3 + $0xf8] sm:$0xff] (!%p5312_p9), %vm481_vm2, %v6644_v19 }
 0x63a   : > { %2742 = vst.msk [vmem:[#allocation3 + $0x108] sm:$0xff] (!%p5312_p9), %vm481_vm2, %v6644_v19  ;;  %2743 = vst.msk [vmem:[#allocation3 + $0x110] sm:$0xff] (!%p5312_p9), %vm481_vm2, %v6644_v19 }
 0x63b   : > { %2741 = vst.msk [vmem:[#allocation3 + $0x100] sm:$0x3] (!%p5312_p9), %vm2740_vm9, %v6644_v19  ;;  %2744 = vst.msk [vmem:[#allocation3 + $0x118] sm:$0x3] (!%p5312_p9), %vm2740_vm9, %v6644_v19 }
 0x63f PF: > { %v8325_v57 = vld [vmem:[#allocation3 + $0x49] sm:$0xff]  ;;  %v8327_v63 = vld [vmem:[#allocation3 + $0x31] sm:$0xff]  ;;  %v8335_v27 = vld [vmem:[#allocation3 + $0x39] sm:$0xff] }
 0x640   : > { %3064 = vrot.lane.b32.xlu1 %v8325_v57, %s6640_s2  ;;  %3002 = vrot.lane.b32.xlu0 %v8327_v63, %s6641_s9  ;;  %v8333_v37 = vld [vmem:[#allocation3 + $0x51] sm:$0xff]  ;;  %v8345_v55 = vld [vmem:[#allocation3 + $0x69] sm:$0xff]  ;;  %v8347_v50 = vld [vmem:[#allocation3 + $0x61] sm:$0xff] }
 0x641   : > { %v3161_v28 = vld [vmem:[#allocation12 + $0x10] sm:$0xff]  ;;  %v3162_v21 = vld [vmem:[#allocation12 + $0x18] sm:$0xf]  ;;  %v8367_v59 = vld [vmem:[#allocation3 + $0x79] sm:$0xff] }
 0x642   : > { %v5943_v6 = vpack.c.bf16 %v3162_v21, %v3161_v28  ;;  %v8365_v40 = vld [vmem:[#allocation3 + $0x81] sm:$0xff]  ;;  %v8377_v32 = vld [vmem:[#allocation3 + $0x99] sm:$0xff]  ;;  %v8379_v56 = vld [vmem:[#allocation3 + $0x91] sm:$0xff] }
 0x643   : > { %v8389_v33 = vld [vmem:[#allocation3 + $0xb1] sm:$0xff]  ;;  %v8391_v39 = vld [vmem:[#allocation3 + $0xa9] sm:$0xff]  ;;  %v8403_v46 = vld [vmem:[#allocation3 + $0xc1] sm:$0xff] }
 0x644   : > { %3066 = vrot.lane.b32.xlu1 %v8333_v37, %s6640_s2  ;;  %3004 = vrot.lane.b32.xlu0 %v8335_v27, %s6641_s9  ;;  %v8401_v16 = vld [vmem:[#allocation3 + $0xc9] sm:$0xff]  ;;  %v8413_v45 = vld [vmem:[#allocation3 + $0xe1] sm:$0xff]  ;;  %v8415_v48 = vld [vmem:[#allocation3 + $0xd9] sm:$0xff] }
 0x645   : > { %5961 = vmatprep.subr.msk.bf16.mxu1 %vm7439_vm3, %v5943_v6  ;;  %5945 = vmatprep.subr.msk.bf16.mxu0 %vm7439_vm3, %v5943_v6  ;;  %v2975_v0 = vld [vmem:[#allocation3 + $0xf9] sm:$0xff]  ;;  %v2974_v5 = vld [vmem:[#allocation3 + $0xf1] sm:$0xff]  ;;  %v2976_v54 = vld [vmem:[#allocation3 + $0x109] sm:$0xff] }
 0x646   : > { %5962 = vmatpush3.bf16.msk.msra.mxu1 %vm7439_vm3, %v5943_v6  ;;  %5948 = vmatpush3.bf16.msk.msra.mxu0 %vm7439_vm3, %v5943_v6  ;;  %v2952_v8 = vld [vmem:[#allocation12] sm:$0xff]  ;;  %v2953_v22 = vld [vmem:[#allocation12 + $0x8] sm:$0xf]  ;;  %v8436_v43 = vld [vmem:[#allocation3 + $0x20] sm:$0xff] }
 0x647   : > { %v8427_v25 = vpack.c.bf16 %v2953_v22, %v2952_v8  ;;  %v2977_v47 = vld [vmem:[#allocation3 + $0x111] sm:$0xff]  ;;  %v8458_v11 = vld [vmem:[#allocation3 + $0x48] sm:$0xff]  ;;  %v8470_v12 = vld [vmem:[#allocation3 + $0x60] sm:$0xff] }
 0x648   : > { %3008 = vrot.lane.b32.xlu1 %v8333_v37, %s6641_s9  ;;  %3006 = vrot.lane.b32.xlu0 %v8325_v57, %s6641_s9  ;;  %v8438_v58 = vld [vmem:[#allocation3 + $0x18] sm:$0xff]  ;;  %v8446_v4 = vld [vmem:[#allocation3 + $0x30] sm:$0xff]  ;;  %v8468_v34 = vld [vmem:[#allocation3 + $0x68] sm:$0xff] }
 0x649   : > { %5951 = vmatprep.subr.msk.bf16.mxu1 %vm7439_vm3, %v8427_v25  ;;  %v8444_v62 = vld [vmem:[#allocation3 + $0x38] sm:$0xff]  ;;  %v8456_v15 = vld [vmem:[#allocation3 + $0x50] sm:$0xff]  ;;  %v8480_v31 = vld [vmem:[#allocation3 + $0x80] sm:$0xff] }
 0x64a   : > { %v8482_v26 = vld [vmem:[#allocation3 + $0x78] sm:$0xff]  ;;  %v8494_v44 = vld [vmem:[#allocation3 + $0x90] sm:$0xff]  ;;  %v8508_v61 = vld [vmem:[#allocation3 + $0xa8] sm:$0xff] }
 0x64b   : > { %v8492_v14 = vld [vmem:[#allocation3 + $0x98] sm:$0xff]  ;;  %v8506_v53 = vld [vmem:[#allocation3 + $0xb0] sm:$0xff]  ;;  %v8517_v49 = vld [vmem:[#allocation3 + $0x21] sm:$0xff] }
 0x64c   : > { %3070 = vrot.lane.b32.xlu1 %v8345_v55, %s6640_s2  ;;  %3068 = vrot.lane.b32.xlu0 %v8347_v50, %s6640_s2  ;;  %v8504_v13 = vld [vmem:[#allocation3 + $0x19] sm:$0xff]  ;;  %v8727_v51 = vld [vmem:[#allocation3 + $0xca] sm:$0xff] }
 0x650   : > { %3012 = vrot.lane.b32.xlu1 %v8345_v55, %s6641_s9  ;;  %3010 = vrot.lane.b32.xlu0 %v8347_v50, %s6641_s9 }
 0x654   : > { %3074 = vrot.lane.b32.xlu1 %v8365_v40, %s6640_s2  ;;  %3072 = vrot.lane.b32.xlu0 %v8367_v59, %s6640_s2 }
 0x658   : > { %3016 = vrot.lane.b32.xlu1 %v8365_v40, %s6641_s9  ;;  %3014 = vrot.lane.b32.xlu0 %v8367_v59, %s6641_s9 }
 0x65c   : > { %3078 = vrot.lane.b32.xlu1 %v8377_v32, %s6640_s2  ;;  %3076 = vrot.lane.b32.xlu0 %v8379_v56, %s6640_s2 }
 0x660   : > { %3020 = vrot.lane.b32.xlu1 %v8377_v32, %s6641_s9  ;;  %3018 = vrot.lane.b32.xlu0 %v8379_v56, %s6641_s9 }
 0x664   : > { %3082 = vrot.lane.b32.xlu1 %v8389_v33, %s6640_s2  ;;  %3080 = vrot.lane.b32.xlu0 %v8391_v39, %s6640_s2 }
 0x668   : > { %3024 = vrot.lane.b32.xlu1 %v8389_v33, %s6641_s9  ;;  %3022 = vrot.lane.b32.xlu0 %v8391_v39, %s6641_s9 }
 0x66c   : > { %3086 = vrot.lane.b32.xlu1 %v8401_v16, %s6640_s2  ;;  %3084 = vrot.lane.b32.xlu0 %v8403_v46, %s6640_s2 }
 0x670   : > { %3028 = vrot.lane.b32.xlu1 %v8401_v16, %s6641_s9  ;;  %3026 = vrot.lane.b32.xlu0 %v8403_v46, %s6641_s9 }
 0x674   : > { %3090 = vrot.lane.b32.xlu1 %v8413_v45, %s6640_s2  ;;  %3088 = vrot.lane.b32.xlu0 %v8415_v48, %s6640_s2 }
 0x678   : > { %3032 = vrot.lane.b32.xlu1 %v8413_v45, %s6641_s9  ;;  %3030 = vrot.lane.b32.xlu0 %v8415_v48, %s6641_s9 }
 0x67c   : > { %3094 = vrot.lane.b32.xlu1 %v2975_v0, %s6640_s2  ;;  %3092 = vrot.lane.b32.xlu0 %v2974_v5, %s6640_s2 }
 0x680   : > { %3036 = vrot.lane.b32.xlu1 %v2975_v0, %s6641_s9  ;;  %3034 = vrot.lane.b32.xlu0 %v2974_v5, %s6641_s9  ;;  %v8528_v0 = vld [vmem:[#allocation3 + $0xc8] sm:$0xff]  ;;  %v8530_v5 = vld [vmem:[#allocation3 + $0xc0] sm:$0xff] }
 0x684   : > { %3098 = vrot.lane.b32.xlu1 %v2977_v47, %s6640_s2  ;;  %3096 = vrot.lane.b32.xlu0 %v2976_v54, %s6640_s2 }
 0x688   : > { %2792 = vrot.lane.b32.xlu1 %v8436_v43, %s6641_s9  ;;  %2790 = vrot.lane.b32.xlu0 %v8438_v58, %s6641_s9 }
 0x68c   : > { %2854 = vrot.lane.b32.xlu1 %v8444_v62, %s6640_s2  ;;  %2852 = vrot.lane.b32.xlu0 %v8446_v4, %s6640_s2 }
 0x690   : > { %2796 = vrot.lane.b32.xlu1 %v8444_v62, %s6641_s9  ;;  %2794 = vrot.lane.b32.xlu0 %v8446_v4, %s6641_s9 }
 0x694   : > { %2858 = vrot.lane.b32.xlu1 %v8456_v15, %s6640_s2  ;;  %2856 = vrot.lane.b32.xlu0 %v8458_v11, %s6640_s2 }
 0x698   : > { %2800 = vrot.lane.b32.xlu1 %v8456_v15, %s6641_s9  ;;  %2798 = vrot.lane.b32.xlu0 %v8458_v11, %s6641_s9 }
 0x69c   : > { %2862 = vrot.lane.b32.xlu1 %v8468_v34, %s6640_s2  ;;  %2860 = vrot.lane.b32.xlu0 %v8470_v12, %s6640_s2 }
 0x6a0   : > { %2804 = vrot.lane.b32.xlu1 %v8468_v34, %s6641_s9  ;;  %2802 = vrot.lane.b32.xlu0 %v8470_v12, %s6641_s9 }
 0x6a4   : > { %2866 = vrot.lane.b32.xlu1 %v8480_v31, %s6640_s2  ;;  %2864 = vrot.lane.b32.xlu0 %v8482_v26, %s6640_s2 }
 0x6a8   : > { %2808 = vrot.lane.b32.xlu1 %v8480_v31, %s6641_s9  ;;  %2806 = vrot.lane.b32.xlu0 %v8482_v26, %s6641_s9 }
 0x6ac   : > { %2870 = vrot.lane.b32.xlu1 %v8492_v14, %s6640_s2  ;;  %2868 = vrot.lane.b32.xlu0 %v8494_v44, %s6640_s2 }
 0x6b0   : > { %2812 = vrot.lane.b32.xlu1 %v8492_v14, %s6641_s9  ;;  %2810 = vrot.lane.b32.xlu0 %v8494_v44, %s6641_s9 }
 0x6b2   : > { %v3065_v38 = vpop.permute.xlu1 %3064  ;;  %v3003_v60 = vpop.permute.xlu0 %3002 }
 0x6b3   : > { %v3122_v52 = vsel %vm481_vm2, %v8504_v13, %v3003_v60 }
 0x6b4   : > { %2874 = vrot.lane.b32.xlu1 %v8506_v53, %s6640_s2  ;;  %2872 = vrot.lane.b32.xlu0 %v8508_v61, %s6640_s2  ;;  %v3142_v20 = vsel %vm1075_vm4, %v3122_v52, %v3065_v38 }
 0x6b5   : > { %5794 = vmatprep.mubr.msk.f32.mxu1 %vm1351_vm5, %v3142_v20 }
 0x6b6   : > { %v3067_v19 = vpop.permute.xlu1 %3066  ;;  %v3005_v28 = vpop.permute.xlu0 %3004 }
 0x6b7   : > { %v3123_v21 = vsel %vm481_vm2, %v8517_v49, %v3005_v28 }
 0x6b8   : > { %2816 = vrot.lane.b32.xlu1 %v8506_v53, %s6641_s9  ;;  %2814 = vrot.lane.b32.xlu0 %v8508_v61, %s6641_s9  ;;  %v3143_v6 = vsel %vm1075_vm4, %v3123_v21, %v3067_v19  ;;  %v8553_v21 = vld [vmem:[#allocation3 + $0xd8] sm:$0xff] }
 0x6b9   : > { %5795 = vmatmul.mubr.msk.f32.vlgmr.msra.gmra.mrb[0].mxu1 %vm1351_vm5, %v3143_v6 }
 0x6ba   : > { %v3009_v8 = vpop.permute.xlu1 %3008  ;;  %v3007_v22 = vpop.permute.xlu0 %3006  ;;  %5954 = vmatpush3.bf16.msk.msra.mxu1 %vm7439_vm3, %v8427_v25  ;;  %v8551_v25 = vld [vmem:[#allocation3 + $0xe0] sm:$0xff] }
 0x6bb   : > { %v3125_v47 = vsel %vm481_vm2, %v8335_v27, %v3009_v8  ;;  %v3124_v54 = vsel %vm481_vm2, %v8327_v63, %v3007_v22 }
 0x6bc   : > { %2878 = vrot.lane.b32.xlu1 %v8528_v0, %s6640_s2  ;;  %2876 = vrot.lane.b32.xlu0 %v8530_v5, %s6640_s2 }
 0x6be   : > { %v3071_v38 = vpop.permute.xlu1 %3070  ;;  %v3069_v60 = vpop.permute.xlu0 %3068 }
 0x6bf   : > { %v3144_v52 = vsel %vm1075_vm4, %v3124_v54, %v3069_v60  ;;  %v3145_v20 = vsel %vm1075_vm4, %v3125_v47, %v3071_v38 }
 0x6c0   : > { %5797 = vmatprep.mubr.msk.f32.mxu1 %vm1351_vm5, %v3144_v52  ;;  %2820 = vrot.lane.b32.xlu1 %v8528_v0, %s6641_s9 }
 0x6c1   : > { %2818 = vrot.lane.b32.xlu0 %v8530_v5, %s6641_s9  ;;  %5798 = vmatmul.mubr.msk.f32.gmra.mrb[2].mxu1 %vm1351_vm5, %v3145_v20  ;;  %v3826_v20 = vld [vmem:[#allocation12 + $0x20] sm:$0xff] }
 0x6c2   : > { %v3013_v19 = vpop.permute.xlu1 %3012  ;;  %v3011_v28 = vpop.permute.xlu0 %3010 }
 0x6c3   : > { %v3127_v6 = vsel %vm481_vm2, %v8333_v37, %v3013_v19  ;;  %v3126_v8 = vsel %vm481_vm2, %v8325_v57, %v3011_v28  ;;  %v2767_v37 = vld [vmem:[#allocation3 + $0xf8] sm:$0xff]  ;;  %v2766_v57 = vld [vmem:[#allocation3 + $0xf0] sm:$0xff] }
 0x6c4   : > { %2882 = vrot.lane.b32.xlu1 %v8551_v25, %s6640_s2  ;;  %v3827_v19 = vld [vmem:[#allocation12 + $0x28] sm:$0xf] }
 0x6c5   : > { %2880 = vrot.lane.b32.xlu0 %v8553_v21, %s6640_s2  ;;  %v8572_v28 = vpack.c.bf16 %v3827_v19, %v3826_v20  ;;  %v8590_v20 = vld [vmem:[#allocation3 + $0x22] sm:$0xff] }
 0x6c6   : > { %v3075_v22 = vpop.permute.xlu1 %3074  ;;  %v3073_v47 = vpop.permute.xlu0 %3072 }
 0x6c7   : > { %v3146_v54 = vsel %vm1075_vm4, %v3126_v8, %v3073_v47  ;;  %v3147_v38 = vsel %vm1075_vm4, %v3127_v6, %v3075_v22  ;;  %5957 = vmatprep.subr.msk.bf16.mxu1 %vm7439_vm3, %v8572_v28 }
 0x6c8   : > { %5800 = vmatprep.mubr.msk.f32.mxu1 %vm1351_vm5, %v3146_v54  ;;  %2824 = vrot.lane.b32.xlu1 %v8551_v25, %s6641_s9 }
 0x6c9   : > { %2822 = vrot.lane.b32.xlu0 %v8553_v21, %s6641_s9  ;;  %5801 = vmatmul.mubr.msk.f32.gmra.mrb[4].mxu1 %vm1351_vm5, %v3147_v38 }
 0x6ca   : > { %v3017_v60 = vpop.permute.xlu1 %3016  ;;  %v3015_v52 = vpop.permute.xlu0 %3014 }
 0x6cb   : > { %v3129_v6 = vsel %vm481_vm2, %v8345_v55, %v3017_v60  ;;  %v3128_v8 = vsel %vm481_vm2, %v8347_v50, %v3015_v52  ;;  %v2769_v55 = vld [vmem:[#allocation3 + $0x110] sm:$0xff]  ;;  %v2768_v52 = vld [vmem:[#allocation3 + $0x108] sm:$0xff] }
 0x6cc   : > { %2886 = vrot.lane.b32.xlu1 %v2767_v37, %s6640_s2 }
 0x6cd   : > { %2884 = vrot.lane.b32.xlu0 %v2766_v57, %s6640_s2 }
 0x6ce   : > { %v3079_v22 = vpop.permute.xlu1 %3078  ;;  %v3077_v47 = vpop.permute.xlu0 %3076 }
 0x6cf   : > { %v3148_v54 = vsel %vm1075_vm4, %v3128_v8, %v3077_v47  ;;  %v3149_v38 = vsel %vm1075_vm4, %v3129_v6, %v3079_v22  ;;  %v8596_v8 = vld [vmem:[#allocation3 + $0x1a] sm:$0xff] }
 0x6d0   : > { %5803 = vmatprep.mubr.msk.f32.mxu1 %vm1351_vm5, %v3148_v54  ;;  %2828 = vrot.lane.b32.xlu1 %v2767_v37, %s6641_s9 }
 0x6d1   : > { %2826 = vrot.lane.b32.xlu0 %v2766_v57, %s6641_s9  ;;  %5804 = vmatmul.mubr.msk.f32.gmra.mrb[6].mxu1 %vm1351_vm5, %v3149_v38  ;;  %v8608_v38 = vld [vmem:[#allocation3 + $0x32] sm:$0xff] }
 0x6d2   : > { %v3021_v50 = vpop.permute.xlu1 %3020  ;;  %v3019_v60 = vpop.permute.xlu0 %3018 }
 0x6d3   : > { %v3131_v19 = vsel %vm481_vm2, %v8365_v40, %v3021_v50  ;;  %v3130_v37 = vsel %vm481_vm2, %v8367_v59, %v3019_v60  ;;  %v8606_v40 = vld [vmem:[#allocation3 + $0x3a] sm:$0xff] }
 0x6d4   : > { %2890 = vrot.lane.b32.xlu1 %v2769_v55, %s6640_s2 }
 0x6d5   : > { %2888 = vrot.lane.b32.xlu0 %v2768_v52, %s6640_s2 }
 0x6d6   : > { %v3083_v6 = vpop.permute.xlu1 %3082  ;;  %v3081_v57 = vpop.permute.xlu0 %3080 }
 0x6d7   : > { %v3150_v22 = vsel %vm1075_vm4, %v3130_v37, %v3081_v57  ;;  %v3151_v47 = vsel %vm1075_vm4, %v3131_v19, %v3083_v6 }
 0x6d8   : > { %5806 = vmatprep.mubr.msk.f32.mxu1 %vm1351_vm5, %v3150_v22  ;;  %3665 = vrot.lane.b32.xlu1 %v8590_v20, %s6641_s9 }
 0x6d9   : > { %3663 = vrot.lane.b32.xlu0 %v8596_v8, %s6641_s9  ;;  %5807 = vmatmul.mubr.msk.f32.gmra.mrb[8].mxu1 %vm1351_vm5, %v3151_v47 }
 0x6da   : > { %v3025_v59 = vpop.permute.xlu1 %3024  ;;  %v3023_v54 = vpop.permute.xlu0 %3022 }
 0x6db   : > { %v3133_v55 = vsel %vm481_vm2, %v8377_v32, %v3025_v59  ;;  %v3132_v60 = vsel %vm481_vm2, %v8379_v56, %v3023_v54  ;;  %v8626_v32 = vld [vmem:[#allocation3 + $0x52] sm:$0xff]  ;;  %v8628_v56 = vld [vmem:[#allocation3 + $0x4a] sm:$0xff] }
 0x6dc   : > { %3727 = vrot.lane.b32.xlu1 %v8606_v40, %s6640_s2 }
 0x6dd   : > { %3725 = vrot.lane.b32.xlu0 %v8608_v38, %s6640_s2 }
 0x6de   : > { %v3087_v50 = vpop.permute.xlu1 %3086  ;;  %v3085_v52 = vpop.permute.xlu0 %3084 }
 0x6df   : > { %v3153_v19 = vsel %vm1075_vm4, %v3133_v55, %v3087_v50  ;;  %v3152_v37 = vsel %vm1075_vm4, %v3132_v60, %v3085_v52  ;;  %v8648_v52 = vld [vmem:[#allocation3 + $0x62] sm:$0xff] }
 0x6e0   : > { %5809 = vmatprep.mubr.msk.f32.mxu1 %vm1351_vm5, %v3152_v37  ;;  %3669 = vrot.lane.b32.xlu1 %v8606_v40, %s6641_s9 }
 0x6e1   : > { %3667 = vrot.lane.b32.xlu0 %v8608_v38, %s6641_s9  ;;  %5810 = vmatmul.mubr.msk.f32.gmra.mrb[10].mxu1 %vm1351_vm5, %v3153_v19 }
 0x6e2   : > { %v3029_v6 = vpop.permute.xlu1 %3028  ;;  %v3027_v57 = vpop.permute.xlu0 %3026 }
 0x6e3   : > { %v3135_v22 = vsel %vm481_vm2, %v8389_v33, %v3029_v6  ;;  %v3134_v47 = vsel %vm481_vm2, %v8391_v39, %v3027_v57  ;;  %v8646_v33 = vld [vmem:[#allocation3 + $0x6a] sm:$0xff] }
 0x6e4   : > { %3731 = vrot.lane.b32.xlu1 %v8626_v32, %s6640_s2 }
 0x6e5   : > { %3729 = vrot.lane.b32.xlu0 %v8628_v56, %s6640_s2 }
 0x6e6   : > { %v3091_v59 = vpop.permute.xlu1 %3090  ;;  %v3089_v54 = vpop.permute.xlu0 %3088 }
 0x6e7   : > { %v3155_v55 = vsel %vm1075_vm4, %v3135_v22, %v3091_v59  ;;  %v3154_v50 = vsel %vm1075_vm4, %v3134_v47, %v3089_v54  ;;  %v8668_v54 = vld [vmem:[#allocation3 + $0x7a] sm:$0xff] }
 0x6e8   : > { %5812 = vmatprep.mubr.msk.f32.mxu1 %vm1351_vm5, %v3154_v50  ;;  %3673 = vrot.lane.b32.xlu1 %v8626_v32, %s6641_s9 }
 0x6e9   : > { %3671 = vrot.lane.b32.xlu0 %v8628_v56, %s6641_s9  ;;  %5813 = vmatmul.mubr.msk.f32.gmra.mrb[12].mxu1 %vm1351_vm5, %v3155_v55 }
 0x6ea   : > { %v3033_v60 = vpop.permute.xlu1 %3032  ;;  %v3031_v39 = vpop.permute.xlu0 %3030 }
 0x6eb   : > { %v3137_v19 = vsel %vm481_vm2, %v8401_v16, %v3033_v60  ;;  %v3136_v37 = vsel %vm481_vm2, %v8403_v46, %v3031_v39  ;;  %v8666_v16 = vld [vmem:[#allocation3 + $0x82] sm:$0xff] }
 0x6ec   : > { %3735 = vrot.lane.b32.xlu1 %v8646_v33, %s6640_s2 }
 0x6ed   : > { %3733 = vrot.lane.b32.xlu0 %v8648_v52, %s6640_s2 }
 0x6ee   : > { %v3095_v6 = vpop.permute.xlu1 %3094  ;;  %v3093_v57 = vpop.permute.xlu0 %3092 }
 0x6ef   : > { %v3157_v22 = vsel %vm1075_vm4, %v3137_v19, %v3095_v6  ;;  %v3156_v47 = vsel %vm1075_vm4, %v3136_v37, %v3093_v57  ;;  %v8688_v57 = vld [vmem:[#allocation3 + $0x92] sm:$0xff] }
 0x6f0   : > { %5815 = vmatprep.mubr.msk.f32.mxu1 %vm1351_vm5, %v3156_v47  ;;  %3677 = vrot.lane.b32.xlu1 %v8646_v33, %s6641_s9  ;;  %v2746_v47 = vld [vmem:[#allocation3] sm:$0xff] }
 0x6f1   : > { %3675 = vrot.lane.b32.xlu0 %v8648_v52, %s6641_s9  ;;  %5816 = vmatmul.mubr.msk.f32.gmra.mrb[14].mxu1 %vm1351_vm5, %v3157_v22  ;;  %v2747_v22 = vld [vmem:[#allocation3 + $0x8] sm:$0xff] }
 0x6f2   : > { %v3037_v59 = vpop.permute.xlu1 %3036  ;;  %v3035_v46 = vpop.permute.xlu0 %3034 }
 0x6f3   : > { %v3139_v55 = vsel %vm481_vm2, %v8413_v45, %v3037_v59  ;;  %v3138_v50 = vsel %vm481_vm2, %v8415_v48, %v3035_v46  ;;  %v8686_v45 = vld [vmem:[#allocation3 + $0x9a] sm:$0xff] }
 0x6f4   : > { %3739 = vrot.lane.b32.xlu1 %v8666_v16, %s6640_s2 }
 0x6f5   : > { %3737 = vrot.lane.b32.xlu0 %v8668_v54, %s6640_s2 }
 0x6f6   : > { %v3099_v60 = vpop.permute.xlu1 %3098  ;;  %v3097_v39 = vpop.permute.xlu0 %3096 }
 0x6f7   : > { %v3159_v19 = vsel %vm1075_vm4, %v3139_v55, %v3099_v60  ;;  %v3158_v37 = vsel %vm1075_vm4, %v3138_v50, %v3097_v39 }
 0x6f8   : > { %5818 = vmatprep.mubr.msk.f32.mxu1 %vm1351_vm5, %v3158_v37  ;;  %3681 = vrot.lane.b32.xlu1 %v8666_v16, %s6641_s9 }
 0x6f9   : > { %3679 = vrot.lane.b32.xlu0 %v8668_v54, %s6641_s9  ;;  %5819 = vmatmul.mubr.msk.f32.gmra.mrb[16].mxu1 %vm1351_vm5, %v3159_v19  ;;  %v8704_v19 = vld [vmem:[#allocation3 + $0xb2] sm:$0xff] }
 0x6fa   : > { %v2793_v6 = vpop.permute.xlu1 %2792  ;;  %v2791_v48 = vpop.permute.xlu0 %2790 }
 0x6fb   : > { %v2913_v59 = vsel %vm481_vm2, %v2747_v22, %v2793_v6  ;;  %v2912_v46 = vsel %vm481_vm2, %v2746_v47, %v2791_v48  ;;  %v8706_v48 = vld [vmem:[#allocation3 + $0xaa] sm:$0xff] }
 0x6fc   : > { %3743 = vrot.lane.b32.xlu1 %v8686_v45, %s6640_s2 }
 0x6fd   : > { %3741 = vrot.lane.b32.xlu0 %v8688_v57, %s6640_s2 }
 0x6fe   : > { %v2855_v55 = vpop.permute.xlu1 %2854  ;;  %v2853_v50 = vpop.permute.xlu0 %2852 }
 0x6ff   : > { %v2933_v60 = vsel %vm1075_vm4, %v2913_v59, %v2855_v55  ;;  %v2932_v39 = vsel %vm1075_vm4, %v2912_v46, %v2853_v50 }
 0x700   : > { %3685 = vrot.lane.b32.xlu1 %v8686_v45, %s6641_s9  ;;  %5825 = vmatprep.mubr.msk.f32.mxu1 %vm1351_vm5, %v2932_v39 }
 0x701   : > { %3683 = vrot.lane.b32.xlu0 %v8688_v57, %s6641_s9  ;;  %5826 = vmatmul.mubr.msk.f32.vlgmr.msra.gmra.mrb[18].mxu1 %vm1351_vm5, %v2933_v60 }
 0x702   : > { %v2797_v37 = vpop.permute.xlu1 %2796  ;;  %v2795_v6 = vpop.permute.xlu0 %2794  ;;  %5960 = vmatpush3.bf16.msk.msra.mxu1 %vm7439_vm3, %v8572_v28  ;;  %v8729_v28 = vld [vmem:[#allocation3 + $0xc2] sm:$0xff]  ;;  %vm4127_vm3 = vcmask (!%p5302_p0), 58368  }
 0x703   : > { %v2915_v22 = vsel %vm481_vm2, %v8436_v43, %v2797_v37  ;;  %v2914_v47 = vsel %vm481_vm2, %v8438_v58, %v2795_v6 }
 0x704   : > { %3747 = vrot.lane.b32.xlu1 %v8704_v19, %s6640_s2 }
 0x705   : > { %3745 = vrot.lane.b32.xlu0 %v8706_v48, %s6640_s2 }
 0x706   : > { %v2859_v59 = vpop.permute.xlu1 %2858  ;;  %v2857_v46 = vpop.permute.xlu0 %2856 }
 0x707   : > { %v2935_v55 = vsel %vm1075_vm4, %v2915_v22, %v2859_v59  ;;  %v2934_v50 = vsel %vm1075_vm4, %v2914_v47, %v2857_v46  ;;  %v8749_v46 = vld [vmem:[#allocation3 + $0xda] sm:$0xff] }
 0x708   : > { %3689 = vrot.lane.b32.xlu1 %v8704_v19, %s6641_s9  ;;  %5828 = vmatprep.mubr.msk.f32.mxu1 %vm1351_vm5, %v2934_v50 }
 0x709   : > { %3687 = vrot.lane.b32.xlu0 %v8706_v48, %s6641_s9  ;;  %5829 = vmatmul.mubr.msk.f32.gmra.mrb[0].mxu1 %vm1351_vm5, %v2935_v55 }
 0x70a   : > { %v2801_v43 = vpop.permute.xlu1 %2800  ;;  %v2799_v58 = vpop.permute.xlu0 %2798 }
 0x70b   : > { %v2917_v60 = vsel %vm481_vm2, %v8444_v62, %v2801_v43  ;;  %v2916_v39 = vsel %vm481_vm2, %v8446_v4, %v2799_v58  ;;  %v8747_v62 = vld [vmem:[#allocation3 + $0xe2] sm:$0xff] }
 0x70c   : > { %3751 = vrot.lane.b32.xlu1 %v8727_v51, %s6640_s2 }
 0x70d   : > { %3749 = vrot.lane.b32.xlu0 %v8729_v28, %s6640_s2 }
 0x70e   : > { %v2863_v37 = vpop.permute.xlu1 %2862  ;;  %v2861_v6 = vpop.permute.xlu0 %2860 }
 0x70f   : > { %v2937_v22 = vsel %vm1075_vm4, %v2917_v60, %v2863_v37  ;;  %v2936_v47 = vsel %vm1075_vm4, %v2916_v39, %v2861_v6  ;;  %v3639_v6 = vld [vmem:[#allocation3 + $0xf2] sm:$0xff] }
 0x710   : > { %3693 = vrot.lane.b32.xlu1 %v8727_v51, %s6641_s9  ;;  %5831 = vmatprep.mubr.msk.f32.mxu1 %vm1351_vm5, %v2936_v47 }
 0x711   : > { %3691 = vrot.lane.b32.xlu0 %v8729_v28, %s6641_s9  ;;  %5832 = vmatmul.mubr.msk.f32.gmra.mrb[2].mxu1 %vm1351_vm5, %v2937_v22 }
 0x712   : > { %v2805_v59 = vpop.permute.xlu1 %2804  ;;  %v2803_v4 = vpop.permute.xlu0 %2802 }
 0x713   : > { %v2919_v55 = vsel %vm481_vm2, %v8456_v15, %v2805_v59  ;;  %v2918_v50 = vsel %vm481_vm2, %v8458_v11, %v2803_v4  ;;  %v3640_v4 = vld [vmem:[#allocation3 + $0xfa] sm:$0xff] }
 0x714   : > { %3755 = vrot.lane.b32.xlu1 %v8747_v62, %s6640_s2 }
 0x715   : > { %3753 = vrot.lane.b32.xlu0 %v8749_v46, %s6640_s2 }
 0x716   : > { %v2867_v43 = vpop.permute.xlu1 %2866  ;;  %v2865_v58 = vpop.permute.xlu0 %2864 }
 0x717   : > { %v2939_v60 = vsel %vm1075_vm4, %v2919_v55, %v2867_v43  ;;  %v2938_v39 = vsel %vm1075_vm4, %v2918_v50, %v2865_v58 }
 0x718   : > { %3697 = vrot.lane.b32.xlu1 %v8747_v62, %s6641_s9  ;;  %5834 = vmatprep.mubr.msk.f32.mxu1 %vm1351_vm5, %v2938_v39 }
 0x719   : > { %3695 = vrot.lane.b32.xlu0 %v8749_v46, %s6641_s9  ;;  %5835 = vmatmul.mubr.msk.f32.gmra.mrb[4].mxu1 %vm1351_vm5, %v2939_v60 }
 0x71a   : > { %v2809_v15 = vpop.permute.xlu1 %2808  ;;  %v2807_v37 = vpop.permute.xlu0 %2806 }
 0x71b   : > { %v2921_v11 = vsel %vm481_vm2, %v8468_v34, %v2809_v15  ;;  %v2920_v22 = vsel %vm481_vm2, %v8470_v12, %v2807_v37  ;;  %v3641_v15 = vld [vmem:[#allocation3 + $0x10a] sm:$0xff] }
 0x71c   : > { %2998 = vrot.lane.b32.xlu1 %v8504_v13, %s6641_s9 }
 0x71d   : > { %3757 = vrot.lane.b32.xlu0 %v3639_v6, %s6640_s2 }
 0x71e   : > { %v2871_v47 = vpop.permute.xlu1 %2870  ;;  %v2869_v59 = vpop.permute.xlu0 %2868 }
 0x71f   : > { %v2941_v55 = vsel %vm1075_vm4, %v2921_v11, %v2871_v47  ;;  %v2940_v50 = vsel %vm1075_vm4, %v2920_v22, %v2869_v59 }
 0x720   : > { %3000 = vrot.lane.b32.xlu1 %v8517_v49, %s6641_s9  ;;  %5837 = vmatprep.mubr.msk.f32.mxu1 %vm1351_vm5, %v2940_v50 }
 0x721   : > { %3759 = vrot.lane.b32.xlu0 %v3640_v4, %s6640_s2  ;;  %5838 = vmatmul.mubr.msk.f32.gmra.mrb[6].mxu1 %vm1351_vm5, %v2941_v55 }
 0x722   : > { %v2813_v34 = vpop.permute.xlu1 %2812  ;;  %v2811_v13 = vpop.permute.xlu0 %2810 }
 0x723   : > { %v2923_v12 = vsel %vm481_vm2, %v8480_v31, %v2813_v34  ;;  %v2922_v49 = vsel %vm481_vm2, %v8482_v26, %v2811_v13 }
 0x724   : > { %3062 = vrot.lane.b32.xlu1 %v8335_v27, %s6640_s2 }
 0x725   : > { %3060 = vrot.lane.b32.xlu0 %v8327_v63, %s6640_s2  ;;  %v3642_v63 = vld [vmem:[#allocation3 + $0x112] sm:$0xff] }
 0x726   : > { %v2875_v43 = vpop.permute.xlu1 %2874  ;;  %v2873_v58 = vpop.permute.xlu0 %2872 }
 0x727   : > { %v2943_v60 = vsel %vm1075_vm4, %v2923_v12, %v2875_v43  ;;  %v2942_v39 = vsel %vm1075_vm4, %v2922_v49, %v2873_v58 }
 0x728   : > { %3701 = vrot.lane.b32.xlu1 %v3640_v4, %s6641_s9  ;;  %5840 = vmatprep.mubr.msk.f32.mxu1 %vm1351_vm5, %v2942_v39 }
 0x729   : > { %3699 = vrot.lane.b32.xlu0 %v3639_v6, %s6641_s9  ;;  %5841 = vmatmul.mubr.msk.f32.gmra.mrb[8].mxu1 %vm1351_vm5, %v2943_v60 }
 0x72a   : > { %v2817_v27 = vpop.permute.xlu1 %2816  ;;  %v2815_v31 = vpop.permute.xlu0 %2814 }
 0x72b   : > { %v2925_v26 = vsel %vm481_vm2, %v8492_v14, %v2817_v27  ;;  %v2924_v37 = vsel %vm481_vm2, %v8494_v44, %v2815_v31 }
 0x72c   : > { %3763 = vrot.lane.b32.xlu1 %v3642_v63, %s6640_s2 }
 0x72d   : > { %3761 = vrot.lane.b32.xlu0 %v3641_v15, %s6640_s2 }
 0x72e   : > { %v2879_v11 = vpop.permute.xlu1 %2878  ;;  %v2877_v22 = vpop.permute.xlu0 %2876 }
 0x72f   : > { %v2945_v6 = vsel %vm1075_vm4, %v2925_v26, %v2879_v11  ;;  %v2944_v47 = vsel %vm1075_vm4, %v2924_v37, %v2877_v22  ;;  %v3620_v22 = vld [vmem:[#allocation3 + $0xa] sm:$0xff] }
 0x730   : > { %5843 = vmatprep.mubr.msk.f32.mxu1 %vm1351_vm5, %v2944_v47  ;;  %v3619_v47 = vld [vmem:[#allocation3 + $0x2] sm:$0xff] }
 0x731   : > { %5844 = vmatmul.mubr.msk.f32.gmra.mrb[10].mxu1 %vm1351_vm5, %v2945_v6 }
 0x732   : > { %v2821_v59 = vpop.permute.xlu1 %2820 }
 0x733   : > { %v2819_v4 = vpop.permute.xlu0 %2818  ;;  %v2927_v55 = vsel %vm481_vm2, %v8506_v53, %v2821_v59 }
 0x734   : > { %v2926_v14 = vsel %vm481_vm2, %v8508_v61, %v2819_v4 }
 0x736   : > { %v2883_v50 = vpop.permute.xlu1 %2882 }
 0x737   : > { %v2947_v44 = vsel %vm1075_vm4, %v2927_v55, %v2883_v50  ;;  %v2881_v34 = vpop.permute.xlu0 %2880 }
 0x738   : > { %v2946_v13 = vsel %vm1075_vm4, %v2926_v14, %v2881_v34 }
 0x739   : > { %5846 = vmatprep.mubr.msk.f32.mxu1 %vm1351_vm5, %v2946_v13 }
 0x73a   : > { %5847 = vmatmul.mubr.msk.f32.gmra.mrb[12].mxu1 %vm1351_vm5, %v2947_v44  ;;  %v2825_v12 = vpop.permute.xlu1 %2824 }
 0x73b   : > { %v2823_v49 = vpop.permute.xlu0 %2822  ;;  %v2929_v43 = vsel %vm481_vm2, %v8528_v0, %v2825_v12 }
 0x73c   : > { %v2928_v53 = vsel %vm481_vm2, %v8530_v5, %v2823_v49 }
 0x73e   : > { %v2887_v58 = vpop.permute.xlu1 %2886 }
 0x73f   : > { %v2949_v61 = vsel %vm1075_vm4, %v2929_v43, %v2887_v58  ;;  %v2885_v60 = vpop.permute.xlu0 %2884 }
 0x740   : > { %v2948_v39 = vsel %vm1075_vm4, %v2928_v53, %v2885_v60 }
 0x741   : > { %5849 = vmatprep.mubr.msk.f32.mxu1 %vm1351_vm5, %v2948_v39 }
 0x742   : > { %5850 = vmatmul.mubr.msk.f32.gmra.mrb[14].mxu1 %vm1351_vm5, %v2949_v61  ;;  %v2829_v63 = vpop.permute.xlu1 %2828 }
 0x743   : > { %v2827_v27 = vpop.permute.xlu0 %2826  ;;  %v2931_v31 = vsel %vm481_vm2, %v8551_v25, %v2829_v63 }
 0x744   : > { %v2930_v0 = vsel %vm481_vm2, %v8553_v21, %v2827_v27 }
 0x746   : > { %v2891_v15 = vpop.permute.xlu1 %2890 }
 0x747   : > { %v2951_v5 = vsel %vm1075_vm4, %v2931_v31, %v2891_v15  ;;  %v2889_v26 = vpop.permute.xlu0 %2888 }
 0x748   : > { %v2950_v37 = vsel %vm1075_vm4, %v2930_v0, %v2889_v26 }
 0x749   : > { %5852 = vmatprep.mubr.msk.f32.mxu1 %vm1351_vm5, %v2950_v37 }
 0x74a   : > { %5853 = vmatmul.mubr.msk.f32.gmra.mrb[16].mxu1 %vm1351_vm5, %v2951_v5  ;;  %v3666_v11 = vpop.permute.xlu1 %3665 }
 0x74b   : > { %v3664_v6 = vpop.permute.xlu0 %3663  ;;  %v3786_v59 = vsel %vm481_vm2, %v3620_v22, %v3666_v11 }
 0x74c   : > { %v3785_v4 = vsel %vm481_vm2, %v3619_v47, %v3664_v6 }
 0x74e   : > { %v3728_v25 = vpop.permute.xlu1 %3727 }
 0x74f   : > { %v3806_v21 = vsel %vm1075_vm4, %v3786_v59, %v3728_v25  ;;  %v3726_v55 = vpop.permute.xlu0 %3725 }
 0x750   : > { %v3805_v50 = vsel %vm1075_vm4, %v3785_v4, %v3726_v55 }
 0x751   : > { %5859 = vmatprep.mubr.msk.f32.mxu1 %vm1351_vm5, %v3805_v50 }
 0x752   : > { %5860 = vmatmul.mubr.msk.f32.vlgmr.msra.gmra.mrb[18].mxu1 %vm1351_vm5, %v3806_v21  ;;  %v3670_v14 = vpop.permute.xlu1 %3669 }
 0x753   : > { %v3668_v44 = vpop.permute.xlu0 %3667  ;;  %v3788_v34 = vsel %vm481_vm2, %v8590_v20, %v3670_v14 }
 0x754   : > { %v3787_v12 = vsel %vm481_vm2, %v8596_v8, %v3668_v44 }
 0x756   : > { %v3732_v13 = vpop.permute.xlu1 %3731 }
 0x757   : > { %v3808_v49 = vsel %vm1075_vm4, %v3788_v34, %v3732_v13  ;;  %v3730_v43 = vpop.permute.xlu0 %3729 }
 0x758   : > { %v3807_v58 = vsel %vm1075_vm4, %v3787_v12, %v3730_v43 }
 0x759   : > { %5862 = vmatprep.mubr.msk.f32.mxu1 %vm1351_vm5, %v3807_v58 }
 0x75a   : > { %5863 = vmatmul.mubr.msk.f32.gmra.mrb[0].mxu1 %vm1351_vm5, %v3808_v49  ;;  %v3674_v53 = vpop.permute.xlu1 %3673 }
 0x75b   : > { %v3672_v61 = vpop.permute.xlu0 %3671  ;;  %v3790_v60 = vsel %vm481_vm2, %v8606_v40, %v3674_v53 }
 0x75c   : > { %v3789_v20 = vsel %vm481_vm2, %v8608_v38, %v3672_v61 }
 0x75e   : > { %v3736_v39 = vpop.permute.xlu1 %3735 }
 0x75f   : > { %v3810_v8 = vsel %vm1075_vm4, %v3790_v60, %v3736_v39  ;;  %v3734_v63 = vpop.permute.xlu0 %3733 }
 0x760   : > { %v3809_v27 = vsel %vm1075_vm4, %v3789_v20, %v3734_v63 }
 0x761   : > { %5865 = vmatprep.mubr.msk.f32.mxu1 %vm1351_vm5, %v3809_v27 }
 0x762   : > { %5866 = vmatmul.mubr.msk.f32.gmra.mrb[2].mxu1 %vm1351_vm5, %v3810_v8  ;;  %v3678_v31 = vpop.permute.xlu1 %3677 }
 0x763   : > { %v3676_v15 = vpop.permute.xlu0 %3675  ;;  %v3792_v0 = vsel %vm481_vm2, %v8626_v32, %v3678_v31 }
 0x764   : > { %v3791_v40 = vsel %vm481_vm2, %v8628_v56, %v3676_v15 }
 0x766   : > { %v3740_v5 = vpop.permute.xlu1 %3739 }
 0x767   : > { %v3812_v38 = vsel %vm1075_vm4, %v3792_v0, %v3740_v5  ;;  %v3738_v26 = vpop.permute.xlu0 %3737 }
 0x768   : > { %v3811_v37 = vsel %vm1075_vm4, %v3791_v40, %v3738_v26  ;;  %v2955_v40 = vld [vmem:[#allocation3 + $0x9] sm:$0xff]  ;;  %v2954_v26 = vld [vmem:[#allocation3 + $0x1] sm:$0xff] }
 0x769   : > { %5868 = vmatprep.mubr.msk.f32.mxu1 %vm1351_vm5, %v3811_v37 }
 0x76a   : > { %5869 = vmatmul.mubr.msk.f32.gmra.mrb[4].mxu1 %vm1351_vm5, %v3812_v38  ;;  %v3682_v11 = vpop.permute.xlu1 %3681 }
 0x76b   : > { %v3680_v22 = vpop.permute.xlu0 %3679  ;;  %v3794_v6 = vsel %vm481_vm2, %v8646_v33, %v3682_v11 }
 0x76c   : > { %v3793_v32 = vsel %vm481_vm2, %v8648_v52, %v3680_v22 }
 0x76e   : > { %v3744_v47 = vpop.permute.xlu1 %3743 }
 0x76f   : > { %v3814_v56 = vsel %vm1075_vm4, %v3794_v6, %v3744_v47  ;;  %v3742_v59 = vpop.permute.xlu0 %3741 }
 0x770   : > { %v3813_v25 = vsel %vm1075_vm4, %v3793_v32, %v3742_v59 }
 0x771   : > { %5871 = vmatprep.mubr.msk.f32.mxu1 %vm1351_vm5, %v3813_v25 }
 0x772   : > { %5872 = vmatmul.mubr.msk.f32.gmra.mrb[6].mxu1 %vm1351_vm5, %v3814_v56  ;;  %v3686_v4 = vpop.permute.xlu1 %3685 }
 0x773   : > { %v3684_v21 = vpop.permute.xlu0 %3683  ;;  %v3796_v55 = vsel %vm481_vm2, %v8666_v16, %v3686_v4 }
 0x774   : > { %v3795_v33 = vsel %vm481_vm2, %v8668_v54, %v3684_v21 }
 0x776   : > { %v3748_v50 = vpop.permute.xlu1 %3747 }
 0x777   : > { %v3816_v52 = vsel %vm1075_vm4, %v3796_v55, %v3748_v50  ;;  %v3746_v14 = vpop.permute.xlu0 %3745 }
 0x778   : > { %v3815_v44 = vsel %vm1075_vm4, %v3795_v33, %v3746_v14  ;;  %v5454_v14 = vld [vmem:[#allocation14] ss:$0 sm:$0xff] }
 0x779   : > { %5874 = vmatprep.mubr.msk.f32.mxu1 %vm1351_vm5, %v3815_v44 }
 0x77a   : > { %5875 = vmatmul.mubr.msk.f32.gmra.mrb[8].mxu1 %vm1351_vm5, %v3816_v52  ;;  %v3690_v34 = vpop.permute.xlu1 %3689 }
 0x77b   : > { %v3688_v13 = vpop.permute.xlu0 %3687  ;;  %v3798_v12 = vsel %vm481_vm2, %v8686_v45, %v3690_v34 }
 0x77c   : > { %v3797_v16 = vsel %vm481_vm2, %v8688_v57, %v3688_v13 }
 0x77e   : > { %v3752_v49 = vpop.permute.xlu1 %3751 }
 0x77f   : > { %v3818_v54 = vsel %vm1075_vm4, %v3798_v12, %v3752_v49  ;;  %v3750_v43 = vpop.permute.xlu0 %3749 }
 0x780   : > { %v3817_v58 = vsel %vm1075_vm4, %v3797_v16, %v3750_v43 }
 0x781   : > { %5877 = vmatprep.mubr.msk.f32.mxu1 %vm1351_vm5, %v3817_v58 }
 0x782   : > { %5878 = vmatmul.mubr.msk.f32.gmra.mrb[10].mxu1 %vm1351_vm5, %v3818_v54  ;;  %v3694_v53 = vpop.permute.xlu1 %3693 }
 0x783   : > { %v3692_v61 = vpop.permute.xlu0 %3691  ;;  %v3800_v60 = vsel %vm481_vm2, %v8704_v19, %v3694_v53 }
 0x784   : > { %v3799_v45 = vsel %vm481_vm2, %v8706_v48, %v3692_v61 }
 0x786   : > { %v3756_v39 = vpop.permute.xlu1 %3755 }
 0x787   : > { %v3820_v57 = vsel %vm1075_vm4, %v3800_v60, %v3756_v39  ;;  %v3754_v20 = vpop.permute.xlu0 %3753 }
 0x788   : > { %v3819_v8 = vsel %vm1075_vm4, %v3799_v45, %v3754_v20 }
 0x789   : > { %5880 = vmatprep.mubr.msk.f32.mxu1 %vm1351_vm5, %v3819_v8 }
 0x78a   : > { %5881 = vmatmul.mubr.msk.f32.gmra.mrb[12].mxu1 %vm1351_vm5, %v3820_v57  ;;  %v3698_v63 = vpop.permute.xlu1 %3697 }
 0x78b   : > { %v3696_v27 = vpop.permute.xlu0 %3695  ;;  %v3802_v5 = vsel %vm481_vm2, %v8727_v51, %v3698_v63 }
 0x78c   : > { %v3801_v15 = vsel %vm481_vm2, %v8729_v28, %v3696_v27 }
 0x78e   : > { %v2999_v31 = vpop.permute.xlu1 %2998 }
 0x78f   : > { %v3758_v19 = vpop.permute.xlu0 %3757  ;;  %v3120_v28 = vsel %vm481_vm2, %v2954_v26, %v2999_v31 }
 0x790   : > { %v3821_v0 = vsel %vm1075_vm4, %v3801_v15, %v3758_v19 }
 0x791   : > { %5883 = vmatprep.mubr.msk.f32.mxu1 %vm1351_vm5, %v3821_v0 }
 0x792   : > { %v3001_v48 = vpop.permute.xlu1 %3000 }
 0x793   : > { %v3760_v38 = vpop.permute.xlu0 %3759  ;;  %v3121_v11 = vsel %vm481_vm2, %v2955_v40, %v3001_v48 }
 0x794   : > { %v3822_v37 = vsel %vm1075_vm4, %v3802_v5, %v3760_v38 }
 0x795   : > { %5884 = vmatmul.mubr.msk.f32.gmra.mrb[14].mxu1 %vm1351_vm5, %v3822_v37 }
 0x796   : > { %v3063_v22 = vpop.permute.xlu1 %3062 }
 0x797   : > { %v3141_v6 = vsel %vm1075_vm4, %v3121_v11, %v3063_v22  ;;  %v3061_v47 = vpop.permute.xlu0 %3060 }
 0x798   : > { %v3140_v32 = vsel %vm1075_vm4, %v3120_v28, %v3061_v47 }
 0x799   : > { %5791 = vmatprep.mubr.msk.f32.mxu0 %vm1351_vm5, %v3140_v32 }
 0x79a   : > { %5792 = vmatmul.mubr.msk.f32.vlgmr.msra.gmra.mrb[24].mxu0 %vm1351_vm5, %v3141_v6  ;;  %v3702_v51 = vpop.permute.xlu1 %3701 }
 0x79b   : > { %v3700_v56 = vpop.permute.xlu0 %3699  ;;  %v3804_v59 = vsel %vm481_vm2, %v8747_v62, %v3702_v51 }
 0x79c   : > { %v3803_v4 = vsel %vm481_vm2, %v8749_v46, %v3700_v56 }
 0x79e   : > { %v3764_v25 = vpop.permute.xlu1 %3763 }
 0x79f   : > { %v3824_v21 = vsel %vm1075_vm4, %v3804_v59, %v3764_v25  ;;  %v3762_v55 = vpop.permute.xlu0 %3761 }
 0x7a0   : > { %v3823_v50 = vsel %vm1075_vm4, %v3803_v4, %v3762_v55 }
 0x7a1   : > { %5886 = vmatprep.mubr.msk.f32.mxu1 %vm1351_vm5, %v3823_v50 }
 0x7a2   : > { %5887 = vmatmul.mubr.msk.f32.gmra.mrb[16].mxu1 %vm1351_vm5, %v3824_v21  ;;  %v6645_v21 = vmov (!%p5302_p0), 0.0  }
 0x825   : > { %v5861_v33 = vpop.f32.mrb[18].mxu1 }
 0x826   : > { %v3957_v52 = vpop.f32.mrb[19].mxu1 }
 0x82d   : > { %v5864_v44 = vpop.f32.mrb[0].mxu1 }
 0x82e   : > { %v4085_v34 = vadd.f32 %v5864_v44, %v5454_v14  ;;  %v3967_v13 = vpop.f32.mrb[1].mxu1 }
 0x82f   : > { %v4084_v62 = vadd.f32 %v5454_v14, %v3967_v13 }
 0x830   : > { %4105 = vst.msk [vmem:[#allocation4 + $0x21] sm:$0xff] %vm1075_vm4, %v4085_v34 }
 0x831   : > { %4104 = vst.msk [vmem:[#allocation4 + $0x19] sm:$0xff] %vm1075_vm4, %v4084_v62 }
 0x835   : > { %v5867_v46 = vpop.f32.mrb[2].mxu1 }
 0x836   : > { %v4087_v12 = vadd.f32 %v5867_v46, %v5454_v14  ;;  %v3977_v49 = vpop.f32.mrb[3].mxu1 }
 0x837   : > { %v4086_v16 = vadd.f32 %v5454_v14, %v3977_v49 }
 0x838   : > { %4107 = vst.msk [vmem:[#allocation4 + $0x39] sm:$0xff] %vm1075_vm4, %v4087_v12 }
 0x839   : > { %4106 = vst.msk [vmem:[#allocation4 + $0x31] sm:$0xff] %vm1075_vm4, %v4086_v16 }
 0x83d   : > { %v5870_v54 = vpop.f32.mrb[4].mxu1 }
 0x83e   : > { %v4089_v43 = vadd.f32 %v5870_v54, %v5454_v14  ;;  %v3987_v58 = vpop.f32.mrb[5].mxu1 }
 0x83f   : > { %v4088_v53 = vadd.f32 %v5454_v14, %v3987_v58 }
 0x840   : > { %4109 = vst.msk [vmem:[#allocation4 + $0x51] sm:$0xff] %vm1075_vm4, %v4089_v43 }
 0x841   : > { %4108 = vst.msk [vmem:[#allocation4 + $0x49] sm:$0xff] %vm1075_vm4, %v4088_v53 }
 0x845   : > { %v5873_v61 = vpop.f32.mrb[6].mxu1 }
 0x846   : > { %v4091_v60 = vadd.f32 %v5873_v61, %v5454_v14  ;;  %v3997_v39 = vpop.f32.mrb[7].mxu1 }
 0x847   : > { %v4090_v45 = vadd.f32 %v5454_v14, %v3997_v39 }
 0x848   : > { %4111 = vst.msk [vmem:[#allocation4 + $0x69] sm:$0xff] %vm1075_vm4, %v4091_v60 }
 0x849   : > { %4110 = vst.msk [vmem:[#allocation4 + $0x61] sm:$0xff] %vm1075_vm4, %v4090_v45 }
 0x84d   : > { %v5876_v57 = vpop.f32.mrb[8].mxu1 }
 0x84e   : > { %v4093_v20 = vadd.f32 %v5876_v57, %v5454_v14  ;;  %v4007_v8 = vpop.f32.mrb[9].mxu1 }
 0x84f   : > { %v4092_v63 = vadd.f32 %v5454_v14, %v4007_v8 }
 0x850   : > { %4113 = vst.msk [vmem:[#allocation4 + $0x81] sm:$0xff] %vm1075_vm4, %v4093_v20 }
 0x851   : > { %4112 = vst.msk [vmem:[#allocation4 + $0x79] sm:$0xff] %vm1075_vm4, %v4092_v63 }
 0x855   : > { %v5879_v27 = vpop.f32.mrb[10].mxu1 }
 0x856   : > { %v4095_v31 = vadd.f32 %v5879_v27, %v5454_v14  ;;  %v4017_v15 = vpop.f32.mrb[11].mxu1 }
 0x857   : > { %v4094_v19 = vadd.f32 %v5454_v14, %v4017_v15 }
 0x858   : > { %4115 = vst.msk [vmem:[#allocation4 + $0x99] sm:$0xff] %vm1075_vm4, %v4095_v31 }
 0x859   : > { %4114 = vst.msk [vmem:[#allocation4 + $0x91] sm:$0xff] %vm1075_vm4, %v4094_v19 }
 0x85d   : > { %v5882_v0 = vpop.f32.mrb[12].mxu1 }
 0x85e   : > { %v4097_v48 = vadd.f32 %v5882_v0, %v5454_v14  ;;  %v4027_v5 = vpop.f32.mrb[13].mxu1 }
 0x85f   : > { %v4096_v40 = vadd.f32 %v5454_v14, %v4027_v5 }
 0x860   : > { %4117 = vst.msk [vmem:[#allocation4 + $0xb1] sm:$0xff] %vm1075_vm4, %v4097_v48 }
 0x861   : > { %4116 = vst.msk [vmem:[#allocation4 + $0xa9] sm:$0xff] %vm1075_vm4, %v4096_v40 }
 0x868   : > { %v5885_v38 = vpop.f32.mrb[14].mxu1 }
 0x869   : > { %v4099_v26 = vadd.f32 %v5885_v38, %v5454_v14  ;;  %v4037_v37 = vpop.f32.mrb[15].mxu1 }
 0x86a   : > { %v4098_v11 = vadd.f32 %v5454_v14, %v4037_v37 }
 0x86b   : > { %4119 = vst.msk [vmem:[#allocation4 + $0xc9] sm:$0xff] %vm1075_vm4, %v4099_v26 }
 0x86c   : > { %4118 = vst.msk [vmem:[#allocation4 + $0xc1] sm:$0xff] %vm1075_vm4, %v4098_v11 }
 0x86d   : > { %v5793_v22 = vpop.f32.mrb[24].mxu0 }
 0x86e   : > { %v5963_v28 = vadd.f32 %v5861_v33, %v5793_v22  ;;  %v3292_v6 = vpop.f32.mrb[25].mxu0 }
 0x86f   : > { %v5964_v47 = vadd.f32 %v3957_v52, %v3292_v6 }
 0x870   : > { %v4083_v32 = vadd.f32 %v5963_v28, %v5454_v14 }
 0x871   : > { %v4082_v51 = vadd.f32 %v5964_v47, %v5454_v14 }
 0x872   : > { %4103 = vst.msk [vmem:[#allocation4 + $0x9] sm:$0xff] %vm1075_vm4, %v4083_v32 }
 0x873   : > { %4102 = vst.msk [vmem:[#allocation4 + $0x1] sm:$0xff] %vm1075_vm4, %v4082_v51  ;;  %4124 = sbr.rel (%p5302_p0) target bundleno = 2170 (0x87a), region = 96 }
 0x874   : > { %4125 = vst.msk [vmem:[#allocation4] sm:$0xff] (!%p5302_p0), %vm1075_vm4, %v6645_v21  ;;  %4126 = vst.msk [vmem:[#allocation4 + $0x8] sm:$0xff] (!%p5302_p0), %vm1075_vm4, %v6645_v21 }
 0x875   : > { %v5888_v56 = vpop.f32.mrb[16].mxu1  ;;  %4128 = vst.msk [vmem:[#allocation4 + $0x10] sm:$0x3] (!%p5302_p0), %vm4127_vm3, %v6645_v21 }
 0x876   : > { %v4101_v59 = vadd.f32 %v5888_v56, %v5454_v14  ;;  %v4047_v25 = vpop.f32.mrb[17].mxu1 }
 0x877   : > { %v4100_v4 = vadd.f32 %v5454_v14, %v4047_v25 }
 0x878   : > { %4121 = vst.msk [vmem:[#allocation4 + $0xe1] sm:$0xff] %vm1075_vm4, %v4101_v59 }
 0x879   : > { %4120 = vst.msk [vmem:[#allocation4 + $0xd9] sm:$0xff] %vm1075_vm4, %v4100_v4 }
 0x87a PF: > { %4131 = sbr.rel (%p5312_p9) target bundleno = 2177 (0x881), region = 100  ;;  %vm4135_vm5 = vcmask (!%p5312_p9), 58368   ;;  %v6646_v55 = vmov (!%p5312_p9), 0.0  }
 0x87b   : > { %4133 = vst.msk [vmem:[#allocation4 + $0xd8] sm:$0xff] (!%p5312_p9), %vm1075_vm4, %v6646_v55  ;;  %4134 = vst.msk [vmem:[#allocation4 + $0xe0] sm:$0xff] (!%p5312_p9), %vm1075_vm4, %v6646_v55 }
 0x87c   : > { %4136 = vst.msk [vmem:[#allocation4 + $0xe8] sm:$0x3] (!%p5312_p9), %vm4135_vm5, %v6646_v55 }
 0x881 PF: > { %v8941_v50 = vld [vmem:[#allocation15] sm:$0xf]  ;;  %5891 = vmatprep.mubr.msk.f32.mxu1 %vm481_vm2, %v7204_v2  ;;  %s5475_s24 = sadd.s32 (!%p5299_p5), 4294967295, %s5297_s0 }
 0x882   : > { %5889 = vmatprep.subr.msk.mxu1 %vm1424_vm0, %v8941_v50  ;;  %5915 = vmatprep.subr.msk.mxu0 (!%p5299_p5), %vm1424_vm0, %v8941_v50  ;;  %s5476_s1 = sshll.u32 (!%p5299_p5), %s5475_s24, 4 }
 0x883   : > { %5890 = vmatpush3.msk.msra.mxu1 %vm1424_vm0, %v8941_v50  ;;  %5916 = vmatpush3.msk.msra.mxu0 (!%p5299_p5), %vm1424_vm0, %v8941_v50  ;;  %s4356_s9 = scalar_lea.vmem (!%p5299_p5), %s6994_s8, %s5476_s1 [#allocation6] }
 0x884   : > { %5892 = vmatmul.mubr.msk.f32.vlgmr.msra.gmra.mrb[20].mxu1 %vm481_vm2, %v7216_v7  ;;  %v4357_v33 = vld [vmem:[%s4356_s9] sm:$0xff] (!%p5299_p5)  ;;  %v4358_v52 = vld [vmem:[%s4356_s9 + $0x8] sm:$0xff] (!%p5299_p5) }
 0x885   : > { %5894 = vmatprep.mubr.msk.f32.mxu1 %vm481_vm2, %v7201_v1  ;;  %5917 = vmatprep.mubr.msk.f32.mxu0 (!%p5299_p5), %vm481_vm2, %v4357_v33 }
 0x886   : > { %5918 = vmatmul.mubr.msk.f32.vlgmr.msra.gmra.mrb[0].mxu0 (!%p5299_p5), %vm481_vm2, %v4358_v52 }
 0x888   : > { %5895 = vmatmul.mubr.msk.f32.gmra.mrb[22].mxu1 %vm481_vm2, %v7207_v3 }
 0x889   : > { %5897 = vmatprep.mubr.msk.f32.mxu1 %vm481_vm2, %v7224_v10 }
 0x88c   : > { %5898 = vmatmul.mubr.msk.f32.gmra.mrb[24].mxu1 %vm481_vm2, %v7221_v9 }
 0x88d   : > { %5900 = vmatprep.mubr.msk.f32.mxu1 %vm481_vm2, %v7238_v18 }
 0x890   : > { %5901 = vmatmul.mubr.msk.f32.gmra.mrb[26].mxu1 %vm481_vm2, %v7235_v17 }
 0x891   : > { %5903 = vmatprep.mubr.msk.f32.mxu1 %vm481_vm2, %v7250_v24 }
 0x894   : > { %5904 = vmatmul.mubr.msk.f32.gmra.mrb[28].mxu1 %vm481_vm2, %v7247_v23 }
 0x895   : > { %5906 = vmatprep.mubr.msk.f32.mxu1 %vm481_vm2, %v7262_v30 }
 0x898   : > { %5907 = vmatmul.mubr.msk.f32.gmra.mrb[30].mxu1 %vm481_vm2, %v7259_v29 }
 0x899   : > { %5909 = vmatprep.mubr.msk.f32.mxu1 %vm481_vm2, %v7274_v36 }
 0x89c   : > { %5910 = vmatmul.mubr.msk.f32.gmra.mrb[32].mxu1 %vm481_vm2, %v7271_v35 }
 0x89d   : > { %5912 = vmatprep.mubr.msk.f32.mxu1 %vm481_vm2, %v7286_v42 }
 0x8a0   : > { %5913 = vmatmul.mubr.msk.f32.gmra.mrb[34].mxu1 %vm481_vm2, %v7283_v41 }
 0x957   : > { %v5893_v1 = vpop.f32.mrb[20].mxu1 }
 0x958   : > { %4336 = vst.msk [vmem:[#allocation5 + $0x21] sm:$0xff] %vm1075_vm4, %v5893_v1  ;;  %v4255_v2 = vpop.f32.mrb[21].mxu1 }
 0x959   : > { %4335 = vst.msk [vmem:[#allocation5 + $0x19] sm:$0xff] %vm1075_vm4, %v4255_v2  ;;  %v5919_v14 = vpop.f32.mrb[0].mxu0 (!%p5299_p5) }
 0x95a   : > { %4441 = vst.msk [vmem:[#allocation5 + $0x9] sm:$0xff] (!%p5299_p5), %vm1075_vm4, %v5919_v14  ;;  %v4431_v44 = vpop.f32.mrb[1].mxu0 (!%p5299_p5) }
 0x95b   : > { %v5896_v3 = vpop.f32.mrb[22].mxu1  ;;  %4440 = vst.msk [vmem:[#allocation5 + $0x1] sm:$0xff] (!%p5299_p5), %vm1075_vm4, %v4431_v44 }
 0x95c   : > { %4338 = vst.msk [vmem:[#allocation5 + $0x39] sm:$0xff] %vm1075_vm4, %v5896_v3  ;;  %v4265_v7 = vpop.f32.mrb[23].mxu1 }
 0x95d   : > { %4337 = vst.msk [vmem:[#allocation5 + $0x31] sm:$0xff] %vm1075_vm4, %v4265_v7 }
 0x95f   : > { %v5899_v9 = vpop.f32.mrb[24].mxu1 }
 0x960   : > { %4340 = vst.msk [vmem:[#allocation5 + $0x51] sm:$0xff] %vm1075_vm4, %v5899_v9  ;;  %v4275_v10 = vpop.f32.mrb[25].mxu1 }
 0x961   : > { %4339 = vst.msk [vmem:[#allocation5 + $0x49] sm:$0xff] %vm1075_vm4, %v4275_v10 }
 0x963   : > { %v5902_v17 = vpop.f32.mrb[26].mxu1 }
 0x964   : > { %4342 = vst.msk [vmem:[#allocation5 + $0x69] sm:$0xff] %vm1075_vm4, %v5902_v17  ;;  %v4285_v18 = vpop.f32.mrb[27].mxu1 }
 0x965   : > { %4341 = vst.msk [vmem:[#allocation5 + $0x61] sm:$0xff] %vm1075_vm4, %v4285_v18 }
 0x967   : > { %v5905_v23 = vpop.f32.mrb[28].mxu1 }
 0x968   : > { %4344 = vst.msk [vmem:[#allocation5 + $0x81] sm:$0xff] %vm1075_vm4, %v5905_v23  ;;  %v4295_v24 = vpop.f32.mrb[29].mxu1 }
 0x969   : > { %4343 = vst.msk [vmem:[#allocation5 + $0x79] sm:$0xff] %vm1075_vm4, %v4295_v24 }
 0x96b   : > { %v5908_v29 = vpop.f32.mrb[30].mxu1 }
 0x96c   : > { %4346 = vst.msk [vmem:[#allocation5 + $0x99] sm:$0xff] %vm1075_vm4, %v5908_v29  ;;  %v4305_v30 = vpop.f32.mrb[31].mxu1 }
 0x96d   : > { %4345 = vst.msk [vmem:[#allocation5 + $0x91] sm:$0xff] %vm1075_vm4, %v4305_v30 }
 0x96f   : > { %v5911_v35 = vpop.f32.mrb[32].mxu1  ;;  %4353 = sbr.rel (%p5299_p5) target bundleno = 2422 (0x976), region = 104 }
 0x970   : > { %4348 = vst.msk [vmem:[#allocation5 + $0xb1] sm:$0xff] %vm1075_vm4, %v5911_v35  ;;  %v4315_v36 = vpop.f32.mrb[33].mxu1 }
 0x971   : > { %4347 = vst.msk [vmem:[#allocation5 + $0xa9] sm:$0xff] %vm1075_vm4, %v4315_v36 }
 0x973   : > { %v5914_v41 = vpop.f32.mrb[34].mxu1 }
 0x974   : > { %4350 = vst.msk [vmem:[#allocation5 + $0xc9] sm:$0xff] %vm1075_vm4, %v5914_v41  ;;  %v4325_v42 = vpop.f32.mrb[35].mxu1 }
 0x975   : > { %4349 = vst.msk [vmem:[#allocation5 + $0xc1] sm:$0xff] %vm1075_vm4, %v4325_v42 }
 0x976 PF: > { %4444 = sbr.rel (%p5302_p0) target bundleno = 2429 (0x97d), region = 108  ;;  %vm4447_vm10 = vcmask (!%p5302_p0), 58368   ;;  %v6647_v34 = vmov (!%p5302_p0), 0.0  }
 0x977   : > { %4445 = vst.msk [vmem:[#allocation5] sm:$0xff] (!%p5302_p0), %vm1075_vm4, %v6647_v34  ;;  %4446 = vst.msk [vmem:[#allocation5 + $0x8] sm:$0xff] (!%p5302_p0), %vm1075_vm4, %v6647_v34 }
 0x978   : > { %4448 = vst.msk [vmem:[#allocation5 + $0x10] sm:$0x3] (!%p5302_p0), %vm4447_vm10, %v6647_v34 }
 0x97d PF: > { %4451 = sbr.rel (%p5303_p6) target bundleno = 2645 (0xa55), region = 112  ;;  %5920 = vmatprep.subr.msk.mxu0 (!%p5303_p6), %vm1424_vm0, %v8941_v50  ;;  %v5484_v13 = vld [vmem:[%s7198_s13 + $0x80] sm:$0xff] (!%p5303_p6)  ;;  %v5485_v62 = vld [vmem:[%s7198_s13 + $0x88] sm:$0xff] (!%p5303_p6) }
 0x97e   : > { %5921 = vmatpush3.msk.msra.mxu0 (!%p5303_p6), %vm1424_vm0, %v8941_v50  ;;  %5922 = vmatprep.mubr.msk.f32.mxu0 (!%p5303_p6), %vm481_vm2, %v5484_v13 }
 0x97f   : > { %5923 = vmatmul.mubr.msk.f32.vlgmr.msra.gmra.mrb[0].mxu0 (!%p5303_p6), %vm481_vm2, %v5485_v62 }
 0xa52   : > { %v5924_v46 = vpop.f32.mrb[0].mxu0 }
 0xa53   : > { %4540 = vst.msk [vmem:[#allocation5 + $0xe1] sm:$0xff] %vm1075_vm4, %v5924_v46  ;;  %v4529_v12 = vpop.f32.mrb[1].mxu0 }
 0xa54   : > { %4539 = vst.msk [vmem:[#allocation5 + $0xd9] sm:$0xff] %vm1075_vm4, %v4529_v12 }
 0xa55 PF: > { %4543 = sbr.rel (%p5312_p9) target bundleno = 2652 (0xa5c), region = 116  ;;  %vm4547_vm11 = vcmask (!%p5312_p9), 58368   ;;  %v6648_v49 = vmov (!%p5312_p9), 0.0  }
 0xa56   : > { %4545 = vst.msk [vmem:[#allocation5 + $0xd8] sm:$0xff] (!%p5312_p9), %vm1075_vm4, %v6648_v49  ;;  %4546 = vst.msk [vmem:[#allocation5 + $0xe0] sm:$0xff] (!%p5312_p9), %vm1075_vm4, %v6648_v49 }
 0xa57   : > { %4548 = vst.msk [vmem:[#allocation5 + $0xe8] sm:$0x3] (!%p5312_p9), %vm4547_vm11, %v6648_v49 }
 0xa5c PF: > { %v4549_v16 = vld [vmem:[#allocation4] ss:$2 sm:$0xff]  ;;  %v4551_v54 = vld [vmem:[#allocation4 + $0x10] ss:$2 sm:$0x1]  ;;  %vm4768_vm2 = vcmask 1046528  }
 0xa5d   : > { %v4557_v43 = vld [vmem:[#allocation4 + $0x30] ss:$2 sm:$0xff]  ;;  %v4555_v53 = vld [vmem:[#allocation4 + $0x28] ss:$2 sm:$0x1]  ;;  %v4628_v57 = vmul.f32 0.125, %v4549_v16 }
 0xa5e   : > { %v4553_v58 = vld [vmem:[#allocation4 + $0x18] ss:$2 sm:$0xff]  ;;  %v4561_v60 = vld [vmem:[#allocation4 + $0x48] ss:$2 sm:$0xff]  ;;  %v4629_v63 = vmul.f32 0.125, %v4551_v54  ;;  %v4630_v15 = vmul.f32 0.125, %v4557_v43 }
 0xa5f   : > { %v4559_v61 = vld [vmem:[#allocation4 + $0x40] ss:$2 sm:$0x1]  ;;  %v4563_v39 = vld [vmem:[#allocation4 + $0x58] ss:$2 sm:$0x1] }
 0xa60   : > { %v4565_v45 = vld [vmem:[#allocation4 + $0x60] ss:$2 sm:$0xff]  ;;  %v4567_v20 = vld [vmem:[#allocation4 + $0x70] ss:$2 sm:$0x1]  ;;  %v4631_v48 = vmul.f32 0.125, %v4559_v61 }
 0xa61   : > { %v4569_v8 = vld [vmem:[#allocation4 + $0x78] ss:$2 sm:$0xff]  ;;  %v4571_v27 = vld [vmem:[#allocation4 + $0x88] ss:$2 sm:$0x1]  ;;  %v4636_v40 = vmul.f32 0.375, %v4553_v58 }
 0xa62   : > { %v4573_v31 = vld [vmem:[#allocation4 + $0x90] ss:$2 sm:$0xff]  ;;  %v4575_v19 = vld [vmem:[#allocation4 + $0xa0] ss:$2 sm:$0x1]  ;;  %v4637_v38 = vmul.f32 0.375, %v4555_v53 }
 0xa63   : > { %v4577_v0 = vld [vmem:[#allocation4 + $0xa8] ss:$2 sm:$0xff]  ;;  %v4579_v5 = vld [vmem:[#allocation4 + $0xb8] ss:$2 sm:$0x1]  ;;  %v4638_v26 = vmul.f32 0.375, %v4561_v60  ;;  %v4644_v25 = vadd.f32 %v4636_v40, %v4628_v57 }
 0xa64   : > { %v4632_v37 = vmul.f32 0.125, %v4565_v45  ;;  %v4634_v11 = vmul.f32 0.125, %v4573_v31  ;;  %v4639_v22 = vmul.f32 0.375, %v4563_v39  ;;  %v4640_v28 = vmul.f32 0.375, %v4569_v8  ;;  %v4581_v59 = vld [vmem:[#allocation4 + $0xc0] ss:$2 sm:$0xff] }
 0xa65   : > { %v4633_v6 = vmul.f32 0.125, %v4567_v20  ;;  %v4635_v47 = vmul.f32 0.125, %v4575_v19  ;;  %v4641_v32 = vmul.f32 0.375, %v4571_v27  ;;  %v4642_v51 = vmul.f32 0.375, %v4577_v0  ;;  %v4585_v18 = vld [vmem:[#allocation4 + $0xd8] ss:$2 sm:$0xff] }
 0xa66   : > { %v4643_v56 = vmul.f32 0.375, %v4579_v5  ;;  %v4645_v4 = vadd.f32 %v4637_v38, %v4629_v63  ;;  %v4646_v21 = vadd.f32 %v4638_v26, %v4630_v15  ;;  %v4652_v55 = vmul.f32 0.375, %v4557_v43  ;;  %v4583_v50 = vld [vmem:[#allocation4 + $0xd0] ss:$2 sm:$0x1]  ;;  %s9304_s13 = sld [smem:[#allocation23_spill]] }
 0xa67   : > { %v4647_v1 = vadd.f32 %v4639_v22, %v4631_v48  ;;  %v4648_v2 = vadd.f32 %v4640_v28, %v4632_v37  ;;  %v4650_v3 = vadd.f32 %v4642_v51, %v4634_v11  ;;  %v4653_v7 = vmul.f32 0.375, %v4559_v61  ;;  %v4587_v35 = vld [vmem:[#allocation4 + $0xe8] ss:$2 sm:$0x1]  ;;  %v4589_v52 = vld [vmem:[#allocation4 + $0x1] ss:$2 sm:$0xff] }
 0xa68   : > { %v4649_v9 = vadd.f32 %v4641_v32, %v4633_v6  ;;  %v4651_v10 = vadd.f32 %v4643_v56, %v4635_v47  ;;  %v4654_v17 = vmul.f32 0.375, %v4565_v45  ;;  %v4655_v23 = vmul.f32 0.375, %v4567_v20  ;;  %v4591_v14 = vld [vmem:[#allocation4 + $0x11] ss:$2 sm:$0x1]  ;;  %s9305_s3 = sld [smem:[#allocation24_spill]] }
 0xa69   : > { %v4656_v24 = vmul.f32 0.375, %v4573_v31  ;;  %v4657_v29 = vmul.f32 0.375, %v4575_v19  ;;  %v4658_v30 = vmul.f32 0.375, %v4581_v59  ;;  %v4659_v36 = vmul.f32 0.375, %v4583_v50  ;;  %v4597_v44 = vld [vmem:[#allocation4 + $0x31] ss:$2 sm:$0xff] }
 0xa6a   : > { %v4660_v41 = vadd.f32 %v4652_v55, %v4644_v25  ;;  %v4661_v42 = vadd.f32 %v4653_v7, %v4645_v4  ;;  %v4668_v33 = vmul.f32 0.125, %v4561_v60  ;;  %v4599_v34 = vld [vmem:[#allocation4 + $0x41] ss:$2 sm:$0x1]  ;;  %v4662_v13 = vadd.f32 %v4654_v17, %v4646_v21  ;;  %v9028_v61 = vld [vmem:[#allocation4 + $0x49] ss:$2 sm:$0xff] }
 0xa6b   : > { %v4663_v62 = vadd.f32 %v4655_v23, %v4647_v1  ;;  %v4664_v46 = vadd.f32 %v4656_v24, %v4648_v2  ;;  %v4666_v12 = vadd.f32 %v4658_v30, %v4650_v3  ;;  %v4607_v49 = vld [vmem:[#allocation4 + $0x71] ss:$2 sm:$0x1]  ;;  %v4669_v16 = vmul.f32 0.125, %v4563_v39  ;;  %v4593_v58 = vld [vmem:[#allocation4 + $0x19] ss:$2 sm:$0xff] }
 0xa6c   : > { %v4670_v54 = vmul.f32 0.125, %v4569_v8  ;;  %v4671_v43 = vmul.f32 0.125, %v4571_v27  ;;  %v4595_v53 = vld [vmem:[#allocation4 + $0x29] ss:$2 sm:$0x1]  ;;  %v9032_v20 = vadd.f32 %v4657_v29, %v4649_v9  ;;  %v9034_v63 = vadd.f32 %v4659_v36, %v4651_v10  ;;  %s5491_s4 = sshll.u32 %s9304_s13, 2 }
 0xa6d   : > { %v9030_v45 = vld [vmem:[#allocation4 + $0x59] ss:$2 sm:$0x1]  ;;  %v4605_v57 = vld [vmem:[#allocation4 + $0x61] ss:$2 sm:$0xff]  ;;  %v4672_v31 = vmul.f32 0.125, %v4577_v0  ;;  %v9040_v8 = vadd.f32 %v4668_v33, %v4660_v41  ;;  %v9042_v27 = vadd.f32 %v4669_v16, %v4661_v42 }
 0xa6e   : > { %v4613_v60 = vld [vmem:[#allocation4 + $0x91] ss:$2 sm:$0xff]  ;;  %v4674_v15 = vmul.f32 0.125, %v4585_v18  ;;  %v4615_v48 = vld [vmem:[#allocation4 + $0xa1] ss:$2 sm:$0x1]  ;;  %v9044_v37 = vadd.f32 %v4670_v54, %v4662_v13  ;;  %v9046_v11 = vadd.f32 %v4671_v43, %v4663_v62 }
 0xa6f   : > { %v4609_v19 = vld [vmem:[#allocation4 + $0x79] ss:$2 sm:$0xff]  ;;  %v9036_v40 = vmul.f32 0.125, %v4579_v5  ;;  %v9038_v39 = vmul.f32 0.125, %v4587_v35  ;;  %v9048_v22 = vadd.f32 %v4672_v31, %v4664_v46  ;;  %v4617_v28 = vld [vmem:[#allocation4 + $0xa9] ss:$2 sm:$0xff] }
 0xa70   : > { %v4611_v38 = vld [vmem:[#allocation4 + $0x89] ss:$2 sm:$0x1]  ;;  %v4619_v26 = vld [vmem:[#allocation4 + $0xb9] ss:$2 sm:$0x1]  ;;  %v9050_v0 = vadd.f32 %v4674_v15, %v4666_v12 }
 0xa71   : > { %v4684_v6 = vmul.f32 0.125, %v4589_v52  ;;  %v4685_v5 = vmul.f32 0.125, %v4591_v14  ;;  %v4686_v47 = vmul.f32 0.125, %v4597_v44  ;;  %v4687_v32 = vmul.f32 0.125, %v4599_v34  ;;  %v4621_v9 = vld [vmem:[#allocation4 + $0xc1] ss:$2 sm:$0xff] }
 0xa72   : > { %v4688_v51 = vmul.f32 0.125, %v4605_v57  ;;  %v4689_v56 = vmul.f32 0.125, %v4607_v49  ;;  %v4690_v59 = vmul.f32 0.125, %v4613_v60  ;;  %v4691_v25 = vmul.f32 0.125, %v4615_v48  ;;  %v4625_v12 = vld [vmem:[#allocation4 + $0xd9] ss:$2 sm:$0xff] }
 0xa73   : > { %v4692_v4 = vmul.f32 0.375, %v4593_v58  ;;  %v4693_v21 = vmul.f32 0.375, %v4595_v53  ;;  %v4694_v55 = vmul.f32 0.375, %v9028_v61  ;;  %v4695_v50 = vmul.f32 0.375, %v9030_v45  ;;  %s5492_s12 = sshll.u32 %s9305_s3, 3  ;;  %s5128_s24 = sshll.u32 %s7335_s17, 4  ;;  %s9160_s24 = int_to_ptr.vmem [resolvable:$true] %s5128_s24 }
 0xa74   : > { %v4696_v1 = vmul.f32 0.375, %v4609_v19  ;;  %v4697_v2 = vmul.f32 0.375, %v4611_v38  ;;  %v4698_v3 = vmul.f32 0.375, %v4617_v28  ;;  %v4699_v7 = vmul.f32 0.375, %v4619_v26  ;;  %s5125_s19 = sadd.s32 %s5492_s12, %s5491_s4  ;;  %s9306_s28 = sld [smem:[#allocation32_spill]] }
 0xa75   : > { %v4623_v10 = vld [vmem:[#allocation4 + $0xd1] ss:$2 sm:$0x1]  ;;  %v4700_v17 = vadd.f32 %v4692_v4, %v4684_v6  ;;  %v4701_v18 = vadd.f32 %v4693_v21, %v4685_v5  ;;  %v4702_v23 = vadd.f32 %v4694_v55, %v4686_v47  ;;  %v4703_v24 = vadd.f32 %v4695_v50, %v4687_v32  ;;  %v4627_v16 = vld [vmem:[#allocation4 + $0xe9] ss:$2 sm:$0x1] }
 0xa76   : > { %v4704_v29 = vadd.f32 %v4696_v1, %v4688_v51  ;;  %v4705_v30 = vadd.f32 %v4697_v2, %v4689_v56  ;;  %v4706_v35 = vadd.f32 %v4698_v3, %v4690_v59  ;;  %v4707_v36 = vadd.f32 %v4699_v7, %v4691_v25  ;;  %s5493_s16 = sshll.u32 %s5125_s19, 7  ;;  %s9172_s13 = scalar_lea.sflag [#allocation8], %s348_s18 }
 0xa77   : > { %v4708_v41 = vmul.f32 0.375, %v4597_v44  ;;  %v4709_v42 = vmul.f32 0.375, %v4599_v34  ;;  %v4710_v33 = vmul.f32 0.375, %v4605_v57  ;;  %v4711_v52 = vmul.f32 0.375, %v4607_v49  ;;  %s6493_s3 = scalar_lea.vmem %s9160_s24, 512  ;;  %p9308_p8 = scmp.ne.s32.totalorder %s9279_s27, 0 }
 0xa78   : > { %v4712_v14 = vmul.f32 0.375, %v4613_v60  ;;  %v4713_v13 = vmul.f32 0.375, %v4615_v48  ;;  %v4714_v62 = vmul.f32 0.375, %v4621_v9  ;;  %v4715_v46 = vmul.f32 0.375, %v4623_v10  ;;  %p6494_p11 = scmp.ne.s32.totalorder %s9160_s24, %s6493_s3  ;;  %s6649_s4 = smov [#allocation17]  }
 0xa79   : > { %v4716_v54 = vadd.f32 %v4708_v41, %v4700_v17  ;;  %v4717_v43 = vadd.f32 %v4709_v42, %v4701_v18  ;;  %v4718_v58 = vadd.f32 %v4710_v33, %v4702_v23  ;;  %v4719_v53 = vadd.f32 %v4711_v52, %v4703_v24  ;;  %s6497_s12 = sshll.u32 %s6649_s4, 4  ;;  %s6498_s12 = int_to_ptr.vmem [resolvable:$false] %s6497_s12 }
 0xa7a   : > { %v4720_v31 = vadd.f32 %v4712_v14, %v4704_v29  ;;  %v4721_v15 = vadd.f32 %v4713_v13, %v4705_v30  ;;  %v4722_v6 = vadd.f32 %v4714_v62, %v4706_v35  ;;  %v4723_v5 = vadd.f32 %v4715_v46, %v4707_v36  ;;  %s9307_s8 = smov %s9306_s28  ;;  %s9158_s0 = scalar_lea.hbm %s9306_s28, %s5493_s16 }
 0xa7b   : > { %v4724_v47 = vmul.f32 0.125, %v9028_v61  ;;  %v4725_v44 = vmul.f32 0.125, %v9030_v45  ;;  %v4726_v34 = vmul.f32 0.125, %v4609_v19  ;;  %v4727_v49 = vmul.f32 0.125, %v4611_v38  ;;  %p6495_p13 = pnand %p6494_p11, %p9308_p8  ;;  %s6499_s19 = scalar_lea.vmem %s6498_s12, 1024 }
 0xa7c   : > { %v4728_v57 = vmul.f32 0.125, %v4617_v28  ;;  %v4729_v60 = vmul.f32 0.125, %v4619_v26  ;;  %v4730_v48 = vmul.f32 0.125, %v4625_v12  ;;  %v4731_v32 = vmul.f32 0.125, %v4627_v16  ;;  %p6500_p7 = scmp.lt.s32.totalorder %s9160_s24, %s6498_s12  ;;  %p6501_p1 = scmp.lt.s32.totalorder %s6499_s19, %s6493_s3 }
 0xa7d   : > { %v4681_v51 = vadd.f32 %v9036_v40, %v9032_v20  ;;  %v4683_v56 = vadd.f32 %v9038_v39, %v9034_v63  ;;  %v4732_v59 = vadd.f32 %v4724_v47, %v4716_v54  ;;  %v4734_v25 = vadd.f32 %v4726_v34, %v4718_v58  ;;  %v4825_v54 = vld [vmem:[#allocation5] ss:$2 sm:$0xff]  ;;  %p6496_p3 = pneg %p6495_p13 }
 0xa7e   : > { %v4733_v4 = vadd.f32 %v4725_v44, %v4717_v43  ;;  %v4735_v21 = vadd.f32 %v4727_v49, %v4719_v53  ;;  %v4736_v61 = vadd.f32 %v4728_v57, %v4720_v31  ;;  %v4738_v55 = vadd.f32 %v4730_v48, %v4722_v6  ;;  %v4827_v43 = vld [vmem:[#allocation5 + $0x10] ss:$2 sm:$0x1]  ;;  %v4841_v57 = vld [vmem:[#allocation5 + $0x60] ss:$2 sm:$0xff]  ;;  %p6502_p4 = por %p6501_p1, %p6500_p7 }
 0xa7f   : > { %v4737_v45 = vadd.f32 %v4729_v60, %v4721_v15  ;;  %v4739_v19 = vadd.f32 %v4731_v32, %v4723_v5  ;;  %v4740_v38 = vmul.f32 0.125, %v9040_v8  ;;  %v4741_v26 = vmul.f32 0.125, %v9044_v37  ;;  %v4833_v6 = vld [vmem:[#allocation5 + $0x30] ss:$2 sm:$0xff] }
 0xa80   : > { %v4742_v28 = vmul.f32 0.125, %v9048_v22  ;;  %v4743_v50 = vmul.f32 0.125, %v9050_v0  ;;  %v4744_v20 = vmul.f32 0.375, %v4732_v59  ;;  %v4745_v40 = vmul.f32 0.375, %v4734_v25  ;;  %p6503_p10 = pnand %p6502_p4, %p6496_p3 }
 0xa81   : > { %v4752_v63 = vmul.f32 0.375, %v9040_v8  ;;  %v4753_v39 = vmul.f32 0.375, %v9042_v27  ;;  %v4754_v1 = vmul.f32 0.375, %v9044_v37  ;;  %v4755_v2 = vmul.f32 0.375, %v9046_v11 }
 0xa82   : > { %v4746_v3 = vmul.f32 0.375, %v4736_v61  ;;  %v4747_v7 = vmul.f32 0.375, %v4738_v55  ;;  %v4748_v9 = vadd.f32 %v4744_v20, %v4740_v38  ;;  %v4749_v10 = vadd.f32 %v4745_v40, %v4741_v26  ;;  %v4835_v5 = vld [vmem:[#allocation5 + $0x40] ss:$2 sm:$0x1] }
 0xa83   : > { %v4756_v17 = vmul.f32 0.375, %v9048_v22  ;;  %v4757_v18 = vmul.f32 0.375, %v4681_v51  ;;  %v4758_v23 = vmul.f32 0.375, %v9050_v0  ;;  %v4759_v24 = vmul.f32 0.375, %v4683_v56  ;;  %v4845_v26 = vld [vmem:[#allocation5 + $0x78] ss:$2 sm:$0xff] }
 0xa84   : > { %v4769_v29 = vrot.slane %v4752_v63, 1  ;;  %v4770_v30 = vrot.slane %v4753_v39, 1  ;;  %v4772_v35 = vrot.slane %v4754_v1, 1  ;;  %v4773_v8 = vrot.slane %v4755_v2, 1 }
 0xa85   : > { %v4775_v36 = vrot.slane %v4756_v17, 1  ;;  %v4776_v27 = vrot.slane %v4757_v18, 1  ;;  %v4778_v41 = vrot.slane %v4758_v23, 1  ;;  %v4779_v37 = vrot.slane %v4759_v24, 1 }
 0xa86   : > { %v4771_v11 = vsel %vm4768_vm2, %v4769_v29, %v4770_v30  ;;  %v4774_v42 = vsel %vm4768_vm2, %v4772_v35, %v4773_v8  ;;  %v4789_v33 = vmul.f32 0.125, %v4732_v59  ;;  %v4790_v52 = vmul.f32 0.125, %v4733_v4  ;;  %v4843_v60 = vld [vmem:[#allocation5 + $0x70] ss:$2 sm:$0x1] }
 0xa87   : > { %v4750_v14 = vadd.f32 %v4746_v3, %v4742_v28  ;;  %v4751_v22 = vadd.f32 %v4747_v7, %v4743_v50  ;;  %v4777_v13 = vsel %vm4768_vm2, %v4775_v36, %v4776_v27  ;;  %v4780_v0 = vsel %vm4768_vm2, %v4778_v41, %v4779_v37  ;;  %v4829_v59 = vld [vmem:[#allocation5 + $0x18] ss:$2 sm:$0xff]  ;;  %v9074_v4 = vld [vmem:[#allocation5 + $0x48] ss:$2 sm:$0xff] }
 0xa88   : > { %v4785_v62 = vadd.f32 %v4771_v11, %v4748_v9  ;;  %v4786_v46 = vadd.f32 %v4774_v42, %v4749_v10  ;;  %v4791_v12 = vmul.f32 0.125, %v4734_v25  ;;  %v4792_v16 = vmul.f32 0.125, %v4735_v21  ;;  %v4831_v25 = vld [vmem:[#allocation5 + $0x28] ss:$2 sm:$0x1] }
 0xa89   : > { %v4793_v58 = vmul.f32 0.125, %v4736_v61  ;;  %v4794_v53 = vmul.f32 0.125, %v4737_v45  ;;  %v4795_v31 = vmul.f32 0.125, %v4738_v55  ;;  %v4796_v15 = vmul.f32 0.125, %v4739_v19  ;;  %v4849_v61 = vld [vmem:[#allocation5 + $0x90] ss:$2 sm:$0xff] }
 0xa8a   : > { %v4805_v47 = vrot.slane %v4789_v33, 1  ;;  %v4806_v44 = vrot.slane %v4790_v52, 1  ;;  %v4808_v34 = vrot.slane %v4791_v12, 1  ;;  %v4809_v49 = vrot.slane %v4792_v16, 1  ;;  %v9084_v50 = vld [vmem:[#allocation5 + $0xa8] ss:$2 sm:$0xff] }
 0xa8b   : > { %v4811_v48 = vrot.slane %v4793_v58, 1  ;;  %v4812_v32 = vrot.slane %v4794_v53, 1  ;;  %v4814_v51 = vrot.slane %v4795_v31, 1  ;;  %v4815_v56 = vrot.slane %v4796_v15, 1  ;;  %v4857_v11 = vld [vmem:[#allocation5 + $0xc0] ss:$2 sm:$0xff] }
 0xa8c   : > { %v9076_v21 = vld [vmem:[#allocation5 + $0x58] ss:$2 sm:$0x1]  ;;  %v9078_v55 = vadd.f32 %v4777_v13, %v4750_v14  ;;  %v9080_v45 = vadd.f32 %v4780_v0, %v4751_v22  ;;  %v4807_v19 = vsel %vm4768_vm2, %v4805_v47, %v4806_v44  ;;  %v4810_v38 = vsel %vm4768_vm2, %v4808_v34, %v4809_v49  ;;  %v4851_v28 = vld [vmem:[#allocation5 + $0xa0] ss:$2 sm:$0x1] }
 0xa8d   : > { %v9087_v20 = vsel %vm4768_vm2, %v4811_v48, %v4812_v32  ;;  %v9090_v40 = vsel %vm4768_vm2, %v4814_v51, %v4815_v56  ;;  %v4847_v63 = vld [vmem:[#allocation5 + $0x88] ss:$2 sm:$0x1]  ;;  %v4904_v39 = vmul.f32 0.125, %v4825_v54  ;;  %v4905_v1 = vmul.f32 0.125, %v4827_v43 }
 0xa8e   : > { %v9092_v2 = vadd.f32 %v4807_v19, %v4785_v62  ;;  %v9094_v3 = vadd.f32 %v4810_v38, %v4786_v46  ;;  %v4855_v7 = vld [vmem:[#allocation5 + $0xb8] ss:$2 sm:$0x1]  ;;  %v4906_v9 = vmul.f32 0.125, %v4833_v6  ;;  %v4907_v10 = vmul.f32 0.125, %v4835_v5 }
 0xa8f   : > { %v4908_v17 = vmul.f32 0.125, %v4841_v57  ;;  %v4909_v18 = vmul.f32 0.125, %v4843_v60  ;;  %v4910_v23 = vmul.f32 0.125, %v4849_v61  ;;  %v4911_v24 = vmul.f32 0.125, %v4851_v28  ;;  %v4861_v47 = vld [vmem:[#allocation5 + $0xd8] ss:$2 sm:$0xff] }
 0xa90   : > { %v4912_v29 = vmul.f32 0.375, %v4829_v59  ;;  %v4913_v30 = vmul.f32 0.375, %v4831_v25  ;;  %v4914_v35 = vmul.f32 0.375, %v9074_v4  ;;  %v4915_v8 = vmul.f32 0.375, %v9076_v21  ;;  %v4865_v51 = vld [vmem:[#allocation5 + $0x1] ss:$2 sm:$0xff] }
 0xa91   : > { %v4916_v36 = vmul.f32 0.375, %v4845_v26  ;;  %v4917_v27 = vmul.f32 0.375, %v4847_v63  ;;  %v4918_v41 = vmul.f32 0.375, %v9084_v50  ;;  %v4919_v37 = vmul.f32 0.375, %v4855_v7 }
 0xa92   : > { %v4859_v42 = vld [vmem:[#allocation5 + $0xd0] ss:$2 sm:$0x1]  ;;  %v4920_v33 = vadd.f32 %v4912_v29, %v4904_v39  ;;  %v4921_v52 = vadd.f32 %v4913_v30, %v4905_v1  ;;  %v4922_v14 = vadd.f32 %v4914_v35, %v4906_v9  ;;  %v4923_v22 = vadd.f32 %v4915_v8, %v4907_v10  ;;  %v4863_v44 = vld [vmem:[#allocation5 + $0xe8] ss:$2 sm:$0x1] }
 0xa93   : > { %v4924_v13 = vadd.f32 %v4916_v36, %v4908_v17  ;;  %v4925_v0 = vadd.f32 %v4917_v27, %v4909_v18  ;;  %v4926_v62 = vadd.f32 %v4918_v41, %v4910_v23  ;;  %v4927_v46 = vadd.f32 %v4919_v37, %v4911_v24  ;;  %v4867_v56 = vld [vmem:[#allocation5 + $0x11] ss:$2 sm:$0x1]  ;;  %v4875_v59 = vld [vmem:[#allocation5 + $0x41] ss:$2 sm:$0x1] }
 0xa94   : > { %v4928_v12 = vmul.f32 0.375, %v4833_v6  ;;  %v4929_v16 = vmul.f32 0.375, %v4835_v5  ;;  %v4930_v54 = vmul.f32 0.375, %v4841_v57  ;;  %v4931_v43 = vmul.f32 0.375, %v4843_v60  ;;  %v4873_v5 = vld [vmem:[#allocation5 + $0x31] ss:$2 sm:$0xff] }
 0xa95   : > { %v4932_v58 = vmul.f32 0.375, %v4849_v61  ;;  %v4933_v53 = vmul.f32 0.375, %v4851_v28  ;;  %v4934_v31 = vmul.f32 0.375, %v4857_v11  ;;  %v4935_v15 = vmul.f32 0.375, %v4859_v42  ;;  %v4869_v1 = vld [vmem:[#allocation5 + $0x19] ss:$2 sm:$0xff] }
 0xa96   : > { %v4936_v34 = vadd.f32 %v4928_v12, %v4920_v33  ;;  %v4937_v49 = vadd.f32 %v4929_v16, %v4921_v52  ;;  %v4938_v48 = vadd.f32 %v4930_v54, %v4922_v14  ;;  %v4939_v32 = vadd.f32 %v4931_v43, %v4923_v22  ;;  %v4883_v57 = vld [vmem:[#allocation5 + $0x71] ss:$2 sm:$0x1]  ;;  %v4871_v9 = vld [vmem:[#allocation5 + $0x29] ss:$2 sm:$0x1] }
 0xa97   : > { %v4940_v25 = vadd.f32 %v4932_v58, %v4924_v13  ;;  %v4941_v19 = vadd.f32 %v4933_v53, %v4925_v0  ;;  %v4942_v38 = vadd.f32 %v4934_v31, %v4926_v62  ;;  %v4943_v6 = vadd.f32 %v4935_v15, %v4927_v46  ;;  %v9101_v10 = vld [vmem:[#allocation5 + $0x49] ss:$2 sm:$0xff]  ;;  %v9103_v17 = vld [vmem:[#allocation5 + $0x59] ss:$2 sm:$0x1] }
 0xa98   : > { %v4944_v60 = vmul.f32 0.125, %v9074_v4  ;;  %v4945_v61 = vmul.f32 0.125, %v9076_v21  ;;  %v4946_v28 = vmul.f32 0.125, %v4845_v26  ;;  %v4947_v39 = vmul.f32 0.125, %v4847_v63  ;;  %v4881_v18 = vld [vmem:[#allocation5 + $0x61] ss:$2 sm:$0xff] }
 0xa99   : > { %v4948_v23 = vmul.f32 0.125, %v9084_v50  ;;  %v4949_v24 = vmul.f32 0.125, %v4855_v7  ;;  %v4950_v29 = vmul.f32 0.125, %v4861_v47  ;;  %v4951_v30 = vmul.f32 0.125, %v4863_v44  ;;  %v4885_v35 = vld [vmem:[#allocation5 + $0x79] ss:$2 sm:$0xff] }
 0xa9a   : > { %v4889_v8 = vld [vmem:[#allocation5 + $0x91] ss:$2 sm:$0xff]  ;;  %v4891_v36 = vld [vmem:[#allocation5 + $0xa1] ss:$2 sm:$0x1]  ;;  %v9106_v4 = vadd.f32 %v4944_v60, %v4936_v34  ;;  %v9108_v21 = vadd.f32 %v4945_v61, %v4937_v49  ;;  %v9110_v26 = vadd.f32 %v4946_v28, %v4938_v48  ;;  %v9112_v63 = vadd.f32 %v4947_v39, %v4939_v32 }
 0xa9b   : > { %v4887_v27 = vld [vmem:[#allocation5 + $0x89] ss:$2 sm:$0x1]  ;;  %v4895_v41 = vld [vmem:[#allocation5 + $0xb9] ss:$2 sm:$0x1]  ;;  %v9114_v37 = vadd.f32 %v4948_v23, %v4940_v25  ;;  %v9116_v11 = vadd.f32 %v4949_v24, %v4941_v19  ;;  %v9118_v50 = vadd.f32 %v4950_v29, %v4942_v38  ;;  %v9120_v7 = vadd.f32 %v4951_v30, %v4943_v6 }
 0xa9c   : > { %v4893_v42 = vld [vmem:[#allocation5 + $0xa9] ss:$2 sm:$0xff]  ;;  %v4960_v33 = vmul.f32 0.125, %v4865_v51  ;;  %v4961_v52 = vmul.f32 0.125, %v4867_v56  ;;  %v4962_v14 = vmul.f32 0.125, %v4873_v5  ;;  %v4963_v22 = vmul.f32 0.125, %v4875_v59 }
 0xa9d   : > { %v4964_v13 = vmul.f32 0.125, %v4881_v18  ;;  %v4965_v0 = vmul.f32 0.125, %v4883_v57  ;;  %v4966_v62 = vmul.f32 0.125, %v4889_v8  ;;  %v4967_v46 = vmul.f32 0.125, %v4891_v36  ;;  %v4897_v47 = vld [vmem:[#allocation5 + $0xc1] ss:$2 sm:$0xff] }
 0xa9e   : > { %v4968_v12 = vmul.f32 0.375, %v4869_v1  ;;  %v4969_v16 = vmul.f32 0.375, %v4871_v9  ;;  %v4970_v54 = vmul.f32 0.375, %v9101_v10  ;;  %v4971_v43 = vmul.f32 0.375, %v9103_v17  ;;  %v4901_v23 = vld [vmem:[#allocation5 + $0xd9] ss:$2 sm:$0xff] }
 0xa9f   : > { %v4972_v58 = vmul.f32 0.375, %v4885_v35  ;;  %v4973_v53 = vmul.f32 0.375, %v4887_v27  ;;  %v4974_v31 = vmul.f32 0.375, %v4893_v42  ;;  %v4975_v15 = vmul.f32 0.375, %v4895_v41 }
 0xaa0   : > { %v4899_v44 = vld [vmem:[#allocation5 + $0xd1] ss:$2 sm:$0x1]  ;;  %v4976_v34 = vadd.f32 %v4968_v12, %v4960_v33  ;;  %v4977_v49 = vadd.f32 %v4969_v16, %v4961_v52  ;;  %v4978_v48 = vadd.f32 %v4970_v54, %v4962_v14  ;;  %v4979_v32 = vadd.f32 %v4971_v43, %v4963_v22  ;;  %v4903_v24 = vld [vmem:[#allocation5 + $0xe9] ss:$2 sm:$0x1] }
 0xaa1   : > { %v4980_v51 = vadd.f32 %v4972_v58, %v4964_v13  ;;  %v4981_v56 = vadd.f32 %v4973_v53, %v4965_v0  ;;  %v4982_v25 = vadd.f32 %v4974_v31, %v4966_v62  ;;  %v4983_v19 = vadd.f32 %v4975_v15, %v4967_v46 }
 0xaa2   : > { %v4984_v38 = vmul.f32 0.375, %v4873_v5  ;;  %v4985_v6 = vmul.f32 0.375, %v4875_v59  ;;  %v4986_v60 = vmul.f32 0.375, %v4881_v18  ;;  %v4987_v61 = vmul.f32 0.375, %v4883_v57 }
 0xaa3   : > { %v4988_v28 = vmul.f32 0.375, %v4889_v8  ;;  %v4989_v39 = vmul.f32 0.375, %v4891_v36  ;;  %v4990_v1 = vmul.f32 0.375, %v4897_v47  ;;  %v4991_v9 = vmul.f32 0.375, %v4899_v44 }
 0xaa4   : > { %v4992_v29 = vadd.f32 %v4984_v38, %v4976_v34  ;;  %v4993_v30 = vadd.f32 %v4985_v6, %v4977_v49  ;;  %v4994_v33 = vadd.f32 %v4986_v60, %v4978_v48  ;;  %v4995_v52 = vadd.f32 %v4987_v61, %v4979_v32 }
 0xaa5   : > { %v4996_v14 = vadd.f32 %v4988_v28, %v4980_v51  ;;  %v4997_v22 = vadd.f32 %v4989_v39, %v4981_v56  ;;  %v4998_v13 = vadd.f32 %v4990_v1, %v4982_v25  ;;  %v4999_v0 = vadd.f32 %v4991_v9, %v4983_v19 }
 0xaa6   : > { %v5000_v62 = vmul.f32 0.125, %v9101_v10  ;;  %v5001_v59 = vmul.f32 0.125, %v9103_v17  ;;  %v5002_v5 = vmul.f32 0.125, %v4885_v35  ;;  %v5003_v57 = vmul.f32 0.125, %v4887_v27 }
 0xaa7   : > { %v5004_v18 = vmul.f32 0.125, %v4893_v42  ;;  %v5005_v8 = vmul.f32 0.125, %v4895_v41  ;;  %v5006_v36 = vmul.f32 0.125, %v4901_v23  ;;  %v5007_v46 = vmul.f32 0.125, %v4903_v24 }
 0xaa8   : > { %v5008_v12 = vadd.f32 %v5000_v62, %v4992_v29  ;;  %v5009_v16 = vadd.f32 %v5001_v59, %v4993_v30  ;;  %v5010_v54 = vadd.f32 %v5002_v5, %v4994_v33  ;;  %v5011_v43 = vadd.f32 %v5003_v57, %v4995_v52 }
 0xaa9   : > { %v5012_v58 = vadd.f32 %v5004_v18, %v4996_v14  ;;  %v5013_v53 = vadd.f32 %v5005_v8, %v4997_v22  ;;  %v5014_v31 = vadd.f32 %v5006_v36, %v4998_v13  ;;  %v5015_v15 = vadd.f32 %v5007_v46, %v4999_v0 }
 0xaaa   : > { %v5016_v47 = vmul.f32 0.125, %v9106_v4  ;;  %v5017_v10 = vmul.f32 0.125, %v9110_v26  ;;  %v5018_v17 = vmul.f32 0.125, %v9114_v37  ;;  %v5019_v35 = vmul.f32 0.125, %v9118_v50 }
 0xaab   : > { %v5020_v27 = vmul.f32 0.375, %v5008_v12  ;;  %v5021_v41 = vmul.f32 0.375, %v5010_v54  ;;  %v5022_v42 = vmul.f32 0.375, %v5012_v58  ;;  %v5023_v44 = vmul.f32 0.375, %v5014_v31 }
 0xaac   : > { %v5028_v34 = vmul.f32 0.375, %v9106_v4  ;;  %v5029_v49 = vmul.f32 0.375, %v9108_v21  ;;  %v5030_v48 = vmul.f32 0.375, %v9110_v26  ;;  %v5031_v32 = vmul.f32 0.375, %v9112_v63 }
 0xaad   : > { %v5024_v51 = vadd.f32 %v5020_v27, %v5016_v47  ;;  %v5025_v56 = vadd.f32 %v5021_v41, %v5017_v10  ;;  %v5026_v25 = vadd.f32 %v5022_v42, %v5018_v17  ;;  %v5027_v19 = vadd.f32 %v5023_v44, %v5019_v35 }
 0xaae   : > { %v5032_v38 = vmul.f32 0.375, %v9114_v37  ;;  %v5033_v6 = vmul.f32 0.375, %v9116_v11  ;;  %v5034_v60 = vmul.f32 0.375, %v9118_v50  ;;  %v5035_v61 = vmul.f32 0.375, %v9120_v7 }
 0xaaf   : > { %v5044_v28 = vrot.slane %v5028_v34, 1  ;;  %v5045_v4 = vrot.slane %v5029_v49, 1  ;;  %v5047_v39 = vrot.slane %v5030_v48, 1  ;;  %v5048_v21 = vrot.slane %v5031_v32, 1 }
 0xab0   : > { %v5050_v1 = vrot.slane %v5032_v38, 1  ;;  %v5051_v26 = vrot.slane %v5033_v6, 1  ;;  %v5053_v63 = vrot.slane %v5034_v60, 1  ;;  %v5054_v9 = vrot.slane %v5035_v61, 1 }
 0xab1   : > { %v5046_v23 = vsel %vm4768_vm2, %v5044_v28, %v5045_v4  ;;  %v5049_v37 = vsel %vm4768_vm2, %v5047_v39, %v5048_v21  ;;  %v5064_v24 = vmul.f32 0.125, %v5008_v12  ;;  %v5065_v11 = vmul.f32 0.125, %v5009_v16 }
 0xab2   : > { %v5052_v50 = vsel %vm4768_vm2, %v5050_v1, %v5051_v26  ;;  %v5055_v7 = vsel %vm4768_vm2, %v5053_v63, %v5054_v9  ;;  %v5060_v29 = vadd.f32 %v5046_v23, %v5024_v51  ;;  %v5061_v30 = vadd.f32 %v5049_v37, %v5025_v56 }
 0xab3   : > { %v5062_v33 = vadd.f32 %v5052_v50, %v5026_v25  ;;  %v5063_v52 = vadd.f32 %v5055_v7, %v5027_v19  ;;  %v5066_v14 = vmul.f32 0.125, %v5010_v54  ;;  %v5067_v22 = vmul.f32 0.125, %v5011_v43 }
 0xab4   : > { %v5068_v13 = vmul.f32 0.125, %v5012_v58  ;;  %v5069_v0 = vmul.f32 0.125, %v5013_v53  ;;  %v5070_v62 = vmul.f32 0.125, %v5014_v31  ;;  %v5071_v59 = vmul.f32 0.125, %v5015_v15 }
 0xab5   : > { %v5080_v5 = vrot.slane %v5064_v24, 1  ;;  %v5081_v57 = vrot.slane %v5065_v11, 1  ;;  %v5083_v18 = vrot.slane %v5066_v14, 1  ;;  %v5084_v8 = vrot.slane %v5067_v22, 1 }
 0xab6   : > { %v5086_v36 = vrot.slane %v5068_v13, 1  ;;  %v5087_v46 = vrot.slane %v5069_v0, 1  ;;  %v5089_v12 = vrot.slane %v5070_v62, 1  ;;  %v5090_v16 = vrot.slane %v5071_v59, 1 }
 0xab7   : > { %v4823_v54 = vadd.f32 %v9087_v20, %v9078_v55  ;;  %v4824_v43 = vadd.f32 %v9090_v40, %v9080_v45  ;;  %v5082_v58 = vsel %vm4768_vm2, %v5080_v5, %v5081_v57  ;;  %v5085_v53 = vsel %vm4768_vm2, %v5083_v18, %v5084_v8 }
 0xab8   : > { %v5088_v31 = vsel %vm4768_vm2, %v5086_v36, %v5087_v46  ;;  %v5091_v15 = vsel %vm4768_vm2, %v5089_v12, %v5090_v16  ;;  %v5096_v47 = vadd.f32 %v5082_v58, %v5060_v29  ;;  %v5097_v10 = vadd.f32 %v5085_v53, %v5061_v30 }
 0xab9   : > { %v5098_v17 = vadd.f32 %v5088_v31, %v5062_v33  ;;  %v5099_v35 = vadd.f32 %v5091_v15, %v5063_v52 }
 0xaba   : > { %v5100_v55 = vadd.f32 %v5096_v47, %v9092_v2  ;;  %v5101_v45 = vadd.f32 %v5097_v10, %v9094_v3 }
 0xabb   : > { %v5102_v20 = vadd.f32 %v5098_v17, %v4823_v54  ;;  %v5103_v40 = vadd.f32 %v5099_v35, %v4824_v43 }
 0xabc   : > { %v5104_v27 = vmul.f32 0.70710677, %v5100_v55  ;;  %v5105_v41 = vmul.f32 0.70710677, %v5101_v45 }
 0xabd   : > { %v5106_v42 = vmul.f32 0.70710677, %v5102_v20  ;;  %v5107_v44 = vmul.f32 0.70710677, %v5103_v40 }
 0xabe   : > { %5108 = vst.msk [vmem:[%s7335_s17] sm:$0xff] %vm1075_vm4, %v5104_v27  ;;  %5109 = vst.msk [vmem:[%s7335_s17 + $0x8] sm:$0xff] %vm1075_vm4, %v5105_v41 }
 0xabf   : > { %5110 = vst.msk [vmem:[%s7335_s17 + $0x10] sm:$0xff] %vm1075_vm4, %v5106_v42  ;;  %5111 = vst.msk [vmem:[%s7335_s17 + $0x18] sm:$0xff] %vm1075_vm4, %v5107_v44 }
 0xac0   : > { %6506 = shalt.err (!%p6503_p10)
}
 0xac1   : > { %s6507_s18 = scalar_lea.hbm %s9158_s0, 512  ;;  %s6511_s1 = scalar_lea.hbm %s9307_s8, 2048 }
 0xac2   : > { %p6508_p2 = scmp.ne.s32.totalorder %s9158_s0, %s6507_s18  ;;  %p6512_p0 = scmp.lt.u32.totalorder %s9158_s0, %s9307_s8 }
 0xac3   : > { %p6513_p6 = scmp.lt.u32.totalorder %s6511_s1, %s6507_s18  ;;  %p6515_p11 = scmp.lt.u32.totalorder %s6507_s18, %s9158_s0 }
 0xac4   : > { %p6509_p12 = pnand %p6508_p2, %p9308_p8 }
 0xac5   : > { %p6514_p9 = por %p6513_p6, %p6512_p0 }
 0xac6   : > { %p6510_p5 = pneg %p6509_p12 }
 0xac7   : > { %p6516_p13 = por %p6515_p11, %p6514_p9 }
 0xac9   : > { %p6517_p3 = pnand %p6516_p13, %p6510_p5 }
 0xacb   : > { %6520 = shalt.err (!%p6517_p3)
}
 0xacc   : > { %s6650_s3 = smov 128  }
 0xacd   : > { %6073 = dma.vmem_to_hbm [thread:$0]  (%p9308_p8), %s9160_s24, 512, %s9158_s0, %s9172_s13, %s6650_s3, %s6650_s3, %s6640_s2  }
 0xace PF: > { %p6110_p7 = scmp.ge.s32.totalorder %s6627_s7, 2  ;;  %s5143_s4 = sand.u32 1, %s6587_s21  }
 0xacf   : > { %p9309_p1 = scmp.ne.s32.totalorder %s9280_s20, 0  ;;  %s5144_s12 = scalar_lea.sflag [#allocation8], %s5143_s4 }
 0xad1   : > { %p6096_p4 = pnand %p6110_p7, %p9309_p1 }
 0xad3   : > { %6582 = dma.done.wait (!%p6096_p4), %s5144_s12, 512  }
 0xad4   : > { %6584 = vsyncadd (!%p6096_p4), %s5144_s12, 4294966784  ;;  %s25_s7 = sadd.s32 1, %s6627_s7   ;;  %s9310_s21 = smov %s6591_s22 }
 0xad5   : > { %p22_p10 = scmp.ge.s32.totalorder %s25_s7, 6   ;;  %s9311_s22 = smov %s6595_s23 }
 0xad6   : > { %s9312_s23 = smov %s6938_s10  ;;  %s9313_s24 = smov %s6603_s25 }
 0xad7   : > { %s9314_s25 = smov %s6607_s26  ;;  %s9315_s26 = smov %s6935_s11 }
 0xad8   : > { %s9316_s27 = smov %s6619_s29  ;;  %s9317_s28 = smov %s6623_s30 }
 0xad9   : > { %s9318_s29 = smov %s9321_s14  ;;  %s9319_s30 = smov %s9325_s15 }
 0xada   :  { %24 = sbr.rel (!%p22_p10) target bundleno = 19 (0x13), region = 252 }
 0xae1   :  { %5149 = vsyncpa [#allocation7], 1 }
 0xae2   :  { %5151 = vsyncpa [#allocation7 + $0x1], 1 }
 0xae3   :  { %5152 = vsyncpa [#allocation10], 1 }
 0xae4   :  { %5153 = vsyncpa [#allocation13], 1 }
 0xae5   :  { %5154 = vsyncpa [#allocation16], 1 }
 0xae6   :  { %5155 = vsyncpa [#allocation8], 1 }
 0xae7   :  { %5157 = vsyncpa [#allocation8 + $0x1], 1 }

</bundles_post_ra>
